<compile_context>
chip_gen: v6e
topology: v6e:2x2x1
jax: 0.10.0
libtpu: 0.0.40
codegen_flags: <defaults>
</compile_context>

<pallas_src>
import jax
import jax.numpy as jnp
from jax.experimental import pallas as pl
from jax.experimental.pallas import tpu as pltpu

N, C, H, W = 2, 64, 9, 9            # module hardcodes 64 channels; 9x9 board
HP, WP = H + 2, W + 2               # spatially padded grid (11 x 11)
HPWP = HP * WP                      # 121 padded spatial positions
LANES = N * C                       # 128: both images packed into lanes
M_ROWS = 128                        # matmul M (121 valid rows + 7 pad rows)
PAD_TOP = 16                        # >= WP + 1 so every 3x3 tap is an in-bounds row shift
RE = PAD_TOP + M_ROWS + 16          # 160 rows in the shift-extended slabs
K9 = 9 * LANES                      # im2col contraction depth (1152)
EPS = 1e-5
INV_COUNT = 1.0 / float(N * H * W)  # training-mode BN normalizer (1/162)

_TAP_OFFS = tuple(PAD_TOP + (dy - 1) * WP + (dx - 1)
                  for dy in range(3) for dx in range(3))


def _bn_affine(ym, gamma, beta):
    """One-pass training-mode BatchNorm on mask-zeroed values.
    ym: (M_ROWS, 128) f32, invalid rows already zeroed; lanes = (image, channel)."""
    s = jnp.sum(ym, axis=0, keepdims=True)               # (1, 128)
    ss = jnp.sum(ym * ym, axis=0, keepdims=True)         # (1, 128)
    # combine the two images' partial sums per channel (lane c <-> lane c+64)
    s = s + pltpu.roll(s, shift=C, axis=1)
    ss = ss + pltpu.roll(ss, shift=C, axis=1)
    mean = s * INV_COUNT
    var = ss * INV_COUNT - mean * mean
    scale = gamma * jax.lax.rsqrt(var + EPS)
    shift = beta - mean * scale
    return ym * scale + shift


def _build_patch(src_ref, patch_ref):
    """im2col: 9 row-shifted copies of a (M_ROWS, 128) slab -> (M_ROWS, 1152) bf16."""
    for k, off in enumerate(_TAP_OFFS):
        patch_ref[:, k * LANES:(k + 1) * LANES] = (
            src_ref[pl.ds(off, M_ROWS), :].astype(jnp.bfloat16))


def resblock_kernel(x_ref, mask_ref,
                    w1_ref, w2_ref, bn_ref,
                    out_ref, patch_ref, h1_ref):
    mask = mask_ref[...]                                  # (M_ROWS, 1) 0/1 valid-row mask
    g1, be1 = bn_ref[0:1, :], bn_ref[1:2, :]              # (1, 128) each
    g2, be2 = bn_ref[2:3, :], bn_ref[3:4, :]

    # ---- conv1 (single K=1152 bf16 matmul) + BN1 + ReLU ----
    _build_patch(x_ref, patch_ref)
    y1 = jnp.dot(patch_ref[...], w1_ref[...], preferred_element_type=jnp.float32)
    ym1 = y1 * mask
    h1 = jnp.maximum(_bn_affine(ym1, g1, be1), 0.0) * mask

    # stage h1 into the shift-extended scratch; zero only the pad bands
    h1_ref[0:PAD_TOP, :] = jnp.zeros((PAD_TOP, LANES), jnp.bfloat16)
    h1_ref[PAD_TOP + M_ROWS:RE, :] = jnp.zeros((RE - PAD_TOP - M_ROWS, LANES),
                                               jnp.bfloat16)
    h1_ref[PAD_TOP:PAD_TOP + M_ROWS, :] = h1.astype(jnp.bfloat16)

    # ---- conv2 (single K=1152 bf16 matmul) + BN2 + skip + ReLU ----
    _build_patch(h1_ref, patch_ref)
    y2 = jnp.dot(patch_ref[...], w2_ref[...], preferred_element_type=jnp.float32)
    ym2 = y2 * mask
    z2 = _bn_affine(ym2, g2, be2)
    skip = x_ref[pl.ds(PAD_TOP, M_ROWS), :]
    out_ref[...] = jnp.maximum(z2 + skip, 0.0)


def _blockdiag_bf16(w_hwio):
    """(3,3,Cin,Cout) HWIO -> block-diagonal (9*2C, 2C) bf16 matmul RHS that keeps the
    two lane-packed images independent inside a single contraction."""
    wk = w_hwio.reshape(9, C, C)                       # [tap, ci, co]
    z = jnp.zeros_like(wk)
    img0 = jnp.concatenate([wk, z], axis=2)            # rows (tap, n=0, ci)
    img1 = jnp.concatenate([z, wk], axis=2)            # rows (tap, n=1, ci)
    full = jnp.concatenate([img0, img1], axis=1)       # (9, 2C, 2C)
    return full.reshape(K9, LANES).astype(jnp.bfloat16)


def _lane_vec(v):
    """per-channel (C,) vector -> (2C,) lane layout (same params for both images)."""
    return jnp.concatenate([v, v]).astype(jnp.float32)


def _full_spec(shape):
    return pl.BlockSpec(shape, lambda i: (0,) * len(shape))


def resblock_forward(x_nchw, params):
    # Conv biases b1/b2 are accepted but NOT sent to the kernel: a bias added right before
    # training-mode BatchNorm is exactly cancelled by the batch-mean subtraction.
    w1, _b1, g1, be1, w2, _b2, g2, be2 = params

    # NCHW -> (H, W, N, C) -> pad spatial -> (121, 128) lane-packed -> row-extended slab
    xt = jnp.transpose(x_nchw, (2, 3, 0, 1))
    xp = jnp.pad(xt, ((1, 1), (1, 1), (0, 0), (0, 0)))
    x_flat = xp.reshape(HPWP, LANES).astype(jnp.float32)
    x_ext = jnp.pad(x_flat, ((PAD_TOP, RE - PAD_TOP - HPWP), (0, 0)))

    # (128, 1) validity mask: 1 on the interior 9x9 positions of the padded 11x11 grid
    hh = jnp.arange(HP)[:, None]
    ww = jnp.arange(WP)[None, :]
    m2 = ((hh >= 1) & (hh <= H) & (ww >= 1) & (ww <= W)).astype(jnp.float32)
    mask = jnp.pad(m2.reshape(HPWP, 1), ((0, M_ROWS - HPWP), (0, 0)))

    # single (4, 128) slab for all BN affine params: rows = [g1, be1, g2, be2]
    bn_params = jnp.stack([_lane_vec(g1), _lane_vec(be1),
                           _lane_vec(g2), _lane_vec(be2)], axis=0)

    args = (x_ext, mask,
            _blockdiag_bf16(w1), _blockdiag_bf16(w2), bn_params)

    out_flat = pl.pallas_call(
        resblock_kernel,
        out_shape=jax.ShapeDtypeStruct((M_ROWS, LANES), jnp.float32),
        grid=(1,),
        in_specs=[_full_spec(a.shape) for a in args],
        out_specs=pl.BlockSpec((M_ROWS, LANES), lambda i: (0, 0)),
        scratch_shapes=[pltpu.VMEM((M_ROWS, K9), jnp.bfloat16),   # shared im2col patch
                        pltpu.VMEM((RE, LANES), jnp.bfloat16)],   # conv2 staging slab
        compiler_params=pltpu.CompilerParams(dimension_semantics=("arbitrary",)),
    )(*args)
    # TODO(synk): when applying many ResBlocks / larger batches, add a leading "parallel"
    # grid axis so v7x's second TensorCore is used; a single forward is one grid step
    # because training-mode BN couples the whole (tiny) batch.

    o = out_flat[:HPWP].reshape(HP, WP, N, C)[1:1 + H, 1:1 + W]
    return jnp.transpose(o, (2, 3, 0, 1))                 # back to NCHW


def _ref_forward(x_nchw, params):
    """Pure-JAX reference (same semantics as the PyTorch module in train mode),
    including the conv biases that the kernel drops."""
    w1, b1, g1, be1, w2, b2, g2, be2 = params

    def conv(x, w, b):
        y = jax.lax.conv_general_dilated(
            x, w, window_strides=(1, 1), padding="SAME",
            dimension_numbers=("NHWC", "HWIO", "NHWC"),
            precision=jax.lax.Precision.HIGHEST)
        return y + b

    def bn(x, g, be):
        mean = jnp.mean(x, axis=(0, 1, 2), keepdims=True)
        var = jnp.mean((x - mean) ** 2, axis=(0, 1, 2), keepdims=True)
        return g * (x - mean) * jax.lax.rsqrt(var + EPS) + be

    x = jnp.transpose(x_nchw, (0, 2, 3, 1))
    y = jax.nn.relu(bn(conv(x, w1, b1), g1, be1))
    y = bn(conv(y, w2, b2), g2, be2)
    y = jax.nn.relu(y + x)
    return jnp.transpose(y, (0, 3, 1, 2))


if __name__ == "__main__":
    key = jax.random.PRNGKey(0)
    ks = jax.random.split(key, 5)
    x = jax.random.normal(ks[0], (N, C, H, W), jnp.float32)

    # deterministic synthetic parameters (Conv2d-style uniform init, BN affine defaults)
    bound = 1.0 / float((C * 9) ** 0.5)
    w1 = jax.random.uniform(ks[1], (3, 3, C, C), jnp.float32, -bound, bound)  # HWIO
    b1 = jax.random.uniform(ks[2], (C,), jnp.float32, -bound, bound)
    w2 = jax.random.uniform(ks[3], (3, 3, C, C), jnp.float32, -bound, bound)
    b2 = jax.random.uniform(ks[4], (C,), jnp.float32, -bound, bound)
    g1 = jnp.ones((C,), jnp.float32)
    be1 = jnp.zeros((C,), jnp.float32)
    g2 = jnp.ones((C,), jnp.float32)
    be2 = jnp.zeros((C,), jnp.float32)
    params = (w1, b1, g1, be1, w2, b2, g2, be2)

    out = jax.block_until_ready(jax.jit(resblock_forward)(x, params))
    ref = _ref_forward(x, params)

    assert out.shape == (N, C, H, W)
    # bf16 MXU operands vs a Precision.HIGHEST f32 reference across two chained 576-tap
    # convs followed by a BatchNorm rescale (~4x gain) -> expect a few 1e-2 absolute
    # deviation on O(1) outputs; tolerance is set accordingly.
    max_err = float(jnp.max(jnp.abs(out - ref)))
    assert bool(jnp.allclose(out, ref, atol=5e-2, rtol=5e-2)), max_err
    print("KERNEL_OK")
</pallas_src>

<mosaic_0001>
module attributes {stable_mosaic.version = 11 : i64} {
  func.func @resblock_kernel(%arg0: i32, %arg1: memref<160x128xf32, #tpu.memory_space<vmem>>, %arg2: memref<128x1xf32, #tpu.memory_space<vmem>>, %arg3: memref<1152x128xbf16, #tpu.memory_space<vmem>>, %arg4: memref<1152x128xbf16, #tpu.memory_space<vmem>>, %arg5: memref<4x128xf32, #tpu.memory_space<vmem>>, %arg6: memref<128x128xf32, #tpu.memory_space<vmem>>, %arg7: memref<128x1152xbf16, #tpu.memory_space<vmem>>, %arg8: memref<160x128xbf16, #tpu.memory_space<vmem>>) attributes {dimension_semantics = [#tpu.dimension_semantics<arbitrary>], iteration_bounds = array<i64: 1>, scalar_prefetch = 0 : i64, scratch_operands = 2 : i64, tpu.core_type = #tpu.core_type<tc>, window_params = [{pipeline_mode = #tpu.pipeline_mode<synchronous>, transform_indices = @transform_0, window_bounds = array<i64: 160, 128>}, {pipeline_mode = #tpu.pipeline_mode<synchronous>, transform_indices = @transform_1, window_bounds = array<i64: 128, 1>}, {pipeline_mode = #tpu.pipeline_mode<synchronous>, transform_indices = @transform_2, window_bounds = array<i64: 1152, 128>}, {pipeline_mode = #tpu.pipeline_mode<synchronous>, transform_indices = @transform_3, window_bounds = array<i64: 1152, 128>}, {pipeline_mode = #tpu.pipeline_mode<synchronous>, transform_indices = @transform_4, window_bounds = array<i64: 4, 128>}, {pipeline_mode = #tpu.pipeline_mode<synchronous>, transform_indices = @transform_5, window_bounds = array<i64: 128, 128>}]} {
    %c0 = arith.constant 0 : index
    %c0_0 = arith.constant 0 : index
    %0 = vector.load %arg2[%c0, %c0_0] : memref<128x1xf32, #tpu.memory_space<vmem>>, vector<128x1xf32>
    %c0_1 = arith.constant 0 : index
    %c0_2 = arith.constant 0 : index
    %1 = vector.load %arg5[%c0_1, %c0_2] : memref<4x128xf32, #tpu.memory_space<vmem>>, vector<1x128xf32>
    %c1 = arith.constant 1 : index
    %c0_3 = arith.constant 0 : index
    %2 = vector.load %arg5[%c1, %c0_3] : memref<4x128xf32, #tpu.memory_space<vmem>>, vector<1x128xf32>
    %c2 = arith.constant 2 : index
    %c0_4 = arith.constant 0 : index
    %3 = vector.load %arg5[%c2, %c0_4] : memref<4x128xf32, #tpu.memory_space<vmem>>, vector<1x128xf32>
    %c3 = arith.constant 3 : index
    %c0_5 = arith.constant 0 : index
    %4 = vector.load %arg5[%c3, %c0_5] : memref<4x128xf32, #tpu.memory_space<vmem>>, vector<1x128xf32>
    %c4 = arith.constant 4 : index
    %c0_6 = arith.constant 0 : index
    %5 = vector.load %arg1[%c4, %c0_6] : memref<160x128xf32, #tpu.memory_space<vmem>>, vector<128x128xf32>
    %6 = arith.truncf %5 : vector<128x128xf32> to vector<128x128xbf16>
    %c0_7 = arith.constant 0 : index
    %c0_8 = arith.constant 0 : index
    %7 = vector.load %arg7[%c0_7, %c0_8] : memref<128x1152xbf16, #tpu.memory_space<vmem>>, vector<128x128xbf16>
    tpu.vector_store %arg7[%c0_7, %c0_8], %6 {strides = array<i32>} : memref<128x1152xbf16, #tpu.memory_space<vmem>>, vector<128x128xbf16>,
    %c5 = arith.constant 5 : index
    %c0_9 = arith.constant 0 : index
    %8 = vector.load %arg1[%c5, %c0_9] : memref<160x128xf32, #tpu.memory_space<vmem>>, vector<128x128xf32>
    %9 = arith.truncf %8 : vector<128x128xf32> to vector<128x128xbf16>
    %c0_10 = arith.constant 0 : index
    %c128 = arith.constant 128 : index
    %10 = vector.load %arg7[%c0_10, %c128] : memref<128x1152xbf16, #tpu.memory_space<vmem>>, vector<128x128xbf16>
    tpu.vector_store %arg7[%c0_10, %c128], %9 {strides = array<i32>} : memref<128x1152xbf16, #tpu.memory_space<vmem>>, vector<128x128xbf16>,
    %c6 = arith.constant 6 : index
    %c0_11 = arith.constant 0 : index
    %11 = vector.load %arg1[%c6, %c0_11] : memref<160x128xf32, #tpu.memory_space<vmem>>, vector<128x128xf32>
    %12 = arith.truncf %11 : vector<128x128xf32> to vector<128x128xbf16>
    %c0_12 = arith.constant 0 : index
    %c256 = arith.constant 256 : index
    %13 = vector.load %arg7[%c0_12, %c256] : memref<128x1152xbf16, #tpu.memory_space<vmem>>, vector<128x128xbf16>
    tpu.vector_store %arg7[%c0_12, %c256], %12 {strides = array<i32>} : memref<128x1152xbf16, #tpu.memory_space<vmem>>, vector<128x128xbf16>,
    %c15 = arith.constant 15 : index
    %c0_13 = arith.constant 0 : index
    %14 = vector.load %arg1[%c15, %c0_13] : memref<160x128xf32, #tpu.memory_space<vmem>>, vector<128x128xf32>
    %15 = arith.truncf %14 : vector<128x128xf32> to vector<128x128xbf16>
    %c0_14 = arith.constant 0 : index
    %c384 = arith.constant 384 : index
    %16 = vector.load %arg7[%c0_14, %c384] : memref<128x1152xbf16, #tpu.memory_space<vmem>>, vector<128x128xbf16>
    tpu.vector_store %arg7[%c0_14, %c384], %15 {strides = array<i32>} : memref<128x1152xbf16, #tpu.memory_space<vmem>>, vector<128x128xbf16>,
    %c16 = arith.constant 16 : index
    %c0_15 = arith.constant 0 : index
    %17 = vector.load %arg1[%c16, %c0_15] : memref<160x128xf32, #tpu.memory_space<vmem>>, vector<128x128xf32>
    %18 = arith.truncf %17 : vector<128x128xf32> to vector<128x128xbf16>
    %c0_16 = arith.constant 0 : index
    %c512 = arith.constant 512 : index
    %19 = vector.load %arg7[%c0_16, %c512] : memref<128x1152xbf16, #tpu.memory_space<vmem>>, vector<128x128xbf16>
    tpu.vector_store %arg7[%c0_16, %c512], %18 {strides = array<i32>} : memref<128x1152xbf16, #tpu.memory_space<vmem>>, vector<128x128xbf16>,
    %c17 = arith.constant 17 : index
    %c0_17 = arith.constant 0 : index
    %20 = vector.load %arg1[%c17, %c0_17] : memref<160x128xf32, #tpu.memory_space<vmem>>, vector<128x128xf32>
    %21 = arith.truncf %20 : vector<128x128xf32> to vector<128x128xbf16>
    %c0_18 = arith.constant 0 : index
    %c640 = arith.constant 640 : index
    %22 = vector.load %arg7[%c0_18, %c640] : memref<128x1152xbf16, #tpu.memory_space<vmem>>, vector<128x128xbf16>
    tpu.vector_store %arg7[%c0_18, %c640], %21 {strides = array<i32>} : memref<128x1152xbf16, #tpu.memory_space<vmem>>, vector<128x128xbf16>,
    %c26 = arith.constant 26 : index
    %c0_19 = arith.constant 0 : index
    %23 = vector.load %arg1[%c26, %c0_19] : memref<160x128xf32, #tpu.memory_space<vmem>>, vector<128x128xf32>
    %24 = arith.truncf %23 : vector<128x128xf32> to vector<128x128xbf16>
    %c0_20 = arith.constant 0 : index
    %c768 = arith.constant 768 : index
    %25 = vector.load %arg7[%c0_20, %c768] : memref<128x1152xbf16, #tpu.memory_space<vmem>>, vector<128x128xbf16>
    tpu.vector_store %arg7[%c0_20, %c768], %24 {strides = array<i32>} : memref<128x1152xbf16, #tpu.memory_space<vmem>>, vector<128x128xbf16>,
    %c27 = arith.constant 27 : index
    %c0_21 = arith.constant 0 : index
    %26 = vector.load %arg1[%c27, %c0_21] : memref<160x128xf32, #tpu.memory_space<vmem>>, vector<128x128xf32>
    %27 = arith.truncf %26 : vector<128x128xf32> to vector<128x128xbf16>
    %c0_22 = arith.constant 0 : index
    %c896 = arith.constant 896 : index
    %28 = vector.load %arg7[%c0_22, %c896] : memref<128x1152xbf16, #tpu.memory_space<vmem>>, vector<128x128xbf16>
    tpu.vector_store %arg7[%c0_22, %c896], %27 {strides = array<i32>} : memref<128x1152xbf16, #tpu.memory_space<vmem>>, vector<128x128xbf16>,
    %c28 = arith.constant 28 : index
    %c0_23 = arith.constant 0 : index
    %29 = vector.load %arg1[%c28, %c0_23] : memref<160x128xf32, #tpu.memory_space<vmem>>, vector<128x128xf32>
    %30 = arith.truncf %29 : vector<128x128xf32> to vector<128x128xbf16>
    %c0_24 = arith.constant 0 : index
    %c1024 = arith.constant 1024 : index
    %31 = vector.load %arg7[%c0_24, %c1024] : memref<128x1152xbf16, #tpu.memory_space<vmem>>, vector<128x128xbf16>
    tpu.vector_store %arg7[%c0_24, %c1024], %30 {strides = array<i32>} : memref<128x1152xbf16, #tpu.memory_space<vmem>>, vector<128x128xbf16>,
    %c0_25 = arith.constant 0 : index
    %c0_26 = arith.constant 0 : index
    %32 = vector.load %arg7[%c0_25, %c0_26] : memref<128x1152xbf16, #tpu.memory_space<vmem>>, vector<128x1152xbf16>
    %c0_27 = arith.constant 0 : index
    %c0_28 = arith.constant 0 : index
    %33 = vector.load %arg3[%c0_27, %c0_28] : memref<1152x128xbf16, #tpu.memory_space<vmem>>, vector<1152x128xbf16>
    %cst = arith.constant dense<0.000000e+00> : vector<128x128xf32>
    %34 = tpu.matmul %32, %33, %cst {dimension_numbers = #tpu.dot_dimension_numbers<[1], [0], [0], [1], [0, 0, 1, 1], [], []>} : vector<128x1152xbf16>, vector<1152x128xbf16>, vector<128x128xf32> -> vector<128x128xf32>
    %35 = vector.broadcast %0 : vector<128x1xf32> to vector<128x128xf32>
    %36 = arith.mulf %34, %35 : vector<128x128xf32>
    %cst_29 = arith.constant dense<0.000000e+00> : vector<128xf32>
    %37 = vector.multi_reduction <add>, %36, %cst_29 [0] : vector<128x128xf32> to vector<128xf32>
    %38 = vector.shape_cast %37 : vector<128xf32> to vector<1x128xf32>
    %39 = arith.mulf %36, %36 : vector<128x128xf32>
    %cst_30 = arith.constant dense<0.000000e+00> : vector<128xf32>
    %40 = vector.multi_reduction <add>, %39, %cst_30 [0] : vector<128x128xf32> to vector<128xf32>
    %41 = vector.shape_cast %40 : vector<128xf32> to vector<1x128xf32>
    %c64_i32 = arith.constant 64 : i32
    %42 = tpu.dynamic_rotate %38 by %c64_i32 dim 1 : vector<1x128xf32>, i32 -> vector<1x128xf32>
    %43 = arith.addf %38, %42 : vector<1x128xf32>
    %c64_i32_31 = arith.constant 64 : i32
    %44 = tpu.dynamic_rotate %41 by %c64_i32_31 dim 1 : vector<1x128xf32>, i32 -> vector<1x128xf32>
    %45 = arith.addf %41, %44 : vector<1x128xf32>
    %cst_32 = arith.constant 0.00617283955 : f32
    %46 = vector.broadcast %cst_32 : f32 to vector<1x128xf32>
    %47 = arith.mulf %43, %46 : vector<1x128xf32>
    %cst_33 = arith.constant 0.00617283955 : f32
    %48 = vector.broadcast %cst_33 : f32 to vector<1x128xf32>
    %49 = arith.mulf %45, %48 : vector<1x128xf32>
    %50 = arith.mulf %47, %47 : vector<1x128xf32>
    %51 = arith.subf %49, %50 : vector<1x128xf32>
    %cst_34 = arith.constant 9.99999974E-6 : f32
    %52 = vector.broadcast %cst_34 : f32 to vector<1x128xf32>
    %53 = arith.addf %51, %52 : vector<1x128xf32>
    %54 = math.rsqrt %53 : vector<1x128xf32>
    %55 = arith.mulf %1, %54 : vector<1x128xf32>
    %56 = arith.mulf %47, %55 : vector<1x128xf32>
    %57 = arith.subf %2, %56 : vector<1x128xf32>
    %58 = vector.broadcast %55 : vector<1x128xf32> to vector<128x128xf32>
    %59 = arith.mulf %36, %58 : vector<128x128xf32>
    %60 = vector.broadcast %57 : vector<1x128xf32> to vector<128x128xf32>
    %61 = arith.addf %59, %60 : vector<128x128xf32>
    %cst_35 = arith.constant 0.000000e+00 : f32
    %62 = vector.broadcast %cst_35 : f32 to vector<128x128xf32>
    %63 = arith.maximumf %61, %62 : vector<128x128xf32>
    %64 = vector.broadcast %0 : vector<128x1xf32> to vector<128x128xf32>
    %65 = arith.mulf %63, %64 : vector<128x128xf32>
    %cst_36 = arith.constant 0.000000e+00 : bf16
    %66 = vector.broadcast %cst_36 : bf16 to vector<16x128xbf16>
    %c0_37 = arith.constant 0 : index
    %c0_38 = arith.constant 0 : index
    %67 = vector.load %arg8[%c0_37, %c0_38] : memref<160x128xbf16, #tpu.memory_space<vmem>>, vector<16x128xbf16>
    tpu.vector_store %arg8[%c0_37, %c0_38], %66 {strides = array<i32>} : memref<160x128xbf16, #tpu.memory_space<vmem>>, vector<16x128xbf16>,
    %cst_39 = arith.constant 0.000000e+00 : bf16
    %68 = vector.broadcast %cst_39 : bf16 to vector<16x128xbf16>
    %c144 = arith.constant 144 : index
    %c0_40 = arith.constant 0 : index
    %69 = vector.load %arg8[%c144, %c0_40] : memref<160x128xbf16, #tpu.memory_space<vmem>>, vector<16x128xbf16>
    tpu.vector_store %arg8[%c144, %c0_40], %68 {strides = array<i32>} : memref<160x128xbf16, #tpu.memory_space<vmem>>, vector<16x128xbf16>,
    %70 = arith.truncf %65 : vector<128x128xf32> to vector<128x128xbf16>
    %c16_41 = arith.constant 16 : index
    %c0_42 = arith.constant 0 : index
    %71 = vector.load %arg8[%c16_41, %c0_42] : memref<160x128xbf16, #tpu.memory_space<vmem>>, vector<128x128xbf16>
    tpu.vector_store %arg8[%c16_41, %c0_42], %70 {strides = array<i32>} : memref<160x128xbf16, #tpu.memory_space<vmem>>, vector<128x128xbf16>,
    %c4_43 = arith.constant 4 : index
    %c0_44 = arith.constant 0 : index
    %72 = vector.load %arg8[%c4_43, %c0_44] : memref<160x128xbf16, #tpu.memory_space<vmem>>, vector<128x128xbf16>
    %c0_45 = arith.constant 0 : index
    %c0_46 = arith.constant 0 : index
    %73 = vector.load %arg7[%c0_45, %c0_46] : memref<128x1152xbf16, #tpu.memory_space<vmem>>, vector<128x128xbf16>
    tpu.vector_store %arg7[%c0_45, %c0_46], %72 {strides = array<i32>} : memref<128x1152xbf16, #tpu.memory_space<vmem>>, vector<128x128xbf16>,
    %c5_47 = arith.constant 5 : index
    %c0_48 = arith.constant 0 : index
    %74 = vector.load %arg8[%c5_47, %c0_48] : memref<160x128xbf16, #tpu.memory_space<vmem>>, vector<128x128xbf16>
    %c0_49 = arith.constant 0 : index
    %c128_50 = arith.constant 128 : index
    %75 = vector.load %arg7[%c0_49, %c128_50] : memref<128x1152xbf16, #tpu.memory_space<vmem>>, vector<128x128xbf16>
    tpu.vector_store %arg7[%c0_49, %c128_50], %74 {strides = array<i32>} : memref<128x1152xbf16, #tpu.memory_space<vmem>>, vector<128x128xbf16>,
    %c6_51 = arith.constant 6 : index
    %c0_52 = arith.constant 0 : index
    %76 = vector.load %arg8[%c6_51, %c0_52] : memref<160x128xbf16, #tpu.memory_space<vmem>>, vector<128x128xbf16>
    %c0_53 = arith.constant 0 : index
    %c256_54 = arith.constant 256 : index
    %77 = vector.load %arg7[%c0_53, %c256_54] : memref<128x1152xbf16, #tpu.memory_space<vmem>>, vector<128x128xbf16>
    tpu.vector_store %arg7[%c0_53, %c256_54], %76 {strides = array<i32>} : memref<128x1152xbf16, #tpu.memory_space<vmem>>, vector<128x128xbf16>,
    %c15_55 = arith.constant 15 : index
    %c0_56 = arith.constant 0 : index
    %78 = vector.load %arg8[%c15_55, %c0_56] : memref<160x128xbf16, #tpu.memory_space<vmem>>, vector<128x128xbf16>
    %c0_57 = arith.constant 0 : index
    %c384_58 = arith.constant 384 : index
    %79 = vector.load %arg7[%c0_57, %c384_58] : memref<128x1152xbf16, #tpu.memory_space<vmem>>, vector<128x128xbf16>
    tpu.vector_store %arg7[%c0_57, %c384_58], %78 {strides = array<i32>} : memref<128x1152xbf16, #tpu.memory_space<vmem>>, vector<128x128xbf16>,
    %c16_59 = arith.constant 16 : index
    %c0_60 = arith.constant 0 : index
    %80 = vector.load %arg8[%c16_59, %c0_60] : memref<160x128xbf16, #tpu.memory_space<vmem>>, vector<128x128xbf16>
    %c0_61 = arith.constant 0 : index
    %c512_62 = arith.constant 512 : index
    %81 = vector.load %arg7[%c0_61, %c512_62] : memref<128x1152xbf16, #tpu.memory_space<vmem>>, vector<128x128xbf16>
    tpu.vector_store %arg7[%c0_61, %c512_62], %80 {strides = array<i32>} : memref<128x1152xbf16, #tpu.memory_space<vmem>>, vector<128x128xbf16>,
    %c17_63 = arith.constant 17 : index
    %c0_64 = arith.constant 0 : index
    %82 = vector.load %arg8[%c17_63, %c0_64] : memref<160x128xbf16, #tpu.memory_space<vmem>>, vector<128x128xbf16>
    %c0_65 = arith.constant 0 : index
    %c640_66 = arith.constant 640 : index
    %83 = vector.load %arg7[%c0_65, %c640_66] : memref<128x1152xbf16, #tpu.memory_space<vmem>>, vector<128x128xbf16>
    tpu.vector_store %arg7[%c0_65, %c640_66], %82 {strides = array<i32>} : memref<128x1152xbf16, #tpu.memory_space<vmem>>, vector<128x128xbf16>,
    %c26_67 = arith.constant 26 : index
    %c0_68 = arith.constant 0 : index
    %84 = vector.load %arg8[%c26_67, %c0_68] : memref<160x128xbf16, #tpu.memory_space<vmem>>, vector<128x128xbf16>
    %c0_69 = arith.constant 0 : index
    %c768_70 = arith.constant 768 : index
    %85 = vector.load %arg7[%c0_69, %c768_70] : memref<128x1152xbf16, #tpu.memory_space<vmem>>, vector<128x128xbf16>
    tpu.vector_store %arg7[%c0_69, %c768_70], %84 {strides = array<i32>} : memref<128x1152xbf16, #tpu.memory_space<vmem>>, vector<128x128xbf16>,
    %c27_71 = arith.constant 27 : index
    %c0_72 = arith.constant 0 : index
    %86 = vector.load %arg8[%c27_71, %c0_72] : memref<160x128xbf16, #tpu.memory_space<vmem>>, vector<128x128xbf16>
    %c0_73 = arith.constant 0 : index
    %c896_74 = arith.constant 896 : index
    %87 = vector.load %arg7[%c0_73, %c896_74] : memref<128x1152xbf16, #tpu.memory_space<vmem>>, vector<128x128xbf16>
    tpu.vector_store %arg7[%c0_73, %c896_74], %86 {strides = array<i32>} : memref<128x1152xbf16, #tpu.memory_space<vmem>>, vector<128x128xbf16>,
    %c28_75 = arith.constant 28 : index
    %c0_76 = arith.constant 0 : index
    %88 = vector.load %arg8[%c28_75, %c0_76] : memref<160x128xbf16, #tpu.memory_space<vmem>>, vector<128x128xbf16>
    %c0_77 = arith.constant 0 : index
    %c1024_78 = arith.constant 1024 : index
    %89 = vector.load %arg7[%c0_77, %c1024_78] : memref<128x1152xbf16, #tpu.memory_space<vmem>>, vector<128x128xbf16>
    tpu.vector_store %arg7[%c0_77, %c1024_78], %88 {strides = array<i32>} : memref<128x1152xbf16, #tpu.memory_space<vmem>>, vector<128x128xbf16>,
    %c0_79 = arith.constant 0 : index
    %c0_80 = arith.constant 0 : index
    %90 = vector.load %arg7[%c0_79, %c0_80] : memref<128x1152xbf16, #tpu.memory_space<vmem>>, vector<128x1152xbf16>
    %c0_81 = arith.constant 0 : index
    %c0_82 = arith.constant 0 : index
    %91 = vector.load %arg4[%c0_81, %c0_82] : memref<1152x128xbf16, #tpu.memory_space<vmem>>, vector<1152x128xbf16>
    %cst_83 = arith.constant dense<0.000000e+00> : vector<128x128xf32>
    %92 = tpu.matmul %90, %91, %cst_83 {dimension_numbers = #tpu.dot_dimension_numbers<[1], [0], [0], [1], [0, 0, 1, 1], [], []>} : vector<128x1152xbf16>, vector<1152x128xbf16>, vector<128x128xf32> -> vector<128x128xf32>
    %93 = vector.broadcast %0 : vector<128x1xf32> to vector<128x128xf32>
    %94 = arith.mulf %92, %93 : vector<128x128xf32>
    %cst_84 = arith.constant dense<0.000000e+00> : vector<128xf32>
    %95 = vector.multi_reduction <add>, %94, %cst_84 [0] : vector<128x128xf32> to vector<128xf32>
    %96 = vector.shape_cast %95 : vector<128xf32> to vector<1x128xf32>
    %97 = arith.mulf %94, %94 : vector<128x128xf32>
    %cst_85 = arith.constant dense<0.000000e+00> : vector<128xf32>
    %98 = vector.multi_reduction <add>, %97, %cst_85 [0] : vector<128x128xf32> to vector<128xf32>
    %99 = vector.shape_cast %98 : vector<128xf32> to vector<1x128xf32>
    %c64_i32_86 = arith.constant 64 : i32
    %100 = tpu.dynamic_rotate %96 by %c64_i32_86 dim 1 : vector<1x128xf32>, i32 -> vector<1x128xf32>
    %101 = arith.addf %96, %100 : vector<1x128xf32>
    %c64_i32_87 = arith.constant 64 : i32
    %102 = tpu.dynamic_rotate %99 by %c64_i32_87 dim 1 : vector<1x128xf32>, i32 -> vector<1x128xf32>
    %103 = arith.addf %99, %102 : vector<1x128xf32>
    %cst_88 = arith.constant 0.00617283955 : f32
    %104 = vector.broadcast %cst_88 : f32 to vector<1x128xf32>
    %105 = arith.mulf %101, %104 : vector<1x128xf32>
    %cst_89 = arith.constant 0.00617283955 : f32
    %106 = vector.broadcast %cst_89 : f32 to vector<1x128xf32>
    %107 = arith.mulf %103, %106 : vector<1x128xf32>
    %108 = arith.mulf %105, %105 : vector<1x128xf32>
    %109 = arith.subf %107, %108 : vector<1x128xf32>
    %cst_90 = arith.constant 9.99999974E-6 : f32
    %110 = vector.broadcast %cst_90 : f32 to vector<1x128xf32>
    %111 = arith.addf %109, %110 : vector<1x128xf32>
    %112 = math.rsqrt %111 : vector<1x128xf32>
    %113 = arith.mulf %3, %112 : vector<1x128xf32>
    %114 = arith.mulf %105, %113 : vector<1x128xf32>
    %115 = arith.subf %4, %114 : vector<1x128xf32>
    %116 = vector.broadcast %113 : vector<1x128xf32> to vector<128x128xf32>
    %117 = arith.mulf %94, %116 : vector<128x128xf32>
    %118 = vector.broadcast %115 : vector<1x128xf32> to vector<128x128xf32>
    %119 = arith.addf %117, %118 : vector<128x128xf32>
    %c16_91 = arith.constant 16 : index
    %c0_92 = arith.constant 0 : index
    %120 = vector.load %arg1[%c16_91, %c0_92] : memref<160x128xf32, #tpu.memory_space<vmem>>, vector<128x128xf32>
    %121 = arith.addf %119, %120 : vector<128x128xf32>
    %cst_93 = arith.constant 0.000000e+00 : f32
    %122 = vector.broadcast %cst_93 : f32 to vector<128x128xf32>
    %123 = arith.maximumf %121, %122 : vector<128x128xf32>
    %c0_94 = arith.constant 0 : index
    %c0_95 = arith.constant 0 : index
    %124 = vector.load %arg6[%c0_94, %c0_95] : memref<128x128xf32, #tpu.memory_space<vmem>>, vector<128x128xf32>
    tpu.vector_store %arg6[%c0_94, %c0_95], %123 {strides = array<i32>} : memref<128x128xf32, #tpu.memory_space<vmem>>, vector<128x128xf32>,
    return
  }
  func.func @transform_0(%arg0: i32) -> (i32, i32) {
    %c0_i32 = arith.constant 0 : i32
    %c0_i32_0 = arith.constant 0 : i32
    %c0_i32_1 = arith.constant 0 : i32
    return %c0_i32, %c0_i32_0 : i32, i32
  }
  func.func @transform_1(%arg0: i32) -> (i32, i32) {
    %c0_i32 = arith.constant 0 : i32
    %c0_i32_0 = arith.constant 0 : i32
    %c0_i32_1 = arith.constant 0 : i32
    return %c0_i32, %c0_i32_0 : i32, i32
  }
  func.func @transform_2(%arg0: i32) -> (i32, i32) {
    %c0_i32 = arith.constant 0 : i32
    %c0_i32_0 = arith.constant 0 : i32
    %c0_i32_1 = arith.constant 0 : i32
    return %c0_i32, %c0_i32_0 : i32, i32
  }
  func.func @transform_3(%arg0: i32) -> (i32, i32) {
    %c0_i32 = arith.constant 0 : i32
    %c0_i32_0 = arith.constant 0 : i32
    %c0_i32_1 = arith.constant 0 : i32
    return %c0_i32, %c0_i32_0 : i32, i32
  }
  func.func @transform_4(%arg0: i32) -> (i32, i32) {
    %c0_i32 = arith.constant 0 : i32
    %c0_i32_0 = arith.constant 0 : i32
    %c0_i32_1 = arith.constant 0 : i32
    return %c0_i32, %c0_i32_0 : i32, i32
  }
  func.func @transform_5(%arg0: i32) -> (i32, i32) {
    %c0_i32 = arith.constant 0 : i32
    %c0_i32_0 = arith.constant 0 : i32
    %c0_i32_1 = arith.constant 0 : i32
    return %c0_i32, %c0_i32_0 : i32, i32
  }
}

</mosaic_0001>

<bundles_post_ra>
// kernel: resblock_forward.1
= control target key start
LH: loop header
LB: loop body
LE: loop exit
PB: predicated region body
PF: predicated region fallthrough
CT: control target
= control target key end

     0   :  { %v7411_v1 = vmov 0   ;;  %vm2773_vm0 = vcmask 1041408   ;;  %vm2774_vm1 = vcmask 1045508   ;;  %vm2874_vm2 = vsmask.f32 1280  ;;  %s9596_s2 = inlined_call_operand.vmem [shape: bf16[1152,128], index: 2, kind: input, shape index: {}]   ;;  %s9597_s0 = inlined_call_operand.vmem [shape: f32[160,128], index: 0, kind: input, shape index: {}]   ;;  %s9598_s1 = inlined_call_operand.vmem [shape: f32[128,1], index: 1, kind: input, shape index: {}]   ;;  %s9599_s3 = inlined_call_operand.vmem [shape: bf16[1152,128], index: 3, kind: input, shape index: {}]   ;;  %s9600_s4 = inlined_call_operand.vmem [shape: f32[4,128], index: 4, kind: input, shape index: {}]   ;;  %s9601_s5 = inlined_call_operand.vmem [shape: f32[128,128], index: 5, kind: output, shape index: {}]  }
   0x1   :  { %v7075_v0 = vld [vmem:[%s9596_s2 + $0x78] sm:$0xff]   ;;  %2655 = vst [vmem:[#allocation3] sm:$0xf] %v7411_v1  ;;  %2656 = vst [vmem:[#allocation3 + $0x4] sm:$0xf] %v7411_v1  ;;  %7073 = vset.pattern.permute.xlu0 %v7411_v1  ;;  %7074 = vset.pattern.permute.xlu1 %v7411_v1  ;;  %v7079_v5 = vld [vmem:[%s9596_s2 + $0x70] sm:$0xff]  }
   0x2   :  { %2657 = vst [vmem:[#allocation3 + $0x48] sm:$0xf] %v7411_v1  ;;  %2658 = vst [vmem:[#allocation3 + $0x4c] sm:$0xf] %v7411_v1  ;;  %v7076_v2 = vld [vmem:[%s9596_s2 + $0xf8] sm:$0xff]   ;;  %6463 = vmatprep.subr.bf16.mxu0 %v7075_v0  ;;  %v7080_v6 = vld [vmem:[%s9596_s2 + $0xf0] sm:$0xff]  }
   0x3   :  { %v7077_v3 = vld [vmem:[%s9596_s2 + $0x38] sm:$0xff]   ;;  %6527 = vmatprep.subr.bf16.mxu1 %v7076_v2  ;;  %v7081_v7 = vld [vmem:[%s9596_s2 + $0x30] sm:$0xff]   ;;  %v7083_v9 = vld [vmem:[%s9596_s2 + $0x68] sm:$0xff]   ;;  %vm3111_vm3 = vcmask 1040384   ;;  %vm3112_vm4 = vcmask 1044484   ;;  %v9638_v51 = vmov 0 }
   0x4   :  { %v7078_v4 = vld [vmem:[%s9596_s2 + $0xb8] sm:$0xff]   ;;  %6464 = vmatpush3.bf16.msra.mxu0 %v7077_v3  ;;  %v7082_v8 = vld [vmem:[%s9596_s2 + $0xb0] sm:$0xff]   ;;  %v7084_v10 = vld [vmem:[%s9596_s2 + $0xe8] sm:$0xff]   ;;  %vm2875_vm5 = vsmask.f32 5392  ;;  %v9641_v58 = vmov 0 }
   0x5   :  { %6528 = vmatpush3.bf16.msra.mxu1 %v7078_v4  ;;  %6465 = vmatprep.subr.bf16.mxu0 %v7079_v5  ;;  %v7085_v11 = vld [vmem:[%s9596_s2 + $0x28] sm:$0xff]   ;;  %v7087_v13 = vld [vmem:[%s9596_s2 + $0x60] sm:$0xff]   ;;  %v7091_v17 = vld [vmem:[%s9596_s2 + $0x58] sm:$0xff]   ;;  %vm3677_vm9 = vcmask 1042432   ;;  %vm3678_vm10 = vcmask 1046532  }
   0x6   :  { %6529 = vmatprep.subr.bf16.mxu1 %v7080_v6  ;;  %v7086_v12 = vld [vmem:[%s9596_s2 + $0xa8] sm:$0xff]   ;;  %v7088_v14 = vld [vmem:[%s9596_s2 + $0xe0] sm:$0xff]   ;;  %v7092_v18 = vld [vmem:[%s9596_s2 + $0xd8] sm:$0xff]   ;;  %v9645_v6 = vmov 0  ;;  %vm3778_vm11 = vsmask.f32 2304 }
   0x7   :  { %v7089_v15 = vld [vmem:[%s9596_s2 + $0x20] sm:$0xff]   ;;  %v7093_v19 = vld [vmem:[%s9596_s2 + $0x18] sm:$0xff]   ;;  %v7095_v21 = vld [vmem:[%s9596_s2 + $0x50] sm:$0xff]   ;;  %vm3779_vm12 = vsmask.f32 6416 }
   0x8   :  { %6466 = vmatpush3.bf16.msra.mxu0 %v7081_v7  ;;  %v7090_v16 = vld [vmem:[%s9596_s2 + $0xa0] sm:$0xff]   ;;  %v7094_v20 = vld [vmem:[%s9596_s2 + $0x98] sm:$0xff]   ;;  %v7096_v22 = vld [vmem:[%s9596_s2 + $0xd0] sm:$0xff]   ;;  %vm3212_vm15 = vsmask.f32 256 }
   0x9   :  { %6530 = vmatpush3.bf16.msra.mxu1 %v7082_v8  ;;  %6467 = vmatprep.subr.bf16.mxu0 %v7083_v9  ;;  %v7097_v23 = vld [vmem:[%s9596_s2 + $0x10] sm:$0xff]   ;;  %v7099_v25 = vld [vmem:[%s9596_s2 + $0x48] sm:$0xff]   ;;  %v7103_v29 = vld [vmem:[%s9596_s2 + $0x40] sm:$0xff]  }
   0xa   :  { %6531 = vmatprep.subr.bf16.mxu1 %v7084_v10  ;;  %v7098_v24 = vld [vmem:[%s9596_s2 + $0x90] sm:$0xff]   ;;  %v7100_v26 = vld [vmem:[%s9596_s2 + $0xc8] sm:$0xff]   ;;  %v7104_v30 = vld [vmem:[%s9596_s2 + $0xc0] sm:$0xff]  }
   0xb   :  { %v7101_v27 = vld [vmem:[%s9596_s2 + $0x8] sm:$0xff]   ;;  %v7105_v31 = vld [vmem:[%s9596_s2] sm:$0xff]   ;;  %vm7561_vm6 = vmor %vm2773_vm0, %vm2774_vm1  ;;  %vm3213_vm0 = vsmask.f32 4368 }
   0xc   :  { %6468 = vmatpush3.bf16.msra.mxu0 %v7085_v11  ;;  %v7102_v28 = vld [vmem:[%s9596_s2 + $0x88] sm:$0xff]   ;;  %v7106_v32 = vld [vmem:[%s9596_s2 + $0x80] sm:$0xff]   ;;  %v9639_v51 = vsel %vm7561_vm6, 4294967295, %v9638_v51  ;;  %v330_v57 = vld [vmem:[%s9597_s0 + $0x17] sm:$0xff] }
   0xd   :  { %6532 = vmatpush3.bf16.msra.mxu1 %v7086_v12  ;;  %6469 = vmatprep.subr.bf16.mxu0 %v7087_v13  ;;  %v41_v33 = vld [vmem:[%s9597_s0 + $0x4] sm:$0xff]  ;;  %v42_v34 = vld [vmem:[%s9597_s0 + $0xc] sm:$0xff]  ;;  %v2739_v40 = vld [vmem:[#allocation3] sm:$0xc]  ;;  %9640 = vst [vmem:[#allocation5_spill] sm:$0xff] %v9639_v51  ;;  %v6304_v1 = vpack.c.bf16 %v330_v57, %v330_v57 }
   0xe   :  { %6533 = vmatprep.subr.bf16.mxu1 %v7088_v14  ;;  %v137_v35 = vld [vmem:[%s9597_s0 + $0x5] sm:$0xff]  ;;  %v6255_v36 = vpack.c.bf16 %v41_v33, %v41_v33  ;;  %v6256_v37 = vpack.c.bf16 %v42_v34, %v42_v34  ;;  %v138_v38 = vld [vmem:[%s9597_s0 + $0xd] sm:$0xff]  ;;  %v2857_v43 = vld [vmem:[#allocation3] sm:$0xc]  ;;  %v6106_v52 = vrot.slane %v2739_v40, 10 }
   0xf   :  { %v6271_v39 = vpack.c.bf16 %v137_v35, %v137_v35  ;;  %v7551_v41 = vld [vmem:[#allocation3 + $0x4] sm:$0xf]  ;;  %v6272_v42 = vpack.c.bf16 %v138_v38, %v138_v38  ;;  %v2878_v45 = vshrl.u32 %v2857_v43, 16  ;;  %v2881_v46 = vshll.u32 %v2857_v43, 16  ;;  %v234_v50 = vld [vmem:[%s9597_s0 + $0xe] sm:$0xff]  ;;  %vm7574_vm7 = vmor %vm2874_vm2, %vm2875_vm5 }
  0x10   :  { %6470 = vmatpush3.bf16.msra.mxu0 %v7089_v15  ;;  %9637 = vst [vmem:[#allocation4_spill] sm:$0xff] %v7551_v41  ;;  %v2858_v44 = vld [vmem:[#allocation3 + $0x4] sm:$0xf]  ;;  %121 = vst [vmem:[#allocation2] sm:$0xf] %v6255_v36  ;;  %v9605_v53 = vrot.slane %v7551_v41, 6  ;;  %v6288_v55 = vpack.c.bf16 %v234_v50, %v234_v50 }
  0x11   :  { %6534 = vmatpush3.bf16.msra.mxu1 %v7090_v16  ;;  %6471 = vmatprep.subr.bf16.mxu0 %v7091_v17  ;;  %122 = vst [vmem:[#allocation2 + $0x24] sm:$0xf] %v6256_v37  ;;  %217 = vst [vmem:[#allocation2 + $0x4] sm:$0xf] %v6271_v39  ;;  %v2887_v47 = vshrl.u32 %v2858_v44, 16  ;;  %v2890_v48 = vshll.u32 %v2858_v44, 16 }
  0x12   :  { %6535 = vmatprep.subr.bf16.mxu1 %v7092_v18  ;;  %v233_v49 = vld [vmem:[%s9597_s0 + $0x6] sm:$0xff]  ;;  %218 = vst [vmem:[#allocation2 + $0x28] sm:$0xf] %v6272_v42  ;;  %v329_v56 = vld [vmem:[%s9597_s0 + $0xf] sm:$0xff]  ;;  %v9642_v58 = vsel %vm7574_vm7, 4294967295, %v9641_v58  ;;  %v2880_v59 = vrot.slane %v2878_v45, 6  ;;  %v2779_v5 = vsel %vm7561_vm6, %v6106_v52, %v9605_v53  ;;  %vm7589_vm8 = vmor %vm3111_vm3, %vm3112_vm4 }
  0x13   :  { %v6287_v54 = vpack.c.bf16 %v233_v49, %v233_v49  ;;  %9643 = vst [vmem:[#allocation6_spill] sm:$0xff] %v9642_v58  ;;  %v2883_v60 = vrot.slane %v2881_v46, 7  ;;  %v2889_v61 = vrot.slane %v2887_v47, 6  ;;  %v2892_v62 = vrot.slane %v2890_v48, 7  ;;  %v3077_v63 = vld [vmem:[#allocation3] sm:$0x8]  ;;  %vm8097_vm13 = vmor %vm3677_vm9, %vm3678_vm10 }
  0x14   :  { %6472 = vmatpush3.bf16.msra.mxu0 %v7093_v19  ;;  %314 = vst [vmem:[#allocation2 + $0x2c] sm:$0xf] %v6288_v55  ;;  %v6303_v0 = vpack.c.bf16 %v329_v56, %v329_v56  ;;  %v7578_v2 = vld [vmem:[#allocation3 + $0x4] sm:$0xf]  ;;  %v7111_v4 = vld [vmem:[%s9596_s2 + $0x178] sm:$0xff]   ;;  %v9646_v6 = vsel %vm7589_vm8, 4294967295, %v9645_v6  ;;  %vm8103_vm14 = vmor %vm3778_vm11, %vm3779_vm12 }
  0x15   :  { %6536 = vmatpush3.bf16.msra.mxu1 %v7094_v20  ;;  %6473 = vmatprep.subr.bf16.mxu0 %v7095_v21  ;;  %313 = vst [vmem:[#allocation2 + $0x8] sm:$0xf] %v6287_v54  ;;  %9644 = vst [vmem:[#allocation7_spill] sm:$0xff] %v7578_v2  ;;  %v2884_v3 = vor.u32 %v2883_v60, %v2880_v59  ;;  %v6107_v7 = vrot.slane %v3077_v63, 11  ;;  %v43_v8 = vld [vmem:[%s9597_s0 + $0x14] sm:$0xff]  ;;  %v44_v9 = vld [vmem:[%s9597_s0 + $0x1c] sm:$0xff]  ;;  %v7599_v11 = vor.u32 %v2892_v62, %v2889_v61 }
  0x16   :  { %6537 = vmatprep.subr.bf16.mxu1 %v7096_v22  ;;  %409 = vst [vmem:[#allocation2 + $0xc] sm:$0xf] %v6303_v0  ;;  %410 = vst [vmem:[#allocation2 + $0x30] sm:$0xf] %v6304_v1  ;;  %v7112_v12 = vld [vmem:[%s9596_s2 + $0x138] sm:$0xff]   ;;  %v6257_v13 = vpack.c.bf16 %v43_v8, %v43_v8  ;;  %v6258_v14 = vpack.c.bf16 %v44_v9, %v44_v9  ;;  %v7118_v33 = vld [vmem:[%s9596_s2 + $0x170] sm:$0xff]  }
  0x17   :  { %9647 = vst [vmem:[#allocation8_spill] sm:$0xff] %v9646_v6  ;;  %v2885_v10 = vrot.slane %v2884_v3, 4  ;;  %9648 = vst [vmem:[#allocation9_spill] sm:$0xff] %v7599_v11  ;;  %v139_v15 = vld [vmem:[%s9597_s0 + $0x15] sm:$0xff]  ;;  %v140_v16 = vld [vmem:[%s9597_s0 + $0x1d] sm:$0xff] }
  0x18   :  { %6474 = vmatpush3.bf16.msra.mxu0 %v7097_v23  ;;  %v235_v17 = vld [vmem:[%s9597_s0 + $0x16] sm:$0xff]  ;;  %v905_v18 = vld [vmem:[#allocation2] sm:$0xff]  ;;  %v6273_v19 = vpack.c.bf16 %v139_v15, %v139_v15  ;;  %v6274_v20 = vpack.c.bf16 %v140_v16, %v140_v16  ;;  %123 = vst [vmem:[#allocation2 + $0x48] sm:$0xf] %v6257_v13  ;;  %124 = vst [vmem:[#allocation2 + $0x6c] sm:$0xf] %v6258_v14 }
  0x19   :  { %6538 = vmatpush3.bf16.msra.mxu1 %v7098_v24  ;;  %6475 = vmatprep.subr.bf16.mxu0 %v7099_v25  ;;  %v236_v21 = vld [vmem:[%s9597_s0 + $0x1e] sm:$0xff]  ;;  %v6289_v22 = vpack.c.bf16 %v235_v17, %v235_v17  ;;  %2841 = vst [vmem:[#allocation2] sm:$0xf] %v2779_v5  ;;  %v7119_v35 = vld [vmem:[%s9596_s2 + $0x130] sm:$0xff]   ;;  %v237_v48 = vld [vmem:[%s9597_s0 + $0x26] sm:$0xff] }
  0x1a   :  { %6539 = vmatprep.subr.bf16.mxu1 %v7100_v26  ;;  %v331_v23 = vld [vmem:[%s9597_s0 + $0x1f] sm:$0xff]  ;;  %v2894_v26 = vsel %vm7574_vm7, %v2885_v10, %v7599_v11  ;;  %219 = vst [vmem:[#allocation2 + $0x4c] sm:$0xf] %v6273_v19  ;;  %220 = vst [vmem:[#allocation2 + $0x70] sm:$0xf] %v6274_v20  ;;  %v46_v37 = vld [vmem:[%s9597_s0 + $0x2c] sm:$0xff]  ;;  %v6291_v52 = vpack.c.bf16 %v237_v48, %v237_v48 }
  0x1b   :  { %v910_v24 = vld [vmem:[#allocation2 + $0x24] sm:$0xff]  ;;  %315 = vst [vmem:[#allocation2 + $0x50] sm:$0xf] %v6289_v22  ;;  %v6260_v44 = vpack.c.bf16 %v46_v37, %v46_v37  ;;  %v142_v47 = vld [vmem:[%s9597_s0 + $0x2d] sm:$0xff]  ;;  %v334_v56 = vld [vmem:[%s9597_s0 + $0x37] sm:$0xff] }
  0x1c   :  { %6476 = vmatpush3.bf16.msra.mxu0 %v7101_v27  ;;  %v7107_v25 = vld [vmem:[#allocation2 + $0x4] ss:$36 sps:$4 sm:$0xff]   ;;  %v9604_v27 = vrot.slane %v7578_v2, 7  ;;  %v238_v49 = vld [vmem:[%s9597_s0 + $0x2e] sm:$0xff]  ;;  %v6276_v50 = vpack.c.bf16 %v142_v47, %v142_v47  ;;  %v6308_v59 = vpack.c.bf16 %v334_v56, %v334_v56  ;;  %317 = vst [vmem:[#allocation2 + $0x98] sm:$0xf] %v6291_v52  ;;  %vm8679_vm1 = vmor %vm3212_vm15, %vm3213_vm0 }
  0x1d   :  { %6540 = vmatpush3.bf16.msra.mxu1 %v7102_v28  ;;  %6477 = vmatprep.subr.bf16.mxu0 %v7103_v29  ;;  %v6290_v28 = vpack.c.bf16 %v236_v21, %v236_v21  ;;  %v332_v29 = vld [vmem:[%s9597_s0 + $0x27] sm:$0xff]  ;;  %3061 = vst [vmem:[#allocation2 + $0x4] sm:$0xf] %v2894_v26  ;;  %126 = vst [vmem:[#allocation2 + $0xb4] sm:$0xf] %v6260_v44  ;;  %v6292_v54 = vpack.c.bf16 %v238_v49, %v238_v49  ;;  %v333_v55 = vld [vmem:[%s9597_s0 + $0x2f] sm:$0xff] }
  0x1e   :  { %6541 = vmatprep.subr.bf16.mxu1 %v7104_v30  ;;  %v6305_v30 = vpack.c.bf16 %v331_v23, %v331_v23  ;;  %1961 = vmatprep.mubr.bf16.mxu0 %v7107_v25  ;;  %v3117_v34 = vsel %vm7589_vm8, %v6107_v7, %v9604_v27  ;;  %v45_v36 = vld [vmem:[%s9597_s0 + $0x24] sm:$0xff]  ;;  %v911_v40 = vld [vmem:[#allocation2 + $0x2c] sm:$0xff]  ;;  %v6307_v57 = vpack.c.bf16 %v333_v55, %v333_v55  ;;  %v47_v5 = vld [vmem:[%s9597_s0 + $0x34] sm:$0xff]  ;;  %vm3444_vm2 = vsmask.f32 3328 }
  0x1f   :  { %316 = vst [vmem:[#allocation2 + $0x74] sm:$0xf] %v6290_v28  ;;  %v141_v38 = vld [vmem:[%s9597_s0 + $0x25] sm:$0xff]  ;;  %v6259_v43 = vpack.c.bf16 %v45_v36, %v45_v36  ;;  %222 = vst [vmem:[#allocation2 + $0xb8] sm:$0xf] %v6276_v50  ;;  %v48_v7 = vld [vmem:[%s9597_s0 + $0x3c] sm:$0xff]  ;;  %v6261_v9 = vpack.c.bf16 %v47_v5, %v47_v5 }
  0x20   :  { %6478 = vmatpush3.bf16.msra.mxu0 %v7105_v31  ;;  %v5946_v31 = vcombine.low %v905_v18, %v910_v24  ;;  %411 = vst [vmem:[#allocation2 + $0x54] sm:$0xf] %v6305_v30  ;;  %v906_v39 = vld [vmem:[#allocation2 + $0x8] sm:$0xff]  ;;  %v6275_v45 = vpack.c.bf16 %v141_v38, %v141_v38  ;;  %318 = vst [vmem:[#allocation2 + $0xbc] sm:$0xf] %v6292_v54  ;;  %v143_v8 = vld [vmem:[%s9597_s0 + $0x35] sm:$0xff]  ;;  %v6262_v10 = vpack.c.bf16 %v48_v7, %v48_v7 }
  0x21   :  { %6542 = vmatpush3.bf16.msra.mxu1 %v7106_v32  ;;  %6591 = vmatprep.subr.bf16.mxu0 %v7111_v4  ;;  %v6306_v32 = vpack.c.bf16 %v332_v29, %v332_v29  ;;  %v7109_v42 = vld [vmem:[#allocation2 + $0xc] ss:$36 sps:$4 sm:$0xff]   ;;  %3179 = vst [vmem:[#allocation2 + $0x8] sm:$0xf] %v3117_v34  ;;  %v5948_v46 = vcombine.low %v906_v39, %v911_v40  ;;  %125 = vst [vmem:[#allocation2 + $0x90] sm:$0xf] %v6259_v43 }
  0x22   :  { %2058 = vmatprep.mubr.bf16.mxu1 %v7109_v42  ;;  %221 = vst [vmem:[#allocation2 + $0x94] sm:$0xf] %v6275_v45  ;;  %v7125_v60 = vld [vmem:[%s9596_s2 + $0x168] sm:$0xff]   ;;  %413 = vst [vmem:[#allocation2 + $0x9c] sm:$0xf] %v6307_v57  ;;  %v6277_v13 = vpack.c.bf16 %v143_v8, %v143_v8  ;;  %v239_v14 = vld [vmem:[%s9597_s0 + $0x36] sm:$0xff] }
  0x23   :  { %1962 = vmatmul.mubr.bf16.vlgmr.msra.gmra.mxu0 %v5946_v31  ;;  %412 = vst [vmem:[#allocation2 + $0x78] sm:$0xf] %v6306_v32  ;;  %v915_v61 = vld [vmem:[#allocation2 + $0x48] sm:$0xff]  ;;  %414 = vst [vmem:[#allocation2 + $0xc0] sm:$0xf] %v6308_v59  ;;  %v240_v15 = vld [vmem:[%s9597_s0 + $0x3e] sm:$0xff]  ;;  %v6293_v18 = vpack.c.bf16 %v239_v14, %v239_v14 }
  0x24   :  { %6592 = vmatpush3.bf16.msra.mxu0 %v7112_v12  ;;  %2059 = vmatmul.mubr.bf16.vlgmr.msra.gmra.mxu1 %v5948_v46  ;;  %v920_v62 = vld [vmem:[#allocation2 + $0x6c] sm:$0xff]  ;;  %v144_v12 = vld [vmem:[%s9597_s0 + $0x3d] sm:$0xff]  ;;  %v6294_v19 = vpack.c.bf16 %v240_v15, %v240_v15  ;;  %127 = vst [vmem:[#allocation2 + $0xd8] sm:$0xf] %v6261_v9  ;;  %128 = vst [vmem:[#allocation2 + $0xfc] sm:$0xf] %v6262_v10 }
  0x25   :  { %6593 = vmatprep.subr.bf16.mxu0 %v7118_v33  ;;  %v7113_v63 = vld [vmem:[#allocation2 + $0x4c] ss:$36 sps:$4 sm:$0xff]   ;;  %v5955_v0 = vcombine.low %v915_v61, %v920_v62  ;;  %v6278_v17 = vpack.c.bf16 %v144_v12, %v144_v12  ;;  %v335_v20 = vld [vmem:[%s9597_s0 + $0x3f] sm:$0xff]  ;;  %223 = vst [vmem:[#allocation2 + $0xdc] sm:$0xf] %v6277_v13  ;;  %v338_v46 = vld [vmem:[%s9597_s0 + $0x57] sm:$0xff] }
  0x26   :  { %v7126_v1 = vld [vmem:[%s9596_s2 + $0x128] sm:$0xff]   ;;  %1969 = vmatprep.mubr.bf16.mxu0 %v7113_v63  ;;  %v7117_v4 = vld [vmem:[#allocation2 + $0x50] ss:$36 sps:$4 sm:$0xff]   ;;  %v6309_v22 = vpack.c.bf16 %v335_v20, %v335_v20  ;;  %v7132_v24 = vld [vmem:[%s9596_s2 + $0x160] sm:$0xff]   ;;  %319 = vst [vmem:[#allocation2 + $0xe0] sm:$0xf] %v6293_v18  ;;  %v6312_v49 = vpack.c.bf16 %v338_v46, %v338_v46 }
  0x27   :  { %v336_v21 = vld [vmem:[%s9597_s0 + $0x47] sm:$0xff]  ;;  %v930_v25 = vld [vmem:[#allocation2 + $0xb4] sm:$0xff]  ;;  %224 = vst [vmem:[#allocation2 + $0x100] sm:$0xf] %v6278_v17  ;;  %320 = vst [vmem:[#allocation2 + $0x104] sm:$0xf] %v6294_v19 }
  0x28   :  { %6594 = vmatpush3.bf16.msra.mxu0 %v7119_v35  ;;  %v6310_v23 = vpack.c.bf16 %v336_v21, %v336_v21  ;;  %415 = vst [vmem:[#allocation2 + $0xe4] sm:$0xf] %v6309_v22  ;;  %v7124_v30 = vld [vmem:[#allocation2 + $0x98] ss:$36 sps:$4 sm:$0xff]   ;;  %v7133_v31 = vld [vmem:[%s9596_s2 + $0x120] sm:$0xff]   ;;  %v50_v33 = vld [vmem:[%s9597_s0 + $0x4c] sm:$0xff] }
  0x29   :  { %6595 = vmatprep.subr.bf16.mxu0 %v7125_v60  ;;  %v925_v16 = vld [vmem:[#allocation2 + $0x90] sm:$0xff]  ;;  %v49_v32 = vld [vmem:[%s9597_s0 + $0x44] sm:$0xff]  ;;  %v6264_v36 = vpack.c.bf16 %v50_v33, %v50_v33  ;;  %v7139_v50 = vld [vmem:[%s9596_s2 + $0x158] sm:$0xff]   ;;  %418 = vst [vmem:[#allocation2 + $0x150] sm:$0xf] %v6312_v49 }
  0x2a   :  { %v7115_v3 = vld [vmem:[#allocation2 + $0x54] ss:$36 sps:$4 sm:$0xff]   ;;  %v7122_v28 = vld [vmem:[#allocation2 + $0x9c] ss:$36 sps:$4 sm:$0xff]   ;;  %v5964_v29 = vcombine.low %v925_v16, %v930_v25  ;;  %416 = vst [vmem:[#allocation2 + $0x108] sm:$0xf] %v6310_v23  ;;  %v6263_v35 = vpack.c.bf16 %v49_v32, %v49_v32 }
  0x2b   :  { %1970 = vmatmul.mubr.bf16.gmra.mxu0 %v5955_v0  ;;  %2066 = vmatprep.mubr.bf16.mxu1 %v7115_v3  ;;  %v7120_v26 = vld [vmem:[#allocation2 + $0x94] ss:$36 sps:$4 sm:$0xff]   ;;  %v145_v34 = vld [vmem:[%s9597_s0 + $0x45] sm:$0xff]  ;;  %130 = vst [vmem:[#allocation2 + $0x144] sm:$0xf] %v6264_v36  ;;  %v148_v13 = vld [vmem:[%s9597_s0 + $0x5d] sm:$0xff] }
  0x2c   :  { %6596 = vmatpush3.bf16.msra.mxu0 %v7126_v1  ;;  %2067 = vmatmul.mubr.bf16.gmra.mxu1 %v7117_v4  ;;  %v146_v37 = vld [vmem:[%s9597_s0 + $0x4d] sm:$0xff]  ;;  %v6279_v38 = vpack.c.bf16 %v145_v34, %v145_v34  ;;  %v935_v47 = vld [vmem:[#allocation2 + $0xd8] sm:$0xff]  ;;  %129 = vst [vmem:[#allocation2 + $0x120] sm:$0xf] %v6263_v35  ;;  %v6282_v15 = vpack.c.bf16 %v148_v13, %v148_v13  ;;  %v53_v32 = vld [vmem:[%s9597_s0 + $0x64] sm:$0xff] }
  0x2d   :  { %6597 = vmatprep.subr.bf16.mxu0 %v7132_v24  ;;  %1977 = vmatprep.mubr.bf16.mxu0 %v7120_v26  ;;  %v241_v39 = vld [vmem:[%s9597_s0 + $0x46] sm:$0xff]  ;;  %v242_v40 = vld [vmem:[%s9597_s0 + $0x4e] sm:$0xff]  ;;  %v6280_v42 = vpack.c.bf16 %v146_v37, %v146_v37  ;;  %v7140_v57 = vld [vmem:[%s9596_s2 + $0x1f8] sm:$0xff]   ;;  %v6267_v34 = vpack.c.bf16 %v53_v32, %v53_v32  ;;  %vm3445_vm3 = vsmask.f32 7440 }
  0x2e   :  { %2074 = vmatprep.mubr.bf16.mxu1 %v7122_v28  ;;  %v6295_v43 = vpack.c.bf16 %v241_v39, %v241_v39  ;;  %v6296_v44 = vpack.c.bf16 %v242_v40, %v242_v40  ;;  %v337_v45 = vld [vmem:[%s9597_s0 + $0x4f] sm:$0xff]  ;;  %225 = vst [vmem:[#allocation2 + $0x124] sm:$0xf] %v6279_v38  ;;  %v940_v52 = vld [vmem:[#allocation2 + $0xfc] sm:$0xff]  ;;  %6655 = vmatprep.subr.bf16.mxu1 %v7140_v57  ;;  %v340_v19 = vld [vmem:[%s9597_s0 + $0x67] sm:$0xff] }
  0x2f   :  { %v6311_v48 = vpack.c.bf16 %v337_v45, %v337_v45  ;;  %v7127_v54 = vld [vmem:[#allocation2 + $0xdc] ss:$36 sps:$4 sm:$0xff]   ;;  %226 = vst [vmem:[#allocation2 + $0x148] sm:$0xf] %v6280_v42  ;;  %v5973_v56 = vcombine.low %v935_v47, %v940_v52  ;;  %v7143_v62 = vld [vmem:[%s9596_s2 + $0x1f0] sm:$0xff]   ;;  %v6314_v23 = vpack.c.bf16 %v340_v19, %v340_v19  ;;  %v7152_v28 = vld [vmem:[%s9596_s2 + $0x1e8] sm:$0xff]  }
  0x30   :  { %6598 = vmatpush3.bf16.msra.mxu0 %v7133_v31  ;;  %321 = vst [vmem:[#allocation2 + $0x128] sm:$0xf] %v6295_v43  ;;  %322 = vst [vmem:[#allocation2 + $0x14c] sm:$0xf] %v6296_v44  ;;  %v7131_v59 = vld [vmem:[#allocation2 + $0xe0] ss:$36 sps:$4 sm:$0xff]  }
  0x31   :  { %v7129_v55 = vld [vmem:[#allocation2 + $0xe4] ss:$36 sps:$4 sm:$0xff]   ;;  %417 = vst [vmem:[#allocation2 + $0x12c] sm:$0xf] %v6311_v48  ;;  %6599 = vmatprep.subr.bf16.mxu0 %v7139_v50  ;;  %v7141_v60 = vld [vmem:[%s9596_s2 + $0x118] sm:$0xff]   ;;  %v7148_v24 = vld [vmem:[%s9596_s2 + $0x1b0] sm:$0xff]  }
  0x32   :  { %v7142_v61 = vld [vmem:[%s9596_s2 + $0x1b8] sm:$0xff]   ;;  %228 = vst [vmem:[#allocation2 + $0x190] sm:$0xf] %v6282_v15  ;;  %v7150_v25 = vld [vmem:[%s9596_s2 + $0x150] sm:$0xff]   ;;  %420 = vst [vmem:[#allocation2 + $0x198] sm:$0xf] %v6314_v23 }
  0x33   :  { %1978 = vmatmul.mubr.bf16.gmra.mxu0 %v5964_v29  ;;  %6656 = vmatpush3.bf16.msra.mxu1 %v7142_v61  ;;  %v51_v0 = vld [vmem:[%s9597_s0 + $0x54] sm:$0xff]  ;;  %v52_v1 = vld [vmem:[%s9597_s0 + $0x5c] sm:$0xff]  ;;  %v7153_v29 = vld [vmem:[%s9596_s2 + $0x1a8] sm:$0xff]   ;;  %133 = vst [vmem:[#allocation2 + $0x1b0] sm:$0xf] %v6267_v34 }
  0x34   :  { %2075 = vmatmul.mubr.bf16.gmra.mxu1 %v7124_v30  ;;  %1985 = vmatprep.mubr.bf16.mxu0 %v7127_v54  ;;  %v6265_v5 = vpack.c.bf16 %v51_v0, %v51_v0  ;;  %v6266_v7 = vpack.c.bf16 %v52_v1, %v52_v1  ;;  %v147_v8 = vld [vmem:[%s9597_s0 + $0x55] sm:$0xff]  ;;  %v244_v16 = vld [vmem:[%s9597_s0 + $0x5e] sm:$0xff]  ;;  %v54_v33 = vld [vmem:[%s9597_s0 + $0x6c] sm:$0xff] }
  0x35   :  { %2082 = vmatprep.mubr.bf16.mxu1 %v7129_v55  ;;  %v945_v63 = vld [vmem:[#allocation2 + $0x120] sm:$0xff]  ;;  %6600 = vmatpush3.bf16.msra.mxu0 %v7141_v60  ;;  %v6281_v10 = vpack.c.bf16 %v147_v8, %v147_v8  ;;  %v243_v14 = vld [vmem:[%s9597_s0 + $0x56] sm:$0xff]  ;;  %v6298_v21 = vpack.c.bf16 %v244_v16, %v244_v16  ;;  %v6268_v35 = vpack.c.bf16 %v54_v33, %v54_v33  ;;  %v150_v37 = vld [vmem:[%s9597_s0 + $0x6d] sm:$0xff] }
  0x36   :  { %v950_v3 = vld [vmem:[#allocation2 + $0x144] sm:$0xff]  ;;  %6657 = vmatprep.subr.bf16.mxu1 %v7143_v62  ;;  %131 = vst [vmem:[#allocation2 + $0x168] sm:$0xf] %v6265_v5  ;;  %132 = vst [vmem:[#allocation2 + $0x18c] sm:$0xf] %v6266_v7  ;;  %v6297_v17 = vpack.c.bf16 %v243_v14, %v243_v14  ;;  %v7151_v26 = vld [vmem:[%s9596_s2 + $0x110] sm:$0xff]   ;;  %6601 = vmatprep.subr.bf16.mxu0 %v7150_v25  ;;  %v6284_v43 = vpack.c.bf16 %v150_v37, %v150_v37 }
  0x37   :  { %v7134_v4 = vld [vmem:[#allocation2 + $0x124] ss:$36 sps:$4 sm:$0xff]   ;;  %v5982_v12 = vcombine.low %v945_v63, %v950_v3  ;;  %227 = vst [vmem:[#allocation2 + $0x16c] sm:$0xf] %v6281_v10  ;;  %324 = vst [vmem:[#allocation2 + $0x194] sm:$0xf] %v6298_v21  ;;  %6658 = vmatpush3.bf16.msra.mxu1 %v7148_v24 }
  0x38   :  { %v7136_v9 = vld [vmem:[#allocation2 + $0x12c] ss:$36 sps:$4 sm:$0xff]   ;;  %v339_v18 = vld [vmem:[%s9597_s0 + $0x5f] sm:$0xff]  ;;  %323 = vst [vmem:[#allocation2 + $0x170] sm:$0xf] %v6297_v17  ;;  %6659 = vmatprep.subr.bf16.mxu1 %v7152_v28  ;;  %v342_v52 = vld [vmem:[%s9597_s0 + $0x77] sm:$0xff] }
  0x39   :  { %v7138_v20 = vld [vmem:[#allocation2 + $0x128] ss:$36 sps:$4 sm:$0xff]   ;;  %v6313_v22 = vpack.c.bf16 %v339_v18, %v339_v18  ;;  %6602 = vmatpush3.bf16.msra.mxu0 %v7151_v26  ;;  %v7154_v30 = vld [vmem:[%s9596_s2 + $0x1e0] sm:$0xff]   ;;  %134 = vst [vmem:[#allocation2 + $0x1d4] sm:$0xf] %v6268_v35  ;;  %v6316_v55 = vpack.c.bf16 %v342_v52, %v342_v52  ;;  %v7163_v60 = vld [vmem:[%s9596_s2 + $0x1d8] sm:$0xff]  }
  0x3a   :  { %v149_v36 = vld [vmem:[%s9597_s0 + $0x65] sm:$0xff]  ;;  %v246_v44 = vld [vmem:[%s9597_s0 + $0x6e] sm:$0xff]  ;;  %230 = vst [vmem:[#allocation2 + $0x1d8] sm:$0xf] %v6284_v43  ;;  %v7164_v61 = vld [vmem:[%s9596_s2 + $0x198] sm:$0xff]  }
  0x3b   :  { %1986 = vmatmul.mubr.bf16.gmra.mxu0 %v5973_v56  ;;  %419 = vst [vmem:[#allocation2 + $0x174] sm:$0xf] %v6313_v22  ;;  %6660 = vmatpush3.bf16.msra.mxu1 %v7153_v29  ;;  %v245_v38 = vld [vmem:[%s9597_s0 + $0x66] sm:$0xff]  ;;  %v6283_v42 = vpack.c.bf16 %v149_v36, %v149_v36  ;;  %v6300_v48 = vpack.c.bf16 %v246_v44, %v246_v44  ;;  %v341_v50 = vld [vmem:[%s9597_s0 + $0x6f] sm:$0xff]  ;;  %422 = vst [vmem:[#allocation2 + $0x1e0] sm:$0xf] %v6316_v55 }
  0x3c   :  { %2083 = vmatmul.mubr.bf16.gmra.mxu1 %v7131_v59  ;;  %1993 = vmatprep.mubr.bf16.mxu0 %v7134_v4  ;;  %v6299_v45 = vpack.c.bf16 %v245_v38, %v245_v38  ;;  %v6315_v54 = vpack.c.bf16 %v341_v50, %v341_v50  ;;  %v7159_v56 = vld [vmem:[%s9596_s2 + $0x1a0] sm:$0xff]   ;;  %v7161_v57 = vld [vmem:[%s9596_s2 + $0x148] sm:$0xff]   ;;  %v7165_v62 = vld [vmem:[%s9596_s2 + $0x1d0] sm:$0xff]  }
  0x3d   :  { %2090 = vmatprep.mubr.bf16.mxu1 %v7136_v9  ;;  %v960_v39 = vld [vmem:[#allocation2 + $0x18c] sm:$0xff]  ;;  %6661 = vmatprep.subr.bf16.mxu1 %v7154_v30  ;;  %229 = vst [vmem:[#allocation2 + $0x1b4] sm:$0xf] %v6283_v42  ;;  %326 = vst [vmem:[#allocation2 + $0x1dc] sm:$0xf] %v6300_v48  ;;  %v55_v4 = vld [vmem:[%s9597_s0 + $0x74] sm:$0xff] }
  0x3e   :  { %v955_v31 = vld [vmem:[#allocation2 + $0x168] sm:$0xff]  ;;  %325 = vst [vmem:[#allocation2 + $0x1b8] sm:$0xf] %v6299_v45  ;;  %421 = vst [vmem:[#allocation2 + $0x1bc] sm:$0xf] %v6315_v54  ;;  %6603 = vmatprep.subr.bf16.mxu0 %v7161_v57  ;;  %v56_v5 = vld [vmem:[%s9597_s0 + $0x7c] sm:$0xff]  ;;  %v6269_v8 = vpack.c.bf16 %v55_v4, %v55_v4 }
  0x3f   :  { %v7144_v40 = vld [vmem:[#allocation2 + $0x16c] ss:$36 sps:$4 sm:$0xff]   ;;  %v5991_v47 = vcombine.low %v955_v31, %v960_v39  ;;  %6662 = vmatpush3.bf16.msra.mxu1 %v7159_v56  ;;  %v151_v7 = vld [vmem:[%s9597_s0 + $0x75] sm:$0xff]  ;;  %v6270_v9 = vpack.c.bf16 %v56_v5, %v56_v5  ;;  %v152_v10 = vld [vmem:[%s9597_s0 + $0x7d] sm:$0xff] }
  0x40   :  { %v7149_v49 = vld [vmem:[#allocation2 + $0x170] ss:$36 sps:$4 sm:$0xff]   ;;  %v7162_v59 = vld [vmem:[%s9596_s2 + $0x108] sm:$0xff]   ;;  %6663 = vmatprep.subr.bf16.mxu1 %v7163_v60  ;;  %v248_v14 = vld [vmem:[%s9597_s0 + $0x7e] sm:$0xff]  ;;  %v6286_v16 = vpack.c.bf16 %v152_v10, %v152_v10  ;;  %135 = vst [vmem:[#allocation2 + $0x1f8] sm:$0xf] %v6269_v8 }
  0x41   :  { %6604 = vmatpush3.bf16.msra.mxu0 %v7162_v59  ;;  %v970_v0 = vld [vmem:[#allocation2 + $0x1d4] sm:$0xff]  ;;  %v6302_v18 = vpack.c.bf16 %v248_v14, %v248_v14  ;;  %136 = vst [vmem:[#allocation2 + $0x21c] sm:$0xf] %v6270_v9  ;;  %v344_v21 = vld [vmem:[%s9597_s0 + $0x87] sm:$0xff]  ;;  %900 = vst [vmem:[#allocation2 + $0x1ac] sm:$0xf] %v6269_v8 }
  0x42   :  { %v7146_v46 = vld [vmem:[#allocation2 + $0x174] ss:$36 sps:$4 sm:$0xff]   ;;  %901 = vst [vmem:[#allocation2 + $0x1d0] sm:$0xf] %v6270_v9  ;;  %232 = vst [vmem:[#allocation2 + $0x220] sm:$0xf] %v6286_v16  ;;  %v6318_v23 = vpack.c.bf16 %v344_v21, %v344_v21 }
  0x43   :  { %1994 = vmatmul.mubr.bf16.gmra.mxu0 %v5982_v12  ;;  %6664 = vmatpush3.bf16.msra.mxu1 %v7164_v61  ;;  %v6285_v12 = vpack.c.bf16 %v151_v7, %v151_v7  ;;  %v247_v13 = vld [vmem:[%s9597_s0 + $0x76] sm:$0xff]  ;;  %328 = vst [vmem:[#allocation2 + $0x224] sm:$0xf] %v6302_v18  ;;  %v7172_v25 = vld [vmem:[%s9596_s2 + $0x140] sm:$0xff]   ;;  %v7174_v28 = vld [vmem:[%s9596_s2 + $0x1c8] sm:$0xff]  }
  0x44   :  { %2091 = vmatmul.mubr.bf16.gmra.mxu1 %v7138_v20  ;;  %2001 = vmatprep.mubr.bf16.mxu0 %v7144_v40  ;;  %v965_v63 = vld [vmem:[#allocation2 + $0x1b0] sm:$0xff]  ;;  %v6301_v17 = vpack.c.bf16 %v247_v13, %v247_v13  ;;  %v343_v20 = vld [vmem:[%s9597_s0 + $0x7f] sm:$0xff]  ;;  %424 = vst [vmem:[#allocation2 + $0x228] sm:$0xf] %v6318_v23  ;;  %v7175_v29 = vld [vmem:[%s9596_s2 + $0x188] sm:$0xff]  }
  0x45   :  { %2098 = vmatprep.mubr.bf16.mxu1 %v7146_v46  ;;  %v7155_v1 = vld [vmem:[#allocation2 + $0x1b4] ss:$36 sps:$4 sm:$0xff]   ;;  %v6000_v3 = vcombine.low %v965_v63, %v970_v0  ;;  %6665 = vmatprep.subr.bf16.mxu1 %v7165_v62  ;;  %v7157_v15 = vld [vmem:[#allocation2 + $0x1bc] ss:$36 sps:$4 sm:$0xff]   ;;  %231 = vst [vmem:[#allocation2 + $0x1fc] sm:$0xf] %v6285_v12  ;;  %v6317_v22 = vpack.c.bf16 %v343_v20, %v343_v20  ;;  %vm9028_vm4 = vmor %vm3444_vm2, %vm3445_vm3 }
  0x46   :  { %v7160_v19 = vld [vmem:[#allocation2 + $0x1b8] ss:$36 sps:$4 sm:$0xff]   ;;  %327 = vst [vmem:[#allocation2 + $0x200] sm:$0xf] %v6301_v17  ;;  %v7170_v24 = vld [vmem:[%s9596_s2 + $0x190] sm:$0xff]   ;;  %v7173_v26 = vld [vmem:[%s9596_s2 + $0x100] sm:$0xff]   ;;  %6605 = vmatprep.subr.bf16.mxu0 %v7172_v25 }
  0x47   :  { %423 = vst [vmem:[#allocation2 + $0x204] sm:$0xf] %v6317_v22  ;;  %6666 = vmatpush3.bf16.msra.mxu1 %v7170_v24  ;;  %6606 = vmatpush3.bf16.msra.mxu0 %v7173_v26  ;;  %v7176_v30 = vld [vmem:[%s9596_s2 + $0x1c0] sm:$0xff]   ;;  %v425_v32 = vld [vmem:[%s9597_s0 + $0x10] sm:$0xff]  ;;  %v426_v33 = vld [vmem:[%s9597_s0 + $0x18] sm:$0xff] }
  0x48   :  { %6667 = vmatprep.subr.bf16.mxu1 %v7174_v28  ;;  %v6319_v36 = vpack.c.bf16 %v425_v32, %v425_v32  ;;  %v6320_v37 = vpack.c.bf16 %v426_v33, %v426_v33  ;;  %v521_v38 = vld [vmem:[%s9597_s0 + $0x11] sm:$0xff]  ;;  %v522_v40 = vld [vmem:[%s9597_s0 + $0x19] sm:$0xff]  ;;  %v714_v54 = vld [vmem:[%s9597_s0 + $0x23] sm:$0xff] }
  0x49   :  { %v980_v34 = vld [vmem:[#allocation2 + $0x21c] sm:$0xff]  ;;  %v6335_v42 = vpack.c.bf16 %v521_v38, %v521_v38  ;;  %v6336_v44 = vpack.c.bf16 %v522_v40, %v522_v40  ;;  %v6368_v57 = vpack.c.bf16 %v714_v54, %v714_v54  ;;  %v428_v60 = vld [vmem:[%s9597_s0 + $0x28] sm:$0xff]  ;;  %v620_v5 = vld [vmem:[%s9597_s0 + $0x32] sm:$0xff] }
  0x4a   :  { %505 = vst [vmem:[#allocation2 + $0x10] sm:$0xf] %v6319_v36  ;;  %506 = vst [vmem:[#allocation2 + $0x34] sm:$0xf] %v6320_v37  ;;  %v7179_v46 = vld [vmem:[%s9596_s2 + $0x180] sm:$0xff]   ;;  %v6322_v63 = vpack.c.bf16 %v428_v60, %v428_v60  ;;  %v524_v0 = vld [vmem:[%s9597_s0 + $0x29] sm:$0xff]  ;;  %v6354_v8 = vpack.c.bf16 %v620_v5, %v620_v5 }
  0x4b   :  { %2002 = vmatmul.mubr.bf16.gmra.mxu0 %v5991_v47  ;;  %6668 = vmatpush3.bf16.msra.mxu1 %v7175_v29  ;;  %601 = vst [vmem:[#allocation2 + $0x14] sm:$0xf] %v6335_v42  ;;  %602 = vst [vmem:[#allocation2 + $0x38] sm:$0xf] %v6336_v44  ;;  %v7879_v47 = vld [vmem:[%s9596_s2 + $0x238] sm:$0xff]   ;;  %v427_v59 = vld [vmem:[%s9597_s0 + $0x20] sm:$0xff] }
  0x4c   :  { %2099 = vmatmul.mubr.bf16.gmra.mxu1 %v7149_v49  ;;  %2009 = vmatprep.mubr.bf16.mxu0 %v7155_v1  ;;  %v975_v31 = vld [vmem:[#allocation2 + $0x1f8] sm:$0xff]  ;;  %v618_v49 = vld [vmem:[%s9597_s0 + $0x22] sm:$0xff]  ;;  %v6321_v62 = vpack.c.bf16 %v427_v59, %v427_v59  ;;  %794 = vst [vmem:[#allocation2 + $0x40] sm:$0xf] %v6368_v57  ;;  %v619_v4 = vld [vmem:[%s9597_s0 + $0x2a] sm:$0xff] }
  0x4d   :  { %2106 = vmatprep.mubr.bf16.mxu1 %v7157_v15  ;;  %v7166_v35 = vld [vmem:[#allocation2 + $0x1fc] ss:$36 sps:$4 sm:$0xff]   ;;  %6669 = vmatprep.subr.bf16.mxu1 %v7176_v30  ;;  %v6009_v39 = vcombine.low %v975_v31, %v980_v34  ;;  %v6352_v55 = vpack.c.bf16 %v618_v49, %v618_v49  ;;  %508 = vst [vmem:[#allocation2 + $0x7c] sm:$0xf] %v6322_v63  ;;  %v715_v9 = vld [vmem:[%s9597_s0 + $0x2b] sm:$0xff]  ;;  %v716_v10 = vld [vmem:[%s9597_s0 + $0x33] sm:$0xff] }
  0x4e   :  { %v7168_v43 = vld [vmem:[#allocation2 + $0x204] ss:$36 sps:$4 sm:$0xff]   ;;  %v617_v48 = vld [vmem:[%s9597_s0 + $0x1a] sm:$0xff]  ;;  %7007 = vmatprep.subr.bf16.mxu0 %v7879_v47  ;;  %507 = vst [vmem:[#allocation2 + $0x58] sm:$0xf] %v6321_v62  ;;  %v6353_v7 = vpack.c.bf16 %v619_v4, %v619_v4  ;;  %v429_v12 = vld [vmem:[%s9597_s0 + $0x30] sm:$0xff]  ;;  %v6369_v14 = vpack.c.bf16 %v715_v9, %v715_v9  ;;  %v6370_v15 = vpack.c.bf16 %v716_v10, %v716_v10 }
  0x4f   :  { %v7171_v45 = vld [vmem:[#allocation2 + $0x200] ss:$36 sps:$4 sm:$0xff]   ;;  %v6351_v50 = vpack.c.bf16 %v617_v48, %v617_v48  ;;  %6670 = vmatpush3.bf16.msra.mxu1 %v7179_v46  ;;  %698 = vst [vmem:[#allocation2 + $0x3c] sm:$0xf] %v6352_v55  ;;  %v7188_v13 = vld [vmem:[%s9596_s2 + $0x230] sm:$0xff]   ;;  %v430_v16 = vld [vmem:[%s9597_s0 + $0x38] sm:$0xff]  ;;  %v6323_v17 = vpack.c.bf16 %v429_v12, %v429_v12 }
  0x50   :  { %v713_v52 = vld [vmem:[%s9597_s0 + $0x1b] sm:$0xff]  ;;  %v525_v18 = vld [vmem:[%s9597_s0 + $0x31] sm:$0xff]  ;;  %699 = vst [vmem:[#allocation2 + $0x60] sm:$0xf] %v6353_v7  ;;  %700 = vst [vmem:[#allocation2 + $0x84] sm:$0xf] %v6354_v8  ;;  %v6324_v21 = vpack.c.bf16 %v430_v16, %v430_v16 }
  0x51   :  { %v6367_v56 = vpack.c.bf16 %v713_v52, %v713_v52  ;;  %v523_v61 = vld [vmem:[%s9597_s0 + $0x21] sm:$0xff]  ;;  %697 = vst [vmem:[#allocation2 + $0x18] sm:$0xf] %v6351_v50  ;;  %v7180_v20 = vld [vmem:[#allocation2 + $0x10] ss:$36 sps:$4 sm:$0xff]   ;;  %v6339_v22 = vpack.c.bf16 %v525_v18, %v525_v18  ;;  %v526_v23 = vld [vmem:[%s9597_s0 + $0x39] sm:$0xff] }
  0x52   :  { %v6337_v1 = vpack.c.bf16 %v523_v61, %v523_v61  ;;  %795 = vst [vmem:[#allocation2 + $0x64] sm:$0xf] %v6369_v14  ;;  %796 = vst [vmem:[#allocation2 + $0x88] sm:$0xf] %v6370_v15  ;;  %v6340_v24 = vpack.c.bf16 %v526_v23, %v526_v23  ;;  %v621_v25 = vld [vmem:[%s9597_s0 + $0x3a] sm:$0xff]  ;;  %v622_v26 = vld [vmem:[%s9597_s0 + $0x42] sm:$0xff] }
  0x53   :  { %2010 = vmatmul.mubr.bf16.gmra.mxu0 %v6000_v3  ;;  %793 = vst [vmem:[#allocation2 + $0x1c] sm:$0xf] %v6367_v56  ;;  %v6338_v3 = vpack.c.bf16 %v524_v0, %v524_v0  ;;  %509 = vst [vmem:[#allocation2 + $0xa0] sm:$0xf] %v6323_v17  ;;  %v7195_v28 = vld [vmem:[%s9596_s2 + $0x228] sm:$0xff]   ;;  %v6355_v29 = vpack.c.bf16 %v621_v25, %v621_v25  ;;  %v6356_v30 = vpack.c.bf16 %v622_v26, %v622_v26  ;;  %v717_v31 = vld [vmem:[%s9597_s0 + $0x3b] sm:$0xff] }
  0x54   :  { %2107 = vmatmul.mubr.bf16.gmra.mxu1 %v7160_v19  ;;  %2017 = vmatprep.mubr.bf16.mxu0 %v7166_v35  ;;  %603 = vst [vmem:[#allocation2 + $0x5c] sm:$0xf] %v6337_v1  ;;  %v7177_v19 = vld [vmem:[#allocation2 + $0x14] ss:$36 sps:$4 sm:$0xff]   ;;  %510 = vst [vmem:[#allocation2 + $0xc4] sm:$0xf] %v6324_v21  ;;  %v6371_v35 = vpack.c.bf16 %v717_v31, %v717_v31 }
  0x55   :  { %2114 = vmatprep.mubr.bf16.mxu1 %v7168_v43  ;;  %604 = vst [vmem:[#allocation2 + $0x80] sm:$0xf] %v6338_v3  ;;  %605 = vst [vmem:[#allocation2 + $0xa4] sm:$0xf] %v6339_v22  ;;  %v718_v32 = vld [vmem:[%s9597_s0 + $0x43] sm:$0xff]  ;;  %v624_v52 = vld [vmem:[%s9597_s0 + $0x52] sm:$0xff] }
  0x56   :  { %v431_v33 = vld [vmem:[%s9597_s0 + $0x40] sm:$0xff]  ;;  %606 = vst [vmem:[#allocation2 + $0xc8] sm:$0xf] %v6340_v24  ;;  %v6372_v36 = vpack.c.bf16 %v718_v32, %v718_v32  ;;  %701 = vst [vmem:[#allocation2 + $0xa8] sm:$0xf] %v6355_v29  ;;  %v623_v50 = vld [vmem:[%s9597_s0 + $0x4a] sm:$0xff]  ;;  %v6358_v57 = vpack.c.bf16 %v624_v52, %v624_v52 }
  0x57   :  { %v6325_v37 = vpack.c.bf16 %v431_v33, %v431_v33  ;;  %702 = vst [vmem:[#allocation2 + $0xcc] sm:$0xf] %v6356_v30  ;;  %v7187_v42 = vld [vmem:[#allocation2 + $0x58] ss:$36 sps:$4 sm:$0xff]   ;;  %797 = vst [vmem:[#allocation2 + $0xac] sm:$0xf] %v6371_v35  ;;  %v6357_v56 = vpack.c.bf16 %v623_v50, %v623_v50 }
  0x58   :  { %v7184_v38 = vld [vmem:[#allocation2 + $0x18] ss:$36 sps:$4 sm:$0xff]   ;;  %798 = vst [vmem:[#allocation2 + $0xd0] sm:$0xf] %v6372_v36  ;;  %v527_v44 = vld [vmem:[%s9597_s0 + $0x41] sm:$0xff]  ;;  %v719_v59 = vld [vmem:[%s9597_s0 + $0x4b] sm:$0xff] }
  0x59   :  { %511 = vst [vmem:[#allocation2 + $0xe8] sm:$0xf] %v6325_v37  ;;  %v7189_v46 = vld [vmem:[#allocation2 + $0x64] ss:$36 sps:$4 sm:$0xff]   ;;  %v720_v60 = vld [vmem:[%s9597_s0 + $0x53] sm:$0xff]  ;;  %v6373_v63 = vpack.c.bf16 %v719_v59, %v719_v59 }
  0x5a   :  { %v7182_v34 = vld [vmem:[#allocation2 + $0x1c] ss:$36 sps:$4 sm:$0xff]   ;;  %v433_v61 = vld [vmem:[%s9597_s0 + $0x50] sm:$0xff]  ;;  %703 = vst [vmem:[#allocation2 + $0xf0] sm:$0xf] %v6357_v56  ;;  %v6374_v0 = vpack.c.bf16 %v720_v60, %v720_v60  ;;  %v436_v24 = vld [vmem:[%s9597_s0 + $0x68] sm:$0xff] }
  0x5b   :  { %2018 = vmatmul.mubr.bf16.gmra.mxu0 %v6009_v39  ;;  %v432_v39 = vld [vmem:[%s9597_s0 + $0x48] sm:$0xff]  ;;  %v7202_v49 = vld [vmem:[%s9596_s2 + $0x220] sm:$0xff]   ;;  %704 = vst [vmem:[#allocation2 + $0x114] sm:$0xf] %v6358_v57  ;;  %v6327_v1 = vpack.c.bf16 %v433_v61, %v433_v61  ;;  %v434_v4 = vld [vmem:[%s9597_s0 + $0x58] sm:$0xff] }
  0x5c   :  { %2115 = vmatmul.mubr.bf16.gmra.mxu1 %v7171_v45  ;;  %2155 = vmatprep.mubr.bf16.mxu0 %v7177_v19  ;;  %v7185_v40 = vld [vmem:[#allocation2 + $0x5c] ss:$36 sps:$4 sm:$0xff]   ;;  %v6326_v43 = vpack.c.bf16 %v432_v39, %v432_v39  ;;  %v528_v45 = vld [vmem:[%s9597_s0 + $0x49] sm:$0xff]  ;;  %v529_v5 = vld [vmem:[%s9597_s0 + $0x51] sm:$0xff]  ;;  %799 = vst [vmem:[#allocation2 + $0xf4] sm:$0xf] %v6373_v63  ;;  %v6328_v7 = vpack.c.bf16 %v434_v4, %v434_v4 }
  0x5d   :  { %2252 = vmatprep.mubr.bf16.mxu1 %v7182_v34  ;;  %v6342_v48 = vpack.c.bf16 %v528_v45, %v528_v45  ;;  %v7191_v54 = vld [vmem:[#allocation2 + $0x60] ss:$36 sps:$4 sm:$0xff]   ;;  %800 = vst [vmem:[#allocation2 + $0x118] sm:$0xf] %v6374_v0  ;;  %513 = vst [vmem:[#allocation2 + $0x130] sm:$0xf] %v6327_v1  ;;  %v6343_v9 = vpack.c.bf16 %v529_v5, %v529_v5 }
  0x5e   :  { %512 = vst [vmem:[#allocation2 + $0x10c] sm:$0xf] %v6326_v43  ;;  %v7192_v55 = vld [vmem:[#allocation2 + $0xa4] ss:$36 sps:$4 sm:$0xff]   ;;  %v530_v8 = vld [vmem:[%s9597_s0 + $0x59] sm:$0xff]  ;;  %v7216_v32 = vld [vmem:[%s9596_s2 + $0x210] sm:$0xff]  }
  0x5f   :  { %608 = vst [vmem:[#allocation2 + $0x110] sm:$0xf] %v6342_v48  ;;  %v7196_v62 = vld [vmem:[#allocation2 + $0xac] ss:$36 sps:$4 sm:$0xff]   ;;  %v7194_v3 = vld [vmem:[#allocation2 + $0xa0] ss:$36 sps:$4 sm:$0xff]   ;;  %v6344_v10 = vpack.c.bf16 %v530_v8, %v530_v8 }
  0x60   :  { %v7209_v12 = vld [vmem:[%s9596_s2 + $0x218] sm:$0xff]   ;;  %v626_v14 = vld [vmem:[%s9597_s0 + $0x62] sm:$0xff]  ;;  %514 = vst [vmem:[#allocation2 + $0x154] sm:$0xf] %v6328_v7  ;;  %609 = vst [vmem:[#allocation2 + $0x134] sm:$0xf] %v6343_v9 }
  0x61   :  { %v6360_v17 = vpack.c.bf16 %v626_v14, %v626_v14  ;;  %v7198_v18 = vld [vmem:[#allocation2 + $0xa8] ss:$36 sps:$4 sm:$0xff]   ;;  %610 = vst [vmem:[#allocation2 + $0x158] sm:$0xf] %v6344_v10  ;;  %v721_v19 = vld [vmem:[%s9597_s0 + $0x5b] sm:$0xff]  ;;  %v628_v34 = vld [vmem:[%s9597_s0 + $0x72] sm:$0xff] }
  0x62   :  { %v6375_v21 = vpack.c.bf16 %v721_v19, %v721_v19  ;;  %v435_v23 = vld [vmem:[%s9597_s0 + $0x60] sm:$0xff]  ;;  %v532_v29 = vld [vmem:[%s9597_s0 + $0x69] sm:$0xff]  ;;  %v6362_v37 = vpack.c.bf16 %v628_v34, %v628_v34  ;;  %v438_v45 = vld [vmem:[%s9597_s0 + $0x78] sm:$0xff] }
  0x63   :  { %2156 = vmatmul.mubr.bf16.vlgmr.msra.gmra.mxu0 %v7180_v20  ;;  %v722_v20 = vld [vmem:[%s9597_s0 + $0x63] sm:$0xff]  ;;  %706 = vst [vmem:[#allocation2 + $0x15c] sm:$0xf] %v6360_v17  ;;  %v6329_v26 = vpack.c.bf16 %v435_v23, %v435_v23  ;;  %v6346_v31 = vpack.c.bf16 %v532_v29, %v532_v29  ;;  %v723_v39 = vld [vmem:[%s9597_s0 + $0x6b] sm:$0xff]  ;;  %v534_v52 = vld [vmem:[%s9597_s0 + $0x79] sm:$0xff] }
  0x64   :  { %7008 = vmatpush3.bf16.msra.mxu0 %v7879_v47  ;;  %2253 = vmatmul.mubr.bf16.vlgmr.msra.gmra.mxu1 %v7184_v38  ;;  %v6341_v47 = vpack.c.bf16 %v527_v44, %v527_v44  ;;  %v6376_v22 = vpack.c.bf16 %v722_v20, %v722_v20  ;;  %v531_v25 = vld [vmem:[%s9597_s0 + $0x61] sm:$0xff]  ;;  %801 = vst [vmem:[#allocation2 + $0x13c] sm:$0xf] %v6375_v21  ;;  %v627_v33 = vld [vmem:[%s9597_s0 + $0x6a] sm:$0xff]  ;;  %v7203_v35 = vld [vmem:[#allocation2 + $0xf4] ss:$36 sps:$4 sm:$0xff]  }
  0x65   :  { %7009 = vmatprep.subr.bf16.mxu0 %v7188_v13  ;;  %2163 = vmatprep.mubr.bf16.mxu0 %v7185_v40  ;;  %v6345_v30 = vpack.c.bf16 %v531_v25, %v531_v25  ;;  %515 = vst [vmem:[#allocation2 + $0x178] sm:$0xf] %v6329_v26  ;;  %v6361_v36 = vpack.c.bf16 %v627_v33, %v627_v33  ;;  %v7201_v38 = vld [vmem:[#allocation2 + $0xe8] ss:$36 sps:$4 sm:$0xff]   ;;  %612 = vst [vmem:[#allocation2 + $0x1a0] sm:$0xf] %v6346_v31 }
  0x66   :  { %2260 = vmatprep.mubr.bf16.mxu1 %v7189_v46  ;;  %607 = vst [vmem:[#allocation2 + $0xec] sm:$0xf] %v6341_v47  ;;  %802 = vst [vmem:[#allocation2 + $0x160] sm:$0xf] %v6376_v22  ;;  %v724_v40 = vld [vmem:[%s9597_s0 + $0x73] sm:$0xff]  ;;  %v7223_v56 = vld [vmem:[%s9596_s2 + $0x208] sm:$0xff]  }
  0x67   :  { %611 = vst [vmem:[#allocation2 + $0x17c] sm:$0xf] %v6345_v30  ;;  %707 = vst [vmem:[#allocation2 + $0x180] sm:$0xf] %v6361_v36  ;;  %v6378_v43 = vpack.c.bf16 %v724_v40, %v724_v40  ;;  %v437_v44 = vld [vmem:[%s9597_s0 + $0x70] sm:$0xff]  ;;  %v629_v57 = vld [vmem:[%s9597_s0 + $0x7a] sm:$0xff] }
  0x68   :  { %7010 = vmatpush3.bf16.msra.mxu0 %v7188_v13  ;;  %v625_v13 = vld [vmem:[%s9597_s0 + $0x5a] sm:$0xff]  ;;  %708 = vst [vmem:[#allocation2 + $0x1a4] sm:$0xf] %v6362_v37  ;;  %v7205_v46 = vld [vmem:[#allocation2 + $0xf0] ss:$36 sps:$4 sm:$0xff]   ;;  %v6331_v48 = vpack.c.bf16 %v437_v44, %v437_v44  ;;  %v6363_v60 = vpack.c.bf16 %v629_v57, %v629_v57  ;;  %v630_v61 = vld [vmem:[%s9597_s0 + $0x82] sm:$0xff] }
  0x69   :  { %7011 = vmatprep.subr.bf16.mxu0 %v7195_v28  ;;  %v6359_v16 = vpack.c.bf16 %v625_v13, %v625_v13  ;;  %v7206_v47 = vld [vmem:[#allocation2 + $0x134] ss:$36 sps:$4 sm:$0xff]   ;;  %804 = vst [vmem:[#allocation2 + $0x1a8] sm:$0xf] %v6378_v43  ;;  %v6364_v0 = vpack.c.bf16 %v630_v61, %v630_v61  ;;  %v439_v4 = vld [vmem:[%s9597_s0 + $0x80] sm:$0xff]  ;;  %v440_v8 = vld [vmem:[%s9597_s0 + $0x88] sm:$0xff] }
  0x6a   :  { %v533_v50 = vld [vmem:[%s9597_s0 + $0x71] sm:$0xff]  ;;  %517 = vst [vmem:[#allocation2 + $0x1c0] sm:$0xf] %v6331_v48  ;;  %709 = vst [vmem:[#allocation2 + $0x1c8] sm:$0xf] %v6363_v60  ;;  %v725_v1 = vld [vmem:[%s9597_s0 + $0x7b] sm:$0xff]  ;;  %v6333_v9 = vpack.c.bf16 %v439_v4, %v439_v4  ;;  %v6334_v13 = vpack.c.bf16 %v440_v8, %v440_v8 }
  0x6b   :  { %2164 = vmatmul.mubr.bf16.gmra.mxu0 %v7187_v42  ;;  %705 = vst [vmem:[#allocation2 + $0x138] sm:$0xf] %v6359_v16  ;;  %v6377_v42 = vpack.c.bf16 %v723_v39, %v723_v39  ;;  %710 = vst [vmem:[#allocation2 + $0x1ec] sm:$0xf] %v6364_v0  ;;  %v6379_v5 = vpack.c.bf16 %v725_v1, %v725_v1  ;;  %v535_v10 = vld [vmem:[%s9597_s0 + $0x81] sm:$0xff]  ;;  %v632_v19 = vld [vmem:[%s9597_s0 + $0x92] sm:$0xff] }
  0x6c   :  { %7012 = vmatpush3.bf16.msra.mxu0 %v7195_v28  ;;  %2171 = vmatprep.mubr.bf16.mxu0 %v7192_v55  ;;  %v6330_v28 = vpack.c.bf16 %v436_v24, %v436_v24  ;;  %v6348_v55 = vpack.c.bf16 %v534_v52, %v534_v52  ;;  %v6349_v14 = vpack.c.bf16 %v535_v10, %v535_v10  ;;  %v7230_v17 = vld [vmem:[%s9596_s2 + $0x200] sm:$0xff]   ;;  %v727_v24 = vld [vmem:[%s9597_s0 + $0x8b] sm:$0xff]  ;;  %v728_v25 = vld [vmem:[%s9597_s0 + $0x93] sm:$0xff]  ;;  %v9653_v52 = vmov 0 }
  0x6d   :  { %7013 = vmatprep.subr.bf16.mxu0 %v7202_v49  ;;  %2261 = vmatmul.mubr.bf16.gmra.mxu1 %v7191_v54  ;;  %v7199_v15 = vld [vmem:[#allocation2 + $0xec] ss:$36 sps:$4 sm:$0xff]   ;;  %803 = vst [vmem:[#allocation2 + $0x184] sm:$0xf] %v6377_v42  ;;  %v6347_v54 = vpack.c.bf16 %v533_v50, %v533_v50  ;;  %v7210_v59 = vld [vmem:[#allocation2 + $0x13c] ss:$36 sps:$4 sm:$0xff]   ;;  %v6366_v22 = vpack.c.bf16 %v632_v19, %v632_v19 }
  0x6e   :  { %2268 = vmatprep.mubr.bf16.mxu1 %v7196_v62  ;;  %516 = vst [vmem:[#allocation2 + $0x19c] sm:$0xf] %v6330_v28  ;;  %614 = vst [vmem:[#allocation2 + $0x1e8] sm:$0xf] %v6348_v55  ;;  %v7208_v62 = vld [vmem:[#allocation2 + $0x130] ss:$36 sps:$4 sm:$0xff]   ;;  %v6381_v28 = vpack.c.bf16 %v727_v24, %v727_v24  ;;  %v6382_v29 = vpack.c.bf16 %v728_v25, %v728_v25 }
  0x6f   :  { %613 = vst [vmem:[#allocation2 + $0x1c4] sm:$0xf] %v6347_v54  ;;  %v7213_v63 = vld [vmem:[#allocation2 + $0x17c] ss:$36 sps:$4 sm:$0xff]   ;;  %805 = vst [vmem:[#allocation2 + $0x1cc] sm:$0xf] %v6379_v5 }
  0x70   :  { %7014 = vmatpush3.bf16.msra.mxu0 %v7202_v49  ;;  %v6332_v49 = vpack.c.bf16 %v438_v45, %v438_v45  ;;  %519 = vst [vmem:[#allocation2 + $0x208] sm:$0xf] %v6333_v9  ;;  %520 = vst [vmem:[#allocation2 + $0x22c] sm:$0xf] %v6334_v13  ;;  %v8084_v30 = vld [vmem:[#allocation3 + $0x48] sm:$0xf] }
  0x71   :  { %7015 = vmatprep.subr.bf16.mxu0 %v7209_v12  ;;  %615 = vst [vmem:[#allocation2 + $0x20c] sm:$0xf] %v6349_v14  ;;  %712 = vst [vmem:[#allocation2 + $0x234] sm:$0xf] %v6366_v22  ;;  %v3659_v31 = vld [vmem:[#allocation3 + $0x4c] sm:$0x1] }
  0x72   :  { %518 = vst [vmem:[#allocation2 + $0x1e4] sm:$0xf] %v6332_v49  ;;  %v7212_v16 = vld [vmem:[#allocation2 + $0x138] ss:$36 sps:$4 sm:$0xff]   ;;  %9649 = vst [vmem:[#allocation10_spill] sm:$0xff] %v8084_v30  ;;  %v3727_v33 = vrot.slane %v3659_v31, 5 }
  0x73   :  { %2172 = vmatmul.mubr.bf16.gmra.mxu0 %v7194_v3  ;;  %v726_v3 = vld [vmem:[%s9597_s0 + $0x83] sm:$0xff]  ;;  %807 = vst [vmem:[#allocation2 + $0x214] sm:$0xf] %v6381_v28  ;;  %808 = vst [vmem:[#allocation2 + $0x238] sm:$0xf] %v6382_v29  ;;  %v9654_v52 = vsel %vm8103_vm14, 4294967295, %v9653_v52 }
  0x74   :  { %2179 = vmatprep.mubr.bf16.mxu0 %v7199_v15  ;;  %7016 = vmatpush3.bf16.msra.mxu0 %v7209_v12  ;;  %v6380_v7 = vpack.c.bf16 %v726_v3, %v726_v3  ;;  %v536_v12 = vld [vmem:[%s9597_s0 + $0x89] sm:$0xff]  ;;  %v809_v40 = vld [vmem:[%s9597_s0 + $0x1c] sm:$0xff]  ;;  %9655 = vst [vmem:[#allocation12_spill] sm:$0xff] %v9654_v52  ;;  %v812_v60 = vld [vmem:[%s9597_s0 + $0x34] sm:$0xff] }
  0x75   :  { %2269 = vmatmul.mubr.bf16.gmra.mxu1 %v7198_v18  ;;  %7017 = vmatprep.subr.bf16.mxu0 %v7216_v32  ;;  %v6350_v15 = vpack.c.bf16 %v536_v12, %v536_v12  ;;  %v631_v18 = vld [vmem:[%s9597_s0 + $0x8a] sm:$0xff]  ;;  %v7215_v23 = vld [vmem:[#allocation2 + $0x178] ss:$36 sps:$4 sm:$0xff]   ;;  %v6383_v44 = vpack.c.bf16 %v809_v40, %v809_v40  ;;  %v7219_v49 = vld [vmem:[#allocation2 + $0x180] ss:$36 sps:$4 sm:$0xff]   ;;  %v6386_v0 = vpack.c.bf16 %v812_v60, %v812_v60 }
  0x76   :  { %2276 = vmatprep.mubr.bf16.mxu1 %v7203_v35  ;;  %806 = vst [vmem:[#allocation2 + $0x1f0] sm:$0xf] %v6380_v7  ;;  %v7217_v20 = vld [vmem:[#allocation2 + $0x184] ss:$36 sps:$4 sm:$0xff]   ;;  %v6365_v21 = vpack.c.bf16 %v631_v18, %v631_v18  ;;  %v3777_v35 = vld [vmem:[#allocation3 + $0x4c] sm:$0x3] }
  0x77   :  { %616 = vst [vmem:[#allocation2 + $0x230] sm:$0xf] %v6350_v15  ;;  %v7220_v26 = vld [vmem:[#allocation2 + $0x1c4] ss:$36 sps:$4 sm:$0xff]   ;;  %v3944_v39 = vshll.u32 %v3777_v35, 16  ;;  %v813_v61 = vld [vmem:[%s9597_s0 + $0x3c] sm:$0xff] }
  0x78   :  { %7018 = vmatpush3.bf16.msra.mxu0 %v7216_v32  ;;  %711 = vst [vmem:[#allocation2 + $0x210] sm:$0xf] %v6365_v21  ;;  %v9603_v32 = vrot.slane %v8084_v30, 5  ;;  %v3776_v34 = vld [vmem:[#allocation3 + $0x48] sm:$0xf]  ;;  %v6387_v3 = vpack.c.bf16 %v813_v61, %v813_v61  ;;  %v815_v4 = vld [vmem:[%s9597_s0 + $0x4c] sm:$0xff] }
  0x79   :  { %7019 = vmatprep.subr.bf16.mxu0 %v7223_v56  ;;  %v3931_v36 = vshrl.u32 %v3776_v34, 16  ;;  %v3934_v37 = vshll.u32 %v3776_v34, 16  ;;  %v810_v42 = vld [vmem:[%s9597_s0 + $0x24] sm:$0xff]  ;;  %v3946_v55 = vrot.slane %v3944_v39, 6  ;;  %889 = vst [vmem:[#allocation2 + $0x20] sm:$0xf] %v6383_v44  ;;  %v6389_v9 = vpack.c.bf16 %v815_v4, %v815_v4 }
  0x7a   :  { %v3726_v43 = vrot.slane %v9603_v32, 4  ;;  %v6384_v45 = vpack.c.bf16 %v810_v42, %v810_v42  ;;  %v814_v1 = vld [vmem:[%s9597_s0 + $0x44] sm:$0xff]  ;;  %v816_v5 = vld [vmem:[%s9597_s0 + $0x54] sm:$0xff]  ;;  %v817_v12 = vld [vmem:[%s9597_s0 + $0x5c] sm:$0xff]  ;;  %892 = vst [vmem:[#allocation2 + $0x8c] sm:$0xf] %v6386_v0 }
  0x7b   :  { %2180 = vmatmul.mubr.bf16.gmra.mxu0 %v7201_v38  ;;  %v3941_v38 = vshrl.u32 %v3777_v35, 16  ;;  %v3936_v48 = vrot.slane %v3934_v37, 6  ;;  %v6388_v8 = vpack.c.bf16 %v814_v1, %v814_v1  ;;  %v6390_v10 = vpack.c.bf16 %v816_v5, %v816_v5  ;;  %v818_v13 = vld [vmem:[%s9597_s0 + $0x64] sm:$0xff]  ;;  %v819_v14 = vld [vmem:[%s9597_s0 + $0x6c] sm:$0xff]  ;;  %893 = vst [vmem:[#allocation2 + $0xb0] sm:$0xf] %v6387_v3 }
  0x7c   :  { %2187 = vmatprep.mubr.bf16.mxu0 %v7206_v47  ;;  %7020 = vmatpush3.bf16.msra.mxu0 %v7223_v56  ;;  %v3933_v47 = vrot.slane %v3931_v36, 5  ;;  %890 = vst [vmem:[#allocation2 + $0x44] sm:$0xf] %v6384_v45  ;;  %v3728_v56 = vsel %vm8097_vm13, %v3726_v43, %v3727_v33  ;;  %v7222_v15 = vld [vmem:[#allocation2 + $0x1c0] ss:$36 sps:$4 sm:$0xff]   ;;  %v6391_v18 = vpack.c.bf16 %v817_v12, %v817_v12  ;;  %v823_v24 = vld [vmem:[%s9597_s0 + $0x8c] sm:$0xff] }
  0x7d   :  { %2277 = vmatmul.mubr.bf16.gmra.mxu1 %v7205_v46  ;;  %7021 = vmatprep.subr.bf16.mxu0 %v7230_v17  ;;  %v9650_v46 = vmov 0  ;;  %v7224_v50 = vld [vmem:[#allocation2 + $0x1cc] ss:$36 sps:$4 sm:$0xff]   ;;  %v3943_v54 = vrot.slane %v3941_v38, 5  ;;  %v6392_v19 = vpack.c.bf16 %v818_v13, %v818_v13  ;;  %3760 = vst [vmem:[#allocation2 + $0x234] sm:$0xf] %v3728_v56  ;;  %v6397_v29 = vpack.c.bf16 %v823_v24, %v823_v24 }
  0x7e   :  { %2284 = vmatprep.mubr.bf16.mxu1 %v7210_v59  ;;  %v9651_v46 = vsel %vm8097_vm13, 4294967295, %v9650_v46  ;;  %v8109_v57 = vor.u32 %v3936_v48, %v3933_v47  ;;  %v811_v59 = vld [vmem:[%s9597_s0 + $0x2c] sm:$0xff]  ;;  %894 = vst [vmem:[#allocation2 + $0xd4] sm:$0xf] %v6388_v8  ;;  %895 = vst [vmem:[#allocation2 + $0xf8] sm:$0xf] %v6389_v9 }
  0x7f   :  { %9652 = vst [vmem:[#allocation11_spill] sm:$0xff] %v9651_v46  ;;  %896 = vst [vmem:[#allocation2 + $0x11c] sm:$0xf] %v6390_v10  ;;  %v822_v22 = vld [vmem:[%s9597_s0 + $0x84] sm:$0xff]  ;;  %v824_v25 = vld [vmem:[%s9597_s0 + $0x94] sm:$0xff] }
  0x80   :  { %7022 = vmatpush3.bf16.msra.mxu0 %v7230_v17  ;;  %9656 = vst [vmem:[#allocation13_spill] sm:$0xff] %v8109_v57  ;;  %v3939_v7 = vrot.slane %v8109_v57, 4  ;;  %v7231_v17 = vld [vmem:[#allocation2 + $0x214] ss:$36 sps:$4 sm:$0xff]   ;;  %897 = vst [vmem:[#allocation2 + $0x140] sm:$0xf] %v6391_v18  ;;  %v6398_v31 = vpack.c.bf16 %v824_v25, %v824_v25 }
  0x81   :  { %898 = vst [vmem:[#allocation2 + $0x164] sm:$0xf] %v6392_v19  ;;  %v7226_v28 = vld [vmem:[#allocation2 + $0x1c8] ss:$36 sps:$4 sm:$0xff]   ;;  %v21_v35 = vld [vmem:[%s9598_s1] sm:$0xff]  ;;  %v23_v36 = vld [vmem:[%s9598_s1 + $0x10] sm:$0xff] }
  0x82   :  { %v3997_v33 = vld [vmem:[#allocation3 + $0x4c] sm:$0x3]  ;;  %903 = vst [vmem:[#allocation2 + $0x218] sm:$0xf] %v6397_v29  ;;  %904 = vst [vmem:[#allocation2 + $0x23c] sm:$0xf] %v6398_v31  ;;  %2416 = vperm.xlu0 %7073, %v21_v35   ;;  %2426 = vperm.xlu1 %7074, %v23_v36  }
  0x83   :  { %2188 = vmatmul.mubr.bf16.gmra.mxu0 %v7208_v62  ;;  %v3947_v62 = vor.u32 %v3946_v55, %v3943_v54  ;;  %v7229_v37 = vld [vmem:[#allocation2 + $0x208] ss:$36 sps:$4 sm:$0xff]   ;;  %v4062_v38 = vrot.slane %v3997_v33, 6  ;;  %v978_v40 = vld [vmem:[#allocation2 + $0x210] sm:$0xff]  ;;  %v24_v43 = vld [vmem:[%s9598_s1 + $0x18] sm:$0xff] }
  0x84   :  { %2195 = vmatprep.mubr.bf16.mxu0 %v7213_v63  ;;  %v6385_v63 = vpack.c.bf16 %v811_v59, %v811_v59  ;;  %v22_v39 = vld [vmem:[%s9598_s1 + $0x8] sm:$0xff]  ;;  %v7233_v45 = vld [vmem:[#allocation2 + $0x20] ss:$36 sps:$4 sm:$0xff]   ;;  %v27_v55 = vld [vmem:[%s9598_s1 + $0x30] sm:$0xff] }
  0x85   :  { %2285 = vmatmul.mubr.bf16.gmra.mxu1 %v7212_v16  ;;  %v7227_v16 = vld [vmem:[#allocation2 + $0x20c] ss:$36 sps:$4 sm:$0xff]   ;;  %v3948_v21 = vsel %vm8103_vm14, %v3939_v7, %v3947_v62  ;;  %v25_v47 = vld [vmem:[%s9598_s1 + $0x20] sm:$0xff]  ;;  %v28_v56 = vld [vmem:[%s9598_s1 + $0x38] sm:$0xff] }
  0x86   :  { %2292 = vmatprep.mubr.bf16.mxu1 %v7217_v20  ;;  %891 = vst [vmem:[#allocation2 + $0x68] sm:$0xf] %v6385_v63  ;;  %v6393_v20 = vpack.c.bf16 %v819_v14, %v819_v14  ;;  %3980 = vst [vmem:[#allocation2 + $0x238] sm:$0xf] %v3948_v21  ;;  %2421 = vperm.xlu0 %7073, %v22_v39   ;;  %v7235_v60 = vld [vmem:[#allocation2 + $0xb0] ss:$36 sps:$4 sm:$0xff]  }
  0x87   :  { %2431 = vperm.xlu1 %7074, %v24_v43   ;;  %v29_v61 = vld [vmem:[%s9598_s1 + $0x40] sm:$0xff]  ;;  %v30_v62 = vld [vmem:[%s9598_s1 + $0x48] sm:$0xff]  ;;  %v31_v63 = vld [vmem:[%s9598_s1 + $0x50] sm:$0xff] }
  0x88   :  { %899 = vst [vmem:[#allocation2 + $0x188] sm:$0xf] %v6393_v20  ;;  %v32_v0 = vld [vmem:[%s9598_s1 + $0x58] sm:$0xff]  ;;  %v7237_v3 = vld [vmem:[#allocation2 + $0x140] ss:$36 sps:$4 sm:$0xff]   ;;  %v34_v5 = vld [vmem:[%s9598_s1 + $0x68] sm:$0xff] }
  0x89   :  { %v7240_v54 = vld [vmem:[#allocation2 + $0x218] ss:$36 sps:$4 sm:$0xff]   ;;  %v33_v4 = vld [vmem:[%s9598_s1 + $0x60] sm:$0xff]  ;;  %v35_v7 = vld [vmem:[%s9598_s1 + $0x70] sm:$0xff] }
  0x8a   :  { %2436 = vperm.xlu0 %7073, %v25_v47   ;;  %v7236_v1 = vld [vmem:[#allocation2 + $0xf8] ss:$36 sps:$4 sm:$0xff]  }
  0x8b   :  { %2196 = vmatmul.mubr.bf16.gmra.mxu0 %v7215_v23  ;;  %v6396_v23 = vpack.c.bf16 %v822_v22, %v822_v22  ;;  %v36_v8 = vld [vmem:[%s9598_s1 + $0x78] sm:$0xff] }
  0x8c   :  { %2203 = vmatprep.mubr.bf16.mxu0 %v7220_v26  ;;  %v8150_v26 = vld [vmem:[#allocation3 + $0x48] sm:$0xf] }
  0x8d   :  { %2293 = vmatmul.mubr.bf16.gmra.mxu1 %v7219_v49  ;;  %9657 = vst [vmem:[#allocation14_spill] sm:$0xff] %v8150_v26  ;;  %902 = vst [vmem:[#allocation2 + $0x1f4] sm:$0xf] %v6396_v23  ;;  %v9602_v34 = vrot.slane %v8150_v26, 6  ;;  %v983_v44 = vld [vmem:[#allocation2 + $0x234] sm:$0xff]  ;;  %v26_v49 = vld [vmem:[%s9598_s1 + $0x28] sm:$0xff] }
  0x8e   :  { %2300 = vmatprep.mubr.bf16.mxu1 %v7224_v50  ;;  %v6015_v50 = vcombine.low %v978_v40, %v983_v44  ;;  %2441 = vperm.xlu1 %7074, %v26_v49   ;;  %v7234_v59 = vld [vmem:[#allocation2 + $0x68] ss:$36 sps:$4 sm:$0xff]   ;;  %s7412_s1 = smov 64  }
  0x8f   :  { %v4061_v42 = vrot.slane %v9602_v34, 4  ;;  %2446 = vperm.xlu0 %7073, %v27_v55   ;;  %v7238_v9 = vld [vmem:[#allocation2 + $0x188] ss:$36 sps:$4 sm:$0xff]  }
  0x91   :  { %v4063_v48 = vsel %vm7561_vm6, %v4061_v42, %v4062_v38 }
  0x92   :  { %4095 = vst [vmem:[#allocation2 + $0x23c] sm:$0xf] %v4063_v48  ;;  %2451 = vperm.xlu1 %7074, %v28_v56  }
  0x93   :  { %2204 = vmatmul.mubr.bf16.gmra.mxu0 %v7222_v15  ;;  %2456 = vperm.xlu0 %7073, %v29_v61  }
  0x94   :  { %2211 = vmatprep.mubr.bf16.mxu0 %v7227_v16  ;;  %v7239_v10 = vld [vmem:[#allocation2 + $0x1d0] ss:$36 sps:$4 sm:$0xff]  }
  0x95   :  { %2301 = vmatmul.mubr.bf16.gmra.mxu1 %v7226_v28 }
  0x96   :  { %2308 = vmatprep.mubr.bf16.mxu1 %v7231_v17  ;;  %2461 = vperm.xlu1 %7074, %v30_v62  }
  0x97   :  { %2466 = vperm.xlu0 %7073, %v31_v63  }
  0x9a   :  { %2471 = vperm.xlu1 %7074, %v32_v0  }
  0x9b   :  { %2212 = vmatmul.mubr.bf16.gmra.mxu0 %v7229_v37  ;;  %2476 = vperm.xlu0 %7073, %v33_v4  }
  0x9c   :  { %7023 = vmatprep.mubr.bf16.mxu0 %v7233_v45 }
  0x9d   :  { %2309 = vmatmul.mubr.bf16.gmra.mxu1 %v6015_v50 }
  0x9e   :  { %2481 = vperm.xlu1 %7074, %v34_v5  }
  0x9f   :  { %2486 = vperm.xlu0 %7073, %v35_v7  }
  0xa2   :  { %2491 = vperm.xlu1 %7074, %v36_v8  }
  0xa3   :  { %7024 = vmatmul.mubr.bf16.vlgmr.msra.gmra.mxu0 %v7234_v59 }
  0xa4   :  { %7027 = vmatprep.mubr.bf16.mxu0 %v7235_v60 }
  0xab   :  { %7028 = vmatmul.mubr.bf16.gmra.mxu0 %v7236_v1 }
  0xac   :  { %7031 = vmatprep.mubr.bf16.mxu0 %v7237_v3 }
  0xb3   :  { %7032 = vmatmul.mubr.bf16.gmra.mxu0 %v7238_v9 }
  0xb4   :  { %7035 = vmatprep.mubr.bf16.mxu0 %v7239_v10 }
  0xbb   :  { %7036 = vmatmul.mubr.bf16.gmra.mxu0 %v7240_v54 }
  0xe3   :  { %v6479_v12 = vpop.f32.mrf.mxu0 }
  0xe4   :  { %v6543_v15 = vpop.f32.mrf.mxu1 }
  0xe5   :  { %v6480_v13 = vpop.f32.mrf.mxu0 }
  0xe6   :  { %v6481_v14 = vadd.f32 %v6480_v13, %v6479_v12  ;;  %v6544_v17 = vpop.f32.mrf.mxu1 }
  0xe7   :  { %v6482_v16 = vpop.f32.mrf.mxu0  ;;  %v6545_v19 = vadd.f32 %v6544_v17, %v6543_v15 }
  0xe8   :  { %v6546_v20 = vpop.f32.mrf.mxu1 }
  0xe9   :  { %v6483_v18 = vpop.f32.mrf.mxu0  ;;  %v8205_v22 = vadd.f32 %v6545_v19, %v6481_v14 }
  0xea   :  { %v6484_v23 = vadd.f32 %v6483_v18, %v6482_v16  ;;  %v6547_v24 = vpop.f32.mrf.mxu1 }
  0xeb   :  { %v6485_v21 = vpop.f32.mrf.mxu0  ;;  %v6548_v28 = vadd.f32 %v6547_v24, %v6546_v20 }
  0xec   :  { %v6549_v31 = vpop.f32.mrf.mxu1 }
  0xed   :  { %v6486_v25 = vpop.f32.mrf.mxu0  ;;  %v8207_v35 = vadd.f32 %v6548_v28, %v6484_v23 }
  0xee   :  { %v6487_v29 = vadd.f32 %v6486_v25, %v6485_v21  ;;  %v6550_v36 = vpop.f32.mrf.mxu1 }
  0xef   :  { %v6488_v33 = vpop.f32.mrf.mxu0  ;;  %v6551_v38 = vadd.f32 %v6550_v36, %v6549_v31 }
  0xf0   :  { %v6552_v39 = vpop.f32.mrf.mxu1 }
  0xf1   :  { %v6489_v37 = vpop.f32.mrf.mxu0  ;;  %v8209_v42 = vadd.f32 %v6551_v38, %v6487_v29 }
  0xf2   :  { %v6490_v43 = vadd.f32 %v6489_v37, %v6488_v33  ;;  %v6553_v44 = vpop.f32.mrf.mxu1 }
  0xf3   :  { %v6491_v40 = vpop.f32.mrf.mxu0  ;;  %v6554_v47 = vadd.f32 %v6553_v44, %v6552_v39 }
  0xf4   :  { %v6555_v49 = vpop.f32.mrf.mxu1 }
  0xf5   :  { %v6492_v45 = vpop.f32.mrf.mxu0  ;;  %v8211_v54 = vadd.f32 %v6554_v47, %v6490_v43 }
  0xf6   :  { %v6493_v48 = vadd.f32 %v6492_v45, %v6491_v40  ;;  %v6556_v55 = vpop.f32.mrf.mxu1 }
  0xf7   :  { %v6494_v50 = vpop.f32.mrf.mxu0  ;;  %v6557_v59 = vadd.f32 %v6556_v55, %v6555_v49 }
  0xf8   :  { %v6558_v60 = vpop.f32.mrf.mxu1 }
  0xf9   :  { %v6495_v56 = vpop.f32.mrf.mxu0  ;;  %v8213_v62 = vadd.f32 %v6557_v59, %v6493_v48 }
  0xfa   :  { %v6496_v63 = vadd.f32 %v6495_v56, %v6494_v50  ;;  %v6559_v0 = vpop.f32.mrf.mxu1 }
  0xfb   :  { %v6497_v61 = vpop.f32.mrf.mxu0  ;;  %v6560_v3 = vadd.f32 %v6559_v0, %v6558_v60 }
  0xfc   :  { %v6561_v5 = vpop.f32.mrf.mxu1 }
  0xfd   :  { %v6498_v1 = vpop.f32.mrf.mxu0  ;;  %v8215_v8 = vadd.f32 %v6560_v3, %v6496_v63 }
  0xfe   :  { %v6499_v4 = vadd.f32 %v6498_v1, %v6497_v61  ;;  %v6562_v9 = vpop.f32.mrf.mxu1 }
  0xff   :  { %v6500_v7 = vpop.f32.mrf.mxu0  ;;  %v6563_v12 = vadd.f32 %v6562_v9, %v6561_v5 }
 0x100   :  { %v6564_v13 = vpop.f32.mrf.mxu1 }
 0x101   :  { %v6501_v10 = vpop.f32.mrf.mxu0  ;;  %v8217_v15 = vadd.f32 %v6563_v12, %v6499_v4 }
 0x102   :  { %v6502_v16 = vadd.f32 %v6501_v10, %v6500_v7  ;;  %v6565_v17 = vpop.f32.mrf.mxu1 }
 0x103   :  { %v6503_v14 = vpop.f32.mrf.mxu0  ;;  %v6566_v19 = vadd.f32 %v6565_v17, %v6564_v13 }
 0x104   :  { %v6567_v21 = vpop.f32.mrf.mxu1 }
 0x105   :  { %v6504_v18 = vpop.f32.mrf.mxu0  ;;  %v8219_v24 = vadd.f32 %v6566_v19, %v6502_v16 }
 0x106   :  { %v6505_v20 = vadd.f32 %v6504_v18, %v6503_v14  ;;  %v6568_v25 = vpop.f32.mrf.mxu1 }
 0x107   :  { %v6506_v23 = vpop.f32.mrf.mxu0  ;;  %v6569_v29 = vadd.f32 %v6568_v25, %v6567_v21 }
 0x108   :  { %v6570_v31 = vpop.f32.mrf.mxu1 }
 0x109   :  { %v6507_v28 = vpop.f32.mrf.mxu0  ;;  %v8221_v33 = vadd.f32 %v6569_v29, %v6505_v20 }
 0x10a   :  { %v6508_v36 = vadd.f32 %v6507_v28, %v6506_v23  ;;  %v6571_v38 = vpop.f32.mrf.mxu1 }
 0x10b   :  { %v6509_v37 = vpop.f32.mrf.mxu0  ;;  %v6572_v39 = vadd.f32 %v6571_v38, %v6570_v31 }
 0x10c   :  { %v6573_v43 = vpop.f32.mrf.mxu1 }
 0x10d   :  { %v6510_v40 = vpop.f32.mrf.mxu0  ;;  %v8223_v45 = vadd.f32 %v6572_v39, %v6508_v36 }
 0x10e   :  { %v6511_v44 = vadd.f32 %v6510_v40, %v6509_v37  ;;  %v6574_v48 = vpop.f32.mrf.mxu1 }
 0x10f   :  { %9658 = vst [vmem:[#allocation15_spill] sm:$0xff] %v8223_v45  ;;  %v6512_v47 = vpop.f32.mrf.mxu0  ;;  %v6575_v49 = vadd.f32 %v6574_v48, %v6573_v43 }
 0x110   :  { %v6576_v55 = vpop.f32.mrf.mxu1 }
 0x111   :  { %v6513_v50 = vpop.f32.mrf.mxu0  ;;  %v8225_v56 = vadd.f32 %v6575_v49, %v6511_v44 }
 0x112   :  { %v6514_v59 = vadd.f32 %v6513_v50, %v6512_v47  ;;  %v6577_v60 = vpop.f32.mrf.mxu1 }
 0x113   :  { %9659 = vst [vmem:[#allocation16_spill] sm:$0xff] %v8225_v56  ;;  %v6515_v61 = vpop.f32.mrf.mxu0  ;;  %v6578_v63 = vadd.f32 %v6577_v60, %v6576_v55 }
 0x114   :  { %v6579_v3 = vpop.f32.mrf.mxu1 }
 0x115   :  { %v6516_v0 = vpop.f32.mrf.mxu0  ;;  %v8227_v1 = vadd.f32 %v6578_v63, %v6514_v59 }
 0x116   :  { %v6517_v4 = vadd.f32 %v6516_v0, %v6515_v61  ;;  %v6580_v7 = vpop.f32.mrf.mxu1 }
 0x117   :  { %9660 = vst [vmem:[#allocation17_spill] sm:$0xff] %v8227_v1  ;;  %v6518_v5 = vpop.f32.mrf.mxu0  ;;  %v6581_v9 = vadd.f32 %v6580_v7, %v6579_v3 }
 0x118   :  { %v6582_v12 = vpop.f32.mrf.mxu1 }
 0x119   :  { %v6519_v10 = vpop.f32.mrf.mxu0  ;;  %v8229_v13 = vadd.f32 %v6581_v9, %v6517_v4 }
 0x11a   :  { %v6520_v14 = vadd.f32 %v6519_v10, %v6518_v5  ;;  %v6583_v16 = vpop.f32.mrf.mxu1 }
 0x11b   :  { %9661 = vst [vmem:[#allocation18_spill] sm:$0xff] %v8229_v13  ;;  %v6584_v17 = vadd.f32 %v6583_v16, %v6582_v12  ;;  %v6521_v19 = vpop.f32.mrf.mxu0 }
 0x11c   :  { %v6585_v20 = vpop.f32.mrf.mxu1 }
 0x11d   :  { %v8231_v18 = vadd.f32 %v6584_v17, %v6520_v14  ;;  %v6522_v21 = vpop.f32.mrf.mxu0 }
 0x11e   :  { %v6523_v23 = vadd.f32 %v6522_v21, %v6521_v19  ;;  %v6586_v25 = vpop.f32.mrf.mxu1 }
 0x11f   :  { %9662 = vst [vmem:[#allocation19_spill] sm:$0xff] %v8231_v18  ;;  %v8233_v28 = vpop.f32.mrf.mxu0  ;;  %v6587_v29 = vadd.f32 %v6586_v25, %v6585_v20 }
 0x120   :  { %v8239_v37 = vpop.f32.mrf.mxu1 }
 0x121   :  { %v8235_v31 = vadd.f32 %v6587_v29, %v6523_v23  ;;  %v8237_v36 = vpop.f32.mrf.mxu0 }
 0x122   :  { %v8241_v39 = vpop.f32.mrf.mxu1 }
 0x123   :  { %9663 = vst [vmem:[#allocation20_spill] sm:$0xff] %v8235_v31  ;;  %v6607_v38 = vpop.f32.mrf.mxu0 }
 0x124   :  { %v6671_v44 = vpop.f32.mrf.mxu1 }
 0x125   :  { %v6608_v40 = vpop.f32.mrf.mxu0 }
 0x126   :  { %v6609_v43 = vadd.f32 %v6608_v40, %v6607_v38  ;;  %v6672_v49 = vpop.f32.mrf.mxu1 }
 0x127   :  { %v6610_v47 = vpop.f32.mrf.mxu0 }
 0x128   :  { %v8244_v48 = vadd.f32 %v6609_v43, %v8205_v22  ;;  %v6674_v55 = vpop.f32.mrf.mxu1 }
 0x129   :  { %v6611_v50 = vpop.f32.mrf.mxu0 }
 0x12a   :  { %v6675_v60 = vpop.f32.mrf.mxu1  ;;  %v6612_v56 = vadd.f32 %v6611_v50, %v6610_v47 }
 0x12b   :  { %v6613_v59 = vpop.f32.mrf.mxu0 }
 0x12d   :  { %v6614_v61 = vpop.f32.mrf.mxu0  ;;  %v6677_v63 = vpop.f32.mrf.mxu1 }
 0x12f   :  { %v6616_v0 = vpop.f32.mrf.mxu0  ;;  %v6678_v3 = vpop.f32.mrf.mxu1 }
 0x131   :  { %v6617_v4 = vpop.f32.mrf.mxu0  ;;  %v6680_v5 = vpop.f32.mrf.mxu1 }
 0x133   :  { %v6619_v7 = vpop.f32.mrf.mxu0  ;;  %v6681_v9 = vpop.f32.mrf.mxu1 }
 0x135   :  { %v6620_v10 = vpop.f32.mrf.mxu0  ;;  %v8246_v12 = vpop.f32.mrf.mxu1 }
 0x136   :  { %v6621_v47 = vadd.f32 %v6620_v10, %v6619_v7 }
 0x137   :  { %v6622_v14 = vpop.f32.mrf.mxu0  ;;  %v8248_v16 = vpop.f32.mrf.mxu1 }
 0x139   :  { %v6623_v22 = vpop.f32.mrf.mxu0  ;;  %v8250_v17 = vpop.f32.mrf.mxu1 }
 0x13b   :  { %v6625_v19 = vpop.f32.mrf.mxu0  ;;  %v8252_v20 = vpop.f32.mrf.mxu1 }
 0x13d   :  { %v6626_v21 = vpop.f32.mrf.mxu0  ;;  %v8254_v23 = vpop.f32.mrf.mxu1 }
 0x13f   :  { %v6628_v25 = vpop.f32.mrf.mxu0  ;;  %v8256_v29 = vpop.f32.mrf.mxu1 }
 0x141   :  { %v6629_v38 = vpop.f32.mrf.mxu0  ;;  %v8258_v40 = vpop.f32.mrf.mxu1 }
 0x143   :  { %v8260_v43 = vpop.f32.mrf.mxu0  ;;  %v8262_v34 = vpop.f32.mrf.mxu1 }
 0x145   :  { %v6632_v32 = vpop.f32.mrf.mxu0  ;;  %v8264_v27 = vpop.f32.mrf.mxu1 }
 0x147   :  { %v8266_v53 = vpop.f32.mrf.mxu0  ;;  %v8268_v26 = vpop.f32.mrf.mxu1 }
 0x148   :  { %9664 = vst [vmem:[#allocation21_spill] sm:$0xff] %v8266_v53 }
 0x149   :  { %v8270_v57 = vpop.f32.mrf.mxu0  ;;  %v8272_v30 = vpop.f32.mrf.mxu1 }
 0x14a   :  { %9665 = vst [vmem:[#allocation22_spill] sm:$0xff] %v8270_v57  ;;  %9666 = vst [vmem:[#allocation23_spill] sm:$0xff] %v8272_v30 }
 0x14b   :  { %v8274_v52 = vpop.f32.mrf.mxu0  ;;  %v8276_v46 = vpop.f32.mrf.mxu1 }
 0x14c   :  { %9667 = vst [vmem:[#allocation24_spill] sm:$0xff] %v8276_v46  ;;  %v8298_v46 = vpop.permute.xlu0 %2416 }
 0x14d   :  { %v8278_v58 = vpop.f32.mrf.mxu0  ;;  %v8280_v6 = vpop.f32.mrf.mxu1 }
 0x14e   :  { %9668 = vst [vmem:[#allocation25_spill] sm:$0xff] %v8280_v6  ;;  %v8304_v6 = vpop.permute.xlu1 %2426 }
 0x14f   :  { %v8282_v51 = vpop.f32.mrf.mxu0  ;;  %v8286_v2 = vpop.f32.mrf.mxu1 }
 0x150   :  { %9669 = vst [vmem:[#allocation26_spill] sm:$0xff] %v8282_v51  ;;  %9671 = vst [vmem:[#allocation28_spill] sm:$0xff] %v8286_v2  ;;  %v8312_v53 = vpop.permute.xlu0 %2421  ;;  %v6679_v51 = vadd.f32 %v6678_v3, %v6677_v63 }
 0x151   :  { %v8284_v11 = vpop.f32.mrf.mxu0  ;;  %v8292_v18 = vpop.f32.mrf.mxu1 }
 0x152   :  { %9670 = vst [vmem:[#allocation27_spill] sm:$0xff] %v8284_v11  ;;  %9674 = vst [vmem:[#allocation31_spill] sm:$0xff] %v8292_v18  ;;  %v8318_v50 = vpop.permute.xlu1 %2431 }
 0x153   :  { %v8288_v41 = vpop.f32.mrf.mxu0  ;;  %v8300_v45 = vpop.f32.mrf.mxu1  ;;  %9680 = vst [vmem:[#allocation37_spill] sm:$0xff] %v8318_v50 }
 0x154   :  { %9672 = vst [vmem:[#allocation29_spill] sm:$0xff] %v8288_v41  ;;  %9677 = vst [vmem:[#allocation34_spill] sm:$0xff] %v8300_v45  ;;  %v6615_v41 = vadd.f32 %v6614_v61, %v6613_v59  ;;  %v6676_v45 = vadd.f32 %v6675_v60, %v6674_v55  ;;  %v2174_v55 = vadd.f32 %v6621_v47, %v8213_v62  ;;  %v8329_v60 = vpop.permute.xlu0 %2436  ;;  %v9687_v47 = vld [vmem:[#allocation21_spill] sm:$0xff] }
 0x155   :  { %v8290_v31 = vpop.f32.mrf.mxu0  ;;  %v8308_v57 = vpop.f32.mrf.mxu1  ;;  %9681 = vst [vmem:[#allocation38_spill] sm:$0xff] %v8329_v60  ;;  %v6691_v62 = vadd.f32 %v8256_v29, %v8254_v23 }
 0x156   :  { %9673 = vst [vmem:[#allocation30_spill] sm:$0xff] %v8290_v31  ;;  %v6618_v31 = vadd.f32 %v6617_v4, %v6616_v0  ;;  %v6682_v0 = vadd.f32 %v6681_v9, %v6680_v5  ;;  %v6624_v4 = vadd.f32 %v6623_v22, %v6622_v14  ;;  %v6633_v5 = vadd.f32 %v6632_v32, %v8260_v43 }
 0x157   :  { %v8294_v13 = vpop.f32.mrf.mxu0  ;;  %v8320_v59 = vpop.f32.mrf.mxu1  ;;  %v6639_v32 = vadd.f32 %v8278_v58, %v8274_v52 }
 0x158   :  { %9675 = vst [vmem:[#allocation32_spill] sm:$0xff] %v8294_v13  ;;  %v6673_v13 = vadd.f32 %v6672_v49, %v6671_v44  ;;  %v2169_v61 = vadd.f32 %v6618_v31, %v8211_v54  ;;  %v6627_v49 = vadd.f32 %v6626_v21, %v6625_v19  ;;  %v8357_v22 = vpop.permute.xlu0 %2446  ;;  %v9684_v21 = vld [vmem:[#allocation26_spill] sm:$0xff] }
 0x159   :  { %v8296_v30 = vpop.f32.mrf.mxu0  ;;  %v8331_v63 = vpop.f32.mrf.mxu1  ;;  %9683 = vst [vmem:[#allocation40_spill] sm:$0xff] %v8357_v22  ;;  %v9685_v23 = vld [vmem:[#allocation27_spill] sm:$0xff] }
 0x15a   :  { %9676 = vst [vmem:[#allocation33_spill] sm:$0xff] %v8296_v30  ;;  %v2161_v30 = vadd.f32 %v6612_v56, %v8207_v35  ;;  %v6526_v35 = vadd.f32 %v8237_v36, %v8233_v28  ;;  %v6688_v28 = vadd.f32 %v8252_v20, %v8250_v17  ;;  %v2266_v36 = vadd.f32 %v6682_v0, %v2169_v61  ;;  %v9688_v61 = vld [vmem:[#allocation22_spill] sm:$0xff] }
 0x15b   :  { %v8302_v1 = vpop.f32.mrf.mxu0  ;;  %v8347_v7 = vpop.f32.mrf.mxu1  ;;  %v6697_v20 = vadd.f32 %v8268_v26, %v8264_v27  ;;  %v6642_v58 = vadd.f32 %v9685_v23, %v9684_v21  ;;  %v6636_v0 = vadd.f32 %v9688_v61, %v9687_v47  ;;  %v9699_v21 = vld [vmem:[#allocation23_spill] sm:$0xff]  ;;  %v9700_v23 = vld [vmem:[#allocation24_spill] sm:$0xff] }
 0x15c   :  { %9678 = vst [vmem:[#allocation35_spill] sm:$0xff] %v8302_v1  ;;  %v2166_v1 = vadd.f32 %v6615_v41, %v8209_v42  ;;  %v6590_v41 = vadd.f32 %v8241_v39, %v8239_v37  ;;  %v6630_v42 = vadd.f32 %v6629_v38, %v6628_v25  ;;  %v2258_v3 = vadd.f32 %v6676_v45, %v2161_v30 }
 0x15d   :  { %v8306_v2 = vpop.f32.mrf.mxu0  ;;  %v2182_v39 = vadd.f32 %v6627_v49, %v8217_v15  ;;  %v8374_v38 = vpop.f32.mrf.mxu1  ;;  %v9690_v49 = vld [vmem:[#allocation25_spill] sm:$0xff] }
 0x15e   :  { %v2263_v54 = vadd.f32 %v6679_v51, %v2166_v1  ;;  %v8342_v51 = vpop.permute.xlu1 %2441  ;;  %v2185_v45 = vadd.f32 %v6630_v42, %v8219_v24  ;;  %v8352_v10 = vadd.f32 %v6590_v41, %v6526_v35  ;;  %v2190_v24 = vadd.f32 %v6633_v5, %v8221_v33  ;;  %v9691_v35 = vld [vmem:[#allocation28_spill] sm:$0xff] }
 0x15f   :  { %v8310_v18 = vpop.f32.mrf.mxu0  ;;  %9682 = vst [vmem:[#allocation39_spill] sm:$0xff] %v8342_v51  ;;  %v2279_v19 = vadd.f32 %v6691_v62, %v2182_v39  ;;  %v6703_v41 = vadd.f32 %v9691_v35, %v9690_v49  ;;  %v9695_v39 = vld [vmem:[#allocation29_spill] sm:$0xff]  ;;  %v9696_v62 = vld [vmem:[#allocation30_spill] sm:$0xff] }
 0x160   :  { %9679 = vst [vmem:[#allocation36_spill] sm:$0xff] %v8310_v18  ;;  %v2255_v18 = vadd.f32 %v6673_v13, %v8244_v48  ;;  %v6685_v13 = vadd.f32 %v8248_v16, %v8246_v12  ;;  %v2177_v48 = vadd.f32 %v6624_v4, %v8215_v8  ;;  %v6694_v8 = vadd.f32 %v8262_v34, %v8258_v40  ;;  %v9689_v4 = vld [vmem:[#allocation16_spill] sm:$0xff] }
 0x161   :  { %v8315_v11 = vpop.f32.mrf.mxu0  ;;  %v6645_v5 = vadd.f32 %v9696_v62, %v9695_v39  ;;  %v9704_v49 = vld [vmem:[#allocation33_spill] sm:$0xff] }
 0x162   :  { %v2271_v14 = vadd.f32 %v6685_v13, %v2174_v55  ;;  %v2274_v16 = vadd.f32 %v6688_v28, %v2177_v48  ;;  %v2282_v33 = vadd.f32 %v6694_v8, %v2185_v45  ;;  %v8372_v29 = vpop.permute.xlu1 %2451  ;;  %v9692_v13 = vld [vmem:[#allocation17_spill] sm:$0xff]  ;;  %v9693_v28 = vld [vmem:[#allocation31_spill] sm:$0xff]  ;;  %v8400_v8 = vpop.permute.xlu0 %2456 }
 0x163   :  { %v7025_v44 = vpop.f32.mrf.mxu0  ;;  %9686 = vst [vmem:[#allocation26_spill] sm:$0xff] %v8372_v29  ;;  %v2201_v48 = vadd.f32 %v6642_v58, %v9692_v13  ;;  %9697 = vst [vmem:[#allocation27_spill] sm:$0xff] %v8400_v8  ;;  %v6700_v58 = vadd.f32 %v9700_v23, %v9699_v21 }
 0x164   :  { %v2360_v30 = vadd.f32 %v7025_v44, %v2263_v54  ;;  %v2198_v44 = vadd.f32 %v6639_v32, %v9689_v4  ;;  %v9703_v4 = vld [vmem:[#allocation32_spill] sm:$0xff] }
 0x165   :  { %v2351_v56 = vpop.f32.mrf.mxu0  ;;  %v6648_v35 = vadd.f32 %v9704_v49, %v9703_v4 }
 0x166   :  { %v2352_v31 = vadd.f32 %v2351_v56, %v2255_v18  ;;  %v8360_v34 = vmul.f32 %v8304_v6, %v2360_v30 }
 0x167   :  { %v7026_v37 = vpop.f32.mrf.mxu0 }
 0x168   :  { %v2363_v1 = vadd.f32 %v7026_v37, %v2266_v36  ;;  %v8350_v9 = vmul.f32 %v8298_v46, %v2352_v31  ;;  %v2533_v55 = vmul.f32 %v8360_v34, %v8360_v34  ;;  %v9694_v36 = vld [vmem:[#allocation34_spill] sm:$0xff] }
 0x169   :  { %v2354_v18 = vpop.f32.mrf.mxu0  ;;  %v6706_v37 = vadd.f32 %v9694_v36, %v9693_v28  ;;  %v6709_v28 = vadd.f32 %v8320_v59, %v8308_v57  ;;  %v9705_v36 = vld [vmem:[#allocation35_spill] sm:$0xff] }
 0x16a   :  { %v2355_v15 = vadd.f32 %v2354_v18, %v2258_v3  ;;  %v8370_v52 = vmul.f32 %v8318_v50, %v2363_v1  ;;  %v2531_v40 = vmul.f32 %v8350_v9, %v8350_v9  ;;  %v6714_v1 = vpop.f32.mrf.mxu1  ;;  %v6651_v39 = vadd.f32 %v8306_v2, %v9705_v36 }
 0x16b   :  { %v7029_v12 = vpop.f32.mrf.mxu0 }
 0x16c   :  { %v8363_v17 = vmul.f32 %v8312_v53, %v2355_v15  ;;  %v2376_v42 = vadd.f32 %v7029_v12, %v2279_v19  ;;  %v2534_v30 = vmul.f32 %v8370_v52, %v8370_v52 }
 0x16d   :  { %v2367_v25 = vpop.f32.mrf.mxu0 }
 0x16e   :  { %v2510_v43 = vadd.f32 %v8363_v17, %v8350_v9  ;;  %v2532_v27 = vmul.f32 %v8363_v17, %v8363_v17  ;;  %v2368_v26 = vadd.f32 %v2367_v25, %v2271_v14  ;;  %v9698_v14 = vld [vmem:[#allocation15_spill] sm:$0xff]  ;;  %v8407_v25 = vmul.f32 %v8357_v22, %v2376_v42 }
 0x16f   :  { %v7030_v56 = vpop.f32.mrf.mxu0  ;;  %v2193_v19 = vadd.f32 %v6636_v0, %v9698_v14  ;;  %v2295_v42 = vadd.f32 %v6703_v41, %v2198_v44 }
 0x170   :  { %v2511_v54 = vadd.f32 %v2510_v43, %v8360_v34  ;;  %v2547_v31 = vadd.f32 %v2532_v27, %v2531_v40  ;;  %v8391_v3 = vmul.f32 %v8329_v60, %v2368_v26  ;;  %v2379_v32 = vadd.f32 %v7030_v56, %v2282_v33  ;;  %v8409_v27 = vpop.permute.xlu1 %2461  ;;  %v9702_v33 = vld [vmem:[#allocation18_spill] sm:$0xff] }
 0x171   :  { %v2370_v45 = vpop.f32.mrf.mxu0  ;;  %v2287_v43 = vadd.f32 %v6697_v20, %v2190_v24  ;;  %9701 = vst [vmem:[#allocation21_spill] sm:$0xff] %v8409_v27  ;;  %v2206_v0 = vadd.f32 %v6645_v5, %v9702_v33  ;;  %v6716_v24 = vpop.f32.mrf.mxu1 }
 0x172   :  { %v2548_v18 = vadd.f32 %v2547_v31, %v2533_v55  ;;  %v2512_v15 = vadd.f32 %v2511_v54, %v8370_v52  ;;  %v2371_v12 = vadd.f32 %v2370_v45, %v2274_v16  ;;  %v2535_v47 = vmul.f32 %v8391_v3, %v8391_v3 }
 0x173   :  { %v7033_v40 = vpop.f32.mrf.mxu0  ;;  %v2298_v55 = vadd.f32 %v6706_v37, %v2201_v48  ;;  %v8421_v54 = vmul.f32 %v8372_v29, %v2379_v32  ;;  %v8430_v48 = vpop.permute.xlu0 %2466  ;;  %v2537_v37 = vmul.f32 %v8407_v25, %v8407_v25  ;;  %v2290_v45 = vadd.f32 %v6700_v58, %v2193_v19  ;;  %v9708_v32 = vld [vmem:[#allocation36_spill] sm:$0xff] }
 0x174   :  { %v2513_v26 = vadd.f32 %v2512_v15, %v8391_v3  ;;  %v2549_v61 = vadd.f32 %v2548_v18, %v2534_v30  ;;  %v8415_v16 = vmul.f32 %v8342_v51, %v2371_v12  ;;  %v2392_v62 = vadd.f32 %v7033_v40, %v2295_v42  ;;  %9706 = vst [vmem:[#allocation22_spill] sm:$0xff] %v8430_v48  ;;  %v9707_v18 = vld [vmem:[#allocation19_spill] sm:$0xff]  ;;  %v6717_v14 = vpop.f32.mrf.mxu1  ;;  %v8441_v21 = vpop.permute.xlu1 %2471  ;;  %v9710_v58 = vld [vmem:[#allocation20_spill] sm:$0xff] }
 0x175   :  { %v2383_v56 = vpop.f32.mrf.mxu0  ;;  %v2209_v15 = vadd.f32 %v6648_v35, %v9707_v18  ;;  %v6654_v57 = vadd.f32 %v8315_v11, %v9708_v32  ;;  %9709 = vst [vmem:[#allocation16_spill] sm:$0xff] %v8441_v21  ;;  %v2538_v23 = vmul.f32 %v8421_v54, %v8421_v54  ;;  %v2303_v33 = vadd.f32 %v6709_v28, %v2206_v0 }
 0x176   :  { %v2550_v20 = vadd.f32 %v2549_v61, %v2535_v47  ;;  %v2514_v31 = vadd.f32 %v2513_v26, %v8415_v16  ;;  %v2536_v13 = vmul.f32 %v8415_v16, %v8415_v16  ;;  %v2384_v44 = vadd.f32 %v2383_v56, %v2287_v43 }
 0x177   :  { %v7034_v41 = vpop.f32.mrf.mxu0  ;;  %v2214_v26 = vadd.f32 %v6651_v39, %v9710_v58  ;;  %v6715_v47 = vadd.f32 %v6714_v1, %v8374_v38  ;;  %v8449_v11 = vmul.f32 %v8430_v48, %v2392_v62  ;;  %v6712_v56 = vadd.f32 %v8347_v7, %v8331_v63  ;;  %v8463_v0 = vpop.permute.xlu0 %2476 }
 0x178   :  { %v2515_v5 = vadd.f32 %v2514_v31, %v8407_v25  ;;  %v2551_v30 = vadd.f32 %v2550_v20, %v2536_v13  ;;  %v8439_v59 = vmul.f32 %v8400_v8, %v2384_v44  ;;  %v2395_v2 = vadd.f32 %v7034_v41, %v2298_v55  ;;  %9711 = vst [vmem:[#allocation25_spill] sm:$0xff] %v8463_v0  ;;  %v8468_v44 = vpop.permute.xlu1 %2481 }
 0x179   :  { %v2386_v12 = vpop.f32.mrf.mxu0  ;;  %v2217_v55 = vadd.f32 %v6654_v57, %v8352_v10  ;;  %v6718_v38 = vadd.f32 %v6717_v14, %v6716_v24  ;;  %v2311_v39 = vadd.f32 %v6715_v47, %v2214_v26  ;;  %9712 = vst [vmem:[#allocation28_spill] sm:$0xff] %v8468_v44  ;;  %v2541_v63 = vmul.f32 %v8449_v11, %v8449_v11 }
 0x17a   :  { %v2552_v40 = vadd.f32 %v2551_v30, %v2537_v37  ;;  %v2516_v43 = vadd.f32 %v2515_v5, %v8421_v54  ;;  %v2387_v19 = vadd.f32 %v2386_v12, %v2290_v45  ;;  %v2539_v49 = vmul.f32 %v8439_v59, %v8439_v59 }
 0x17b   :  { %v7037_v61 = vpop.f32.mrf.mxu0  ;;  %v8461_v1 = vmul.f32 %v8441_v21, %v2395_v2  ;;  %v2314_v37 = vadd.f32 %v6718_v38, %v2217_v55  ;;  %v2306_v5 = vadd.f32 %v6712_v56, %v2209_v15  ;;  %v8479_v12 = vpop.permute.xlu0 %2486 }
 0x17c   :  { %v2517_v4 = vadd.f32 %v2516_v43, %v8439_v59  ;;  %v2553_v35 = vadd.f32 %v2552_v40, %v2538_v23  ;;  %v8455_v42 = vmul.f32 %v8409_v27, %v2387_v19  ;;  %v2408_v41 = vadd.f32 %v7037_v61, %v2311_v39  ;;  %9713 = vst [vmem:[#allocation17_spill] sm:$0xff] %v8479_v12  ;;  %v8490_v19 = vpop.permute.xlu1 %2491 }
 0x17d   :  { %v2399_v20 = vpop.f32.mrf.mxu0  ;;  %v2542_v45 = vmul.f32 %v8461_v1, %v8461_v1  ;;  %9714 = vst [vmem:[#allocation31_spill] sm:$0xff] %v8490_v19 }
 0x17e   :  { %v2554_v31 = vadd.f32 %v2553_v35, %v2539_v49  ;;  %v2518_v13 = vadd.f32 %v2517_v4, %v8455_v42  ;;  %v2540_v28 = vmul.f32 %v8455_v42, %v8455_v42  ;;  %v2400_v36 = vadd.f32 %v2399_v20, %v2303_v33 }
 0x17f   :  { %v7038_v62 = vpop.f32.mrf.mxu0  ;;  %v8485_v43 = vmul.f32 %v8479_v12, %v2408_v41 }
 0x180   :  { %v2519_v7 = vadd.f32 %v2518_v13, %v8449_v11  ;;  %v2555_v10 = vadd.f32 %v2554_v31, %v2540_v28  ;;  %v8474_v24 = vmul.f32 %v8463_v0, %v2400_v36  ;;  %v2411_v57 = vadd.f32 %v7038_v62, %v2314_v37 }
 0x181   :  { %v2402_v30 = vpop.f32.mrf.mxu0  ;;  %v2545_v33 = vmul.f32 %v8485_v43, %v8485_v43 }
 0x182   :  { %v2556_v18 = vadd.f32 %v2555_v10, %v2541_v63  ;;  %v2520_v32 = vadd.f32 %v2519_v7, %v8461_v1  ;;  %v2403_v2 = vadd.f32 %v2402_v30, %v2306_v5  ;;  %v2543_v23 = vmul.f32 %v8474_v24, %v8474_v24  ;;  %v7241_v5 = vld [vmem:[%s9599_s3 + $0x78] sm:$0xff]  }
 0x183   :  { %v8493_v26 = vmul.f32 %v8490_v19, %v2411_v57  ;;  %v7242_v30 = vld [vmem:[%s9599_s3 + $0x38] sm:$0xff]   ;;  %6735 = vmatprep.subr.bf16.mxu1 %v7241_v5  ;;  %v7246_v57 = vld [vmem:[%s9599_s3 + $0x28] sm:$0xff]   ;;  %v7271_v5 = vld [vmem:[%s9599_s3 + $0xc0] sm:$0xff]  }
 0x184   :  { %v2521_v14 = vadd.f32 %v2520_v32, %v8474_v24  ;;  %v2557_v40 = vadd.f32 %v2556_v18, %v2542_v45  ;;  %v8488_v15 = vmul.f32 %v8468_v44, %v2403_v2  ;;  %v7243_v45 = vld [vmem:[%s9599_s3 + $0x70] sm:$0xff]   ;;  %6736 = vmatpush3.bf16.msra.mxu1 %v7242_v30  ;;  %v7245_v32 = vld [vmem:[%s9599_s3 + $0x68] sm:$0xff]   ;;  %v7247_v2 = vld [vmem:[%s9599_s3 + $0x60] sm:$0xff]  }
 0x185   :  { %v2546_v35 = vmul.f32 %v8493_v26, %v8493_v26  ;;  %v7244_v18 = vld [vmem:[%s9599_s3 + $0x30] sm:$0xff]   ;;  %6737 = vmatprep.subr.bf16.mxu1 %v7243_v45  ;;  %v7272_v30 = vld [vmem:[%s9599_s3 + $0x80] sm:$0xff]   ;;  %v7279_v45 = vld [vmem:[%s9599_s3 + $0x178] sm:$0xff]  }
 0x186   :  { %v2558_v58 = vadd.f32 %v2557_v40, %v2543_v23  ;;  %v2522_v47 = vadd.f32 %v2521_v14, %v8488_v15  ;;  %v2544_v61 = vmul.f32 %v8488_v15, %v8488_v15  ;;  %v7248_v14 = vld [vmem:[%s9599_s3 + $0x20] sm:$0xff]   ;;  %v7250_v23 = vld [vmem:[%s9599_s3 + $0xf8] sm:$0xff]  }
 0x187   :  { %v7249_v40 = vld [vmem:[%s9599_s3 + $0x58] sm:$0xff]   ;;  %6799 = vmatprep.subr.bf16.mxu0 %v7250_v23 }
 0x188   :  { %v2523_v4 = vadd.f32 %v2522_v47, %v8485_v43  ;;  %v2559_v49 = vadd.f32 %v2558_v58, %v2544_v61  ;;  %6738 = vmatpush3.bf16.msra.mxu1 %v7244_v18  ;;  %v7252_v58 = vld [vmem:[%s9599_s3 + $0xb8] sm:$0xff]   ;;  %v7253_v47 = vld [vmem:[%s9599_s3 + $0xf0] sm:$0xff]  }
 0x189   :  { %6739 = vmatprep.subr.bf16.mxu1 %v7245_v32  ;;  %6800 = vmatpush3.bf16.msra.mxu0 %v7252_v58  ;;  %v7254_v61 = vld [vmem:[%s9599_s3 + $0xb0] sm:$0xff]   ;;  %v7308_v18 = vld [vmem:[%s9599_s3 + $0x1f8] sm:$0xff]  }
 0x18a   :  { %v2560_v56 = vadd.f32 %v2559_v49, %v2545_v33  ;;  %v2524_v55 = vadd.f32 %v2523_v4, %v8493_v26  ;;  %v7251_v33 = vld [vmem:[%s9599_s3 + $0x18] sm:$0xff]   ;;  %6801 = vmatprep.subr.bf16.mxu0 %v7253_v47  ;;  %v7256_v4 = vld [vmem:[%s9599_s3 + $0xe8] sm:$0xff]   ;;  %v7255_v49 = vld [vmem:[%s9599_s3 + $0x50] sm:$0xff]  }
 0x18c   :  { %v2525_v38 = vrot.slane %v2524_v55, 4  ;;  %v2561_v20 = vadd.f32 %v2560_v56, %v2546_v35  ;;  %6740 = vmatpush3.bf16.msra.mxu1 %v7246_v57  ;;  %v7258_v35 = vld [vmem:[%s9599_s3 + $0xa8] sm:$0xff]   ;;  %v7259_v56 = vld [vmem:[%s9599_s3 + $0xe0] sm:$0xff]  }
 0x18d   :  { %6741 = vmatprep.subr.bf16.mxu1 %v7247_v2  ;;  %6802 = vmatpush3.bf16.msra.mxu0 %v7254_v61 }
 0x18e   :  { %v2526_v31 = vadd.f32 %v2525_v38, %v2524_v55  ;;  %v2562_v13 = vrot.slane %v2561_v20, 4  ;;  %6803 = vmatprep.subr.bf16.mxu0 %v7256_v4  ;;  %v7257_v55 = vld [vmem:[%s9599_s3 + $0x10] sm:$0xff]   ;;  %v7261_v38 = vld [vmem:[%s9599_s3 + $0x48] sm:$0xff]  }
 0x190   :  { %v2527_v28 = vrot.slane %v2526_v31, 2  ;;  %v2563_v36 = vadd.f32 %v2562_v13, %v2561_v20  ;;  %6742 = vmatpush3.bf16.msra.mxu1 %v7248_v14  ;;  %v7260_v20 = vld [vmem:[%s9599_s3 + $0xa0] sm:$0xff]   ;;  %v7263_v13 = vld [vmem:[%s9599_s3 + $0x8] sm:$0xff]  }
 0x191   :  { %6743 = vmatprep.subr.bf16.mxu1 %v7249_v40  ;;  %6804 = vmatpush3.bf16.msra.mxu0 %v7258_v35 }
 0x192   :  { %v2528_v39 = vadd.f32 %v2527_v28, %v2526_v31  ;;  %v2564_v62 = vrot.slane %v2563_v36, 2  ;;  %6805 = vmatprep.subr.bf16.mxu0 %v7259_v56  ;;  %v7262_v31 = vld [vmem:[%s9599_s3 + $0xd8] sm:$0xff]  }
 0x193   :  { %v7264_v28 = vld [vmem:[%s9599_s3 + $0x98] sm:$0xff]  }
 0x194   :  { %v2529_v63 = vrot.slane %v2528_v39, 1  ;;  %v2565_v7 = vadd.f32 %v2564_v62, %v2563_v36  ;;  %6744 = vmatpush3.bf16.msra.mxu1 %v7251_v33  ;;  %v7265_v36 = vld [vmem:[%s9599_s3 + $0xd0] sm:$0xff]   ;;  %v7269_v62 = vld [vmem:[%s9599_s3] sm:$0xff]   ;;  %v2583_v33 = vlaneseq }
 0x195   :  { %6745 = vmatprep.subr.bf16.mxu1 %v7255_v49  ;;  %6806 = vmatpush3.bf16.msra.mxu0 %v7260_v20  ;;  %v37_v49 = vld [vmem:[%s9600_s4] sm:$0x1] }
 0x196   :  { %v8504_v10 = vadd.f32 %v2529_v63, %v2528_v39  ;;  %v2566_v41 = vrot.slane %v2565_v7, 1  ;;  %6807 = vmatprep.subr.bf16.mxu0 %v7262_v31  ;;  %v7267_v39 = vld [vmem:[%s9599_s3 + $0x40] sm:$0xff]   ;;  %v7266_v63 = vld [vmem:[%s9599_s3 + $0x90] sm:$0xff]   ;;  %v2584_v4 = vshrl.u32 %v2583_v33, 7 }
 0x197   :  { %v9716_v31 = vld [vmem:[#allocation4_spill] sm:$0xff] }
 0x198   :  { %2568 = vrot.lane.b32.xlu0 %v8504_v10, %s7412_s1  ;;  %v8508_v37 = vadd.f32 %v2566_v41, %v2565_v7  ;;  %6746 = vmatpush3.bf16.msra.mxu1 %v7257_v55  ;;  %v7268_v7 = vld [vmem:[%s9599_s3 + $0xc8] sm:$0xff]   ;;  %v8619_v35 = vsub.s32 0, %v2584_v4 }
 0x199   :  { %6747 = vmatprep.subr.bf16.mxu1 %v7261_v38  ;;  %6808 = vmatpush3.bf16.msra.mxu0 %v7264_v28  ;;  %v7270_v41 = vld [vmem:[%s9599_s3 + $0x88] sm:$0xff]  }
 0x19a   :  { %2571 = vrot.lane.b32.xlu1 %v8508_v37, %s7412_s1  ;;  %6809 = vmatprep.subr.bf16.mxu0 %v7265_v36  ;;  %9715 = vst [vmem:[#allocation34_spill] sm:$0xff] %v8619_v35 }
 0x19c   :  { %6748 = vmatpush3.bf16.msra.mxu1 %v7263_v13  ;;  %v9717_v13 = vrot.slane %v9716_v31, 6 }
 0x19d   :  { %6749 = vmatprep.subr.bf16.mxu1 %v7267_v39  ;;  %6810 = vmatpush3.bf16.msra.mxu0 %v7266_v63 }
 0x19e   :  { %6811 = vmatprep.subr.bf16.mxu0 %v7268_v7  ;;  %v8629_v28 = vrot.slane %v9717_v13, 4 }
 0x1a0   :  { %6750 = vmatpush3.bf16.msra.mxu1 %v7269_v62 }
 0x1a1   :  { %6812 = vmatpush3.bf16.msra.mxu0 %v7270_v41  ;;  %6863 = vmatprep.subr.bf16.mxu1 %v7279_v45 }
 0x1a2   :  { %6813 = vmatprep.subr.bf16.mxu0 %v7271_v5 }
 0x1a5   :  { %6814 = vmatpush3.bf16.msra.mxu0 %v7272_v30 }
 0x1a6   :  { %6927 = vmatprep.subr.bf16.mxu0 %v7308_v18 }
 0x20a   :  { %v2569_v32 = vpop.permute.xlu0 %2568 }
 0x20b   :  { %v2570_v57 = vadd.f32 %v2569_v32, %v8504_v10  ;;  %v8621_v10 = vld [vmem:[#allocation3 + $0x4] sm:$0x8] }
 0x20c   :  { %v2572_v2 = vpop.permute.xlu1 %2571  ;;  %v3216_v36 = vshrl.u32 %v8621_v10, 16 }
 0x20d   :  { %v2574_v14 = vmul.f32 0.0061728396, %v2570_v57  ;;  %v2573_v23 = vadd.f32 %v2572_v2, %v8508_v37  ;;  %v38_v37 = vld [vmem:[%s9600_s4 + $0x1] sm:$0x1] }
 0x20f   :  { %v2576_v40 = vmul.f32 %v2574_v14, %v2574_v14  ;;  %v2575_v58 = vmul.f32 0.0061728396, %v2573_v23 }
 0x211   :  { %v2577_v47 = vsub.f32 %v2575_v58, %v2576_v40 }
 0x213   :  { %v2578_v61 = vadd.f32 1e-05, %v2577_v47 }
 0x215   :  { %7407 = vrsqrt.f32 %v2578_v61 }
 0x222   :  { %v7408_v56 = vpop.eup %7407 }
 0x223   :  { %v2580_v55 = vmul.f32 %v7408_v56, %v37_v49 }
 0x225   :  { %v2581_v38 = vmul.f32 %v2580_v55, %v2574_v14  ;;  %v2586_v20 = vrot.slane %v2580_v55, %v8619_v35 }
 0x227   :  { %v2582_v39 = vsub.f32 %v38_v37, %v2581_v38  ;;  %v2587_v62 = vmul.f32 %v2586_v20, %v8350_v9  ;;  %v2588_v63 = vmul.f32 %v2586_v20, %v8363_v17  ;;  %v2589_v7 = vmul.f32 %v2586_v20, %v8360_v34 }
 0x228   :  { %v2590_v41 = vmul.f32 %v2586_v20, %v8370_v52  ;;  %v2591_v5 = vmul.f32 %v2586_v20, %v8391_v3  ;;  %v2592_v30 = vmul.f32 %v2586_v20, %v8415_v16  ;;  %v2593_v45 = vmul.f32 %v2586_v20, %v8407_v25 }
 0x229   :  { %v2606_v18 = vrot.slane %v2582_v39, %v8619_v35  ;;  %v2594_v32 = vmul.f32 %v2586_v20, %v8421_v54  ;;  %v2595_v57 = vmul.f32 %v2586_v20, %v8439_v59  ;;  %v2596_v9 = vmul.f32 %v2586_v20, %v8455_v42 }
 0x22a   :  { %v2597_v17 = vmul.f32 %v2586_v20, %v8449_v11  ;;  %v2598_v34 = vmul.f32 %v2586_v20, %v8461_v1  ;;  %v2599_v52 = vmul.f32 %v2586_v20, %v8474_v24  ;;  %v2600_v3 = vmul.f32 %v2586_v20, %v8488_v15 }
 0x22b   :  { %v2607_v2 = vadd.f32 %v2606_v18, %v2587_v62  ;;  %v2608_v16 = vadd.f32 %v2606_v18, %v2588_v63  ;;  %v2609_v14 = vadd.f32 %v2606_v18, %v2589_v7  ;;  %v2610_v25 = vadd.f32 %v2606_v18, %v2590_v41 }
 0x22c   :  { %v2611_v23 = vadd.f32 %v2606_v18, %v2591_v5  ;;  %v2612_v40 = vadd.f32 %v2606_v18, %v2592_v30  ;;  %v2613_v58 = vadd.f32 %v2606_v18, %v2593_v45  ;;  %v2614_v54 = vadd.f32 %v2606_v18, %v2594_v32 }
 0x22d   :  { %v2623_v47 = vmax.f32 %v2607_v2, 0.0  ;;  %v2624_v59 = vmax.f32 %v2608_v16, 0.0  ;;  %v2625_v61 = vmax.f32 %v2609_v14, 0.0  ;;  %v2626_v42 = vmax.f32 %v2610_v25, 0.0 }
 0x22e   :  { %v2627_v33 = vmax.f32 %v2611_v23, 0.0  ;;  %v2628_v11 = vmax.f32 %v2612_v40, 0.0  ;;  %v2629_v4 = vmax.f32 %v2613_v58, 0.0  ;;  %v2630_v1 = vmax.f32 %v2614_v54, 0.0 }
 0x22f   :  { %v2639_v24 = vmul.f32 %v2623_v47, %v8298_v46  ;;  %v2640_v15 = vmul.f32 %v2624_v59, %v8312_v53  ;;  %v2641_v49 = vmul.f32 %v2625_v61, %v8304_v6  ;;  %v2642_v56 = vmul.f32 %v2626_v42, %v8318_v50  ;;  %v9718_v47 = vld [vmem:[#allocation7_spill] sm:$0xff] }
 0x230   :  { %v2643_v55 = vmul.f32 %v2627_v33, %v8329_v60  ;;  %v2644_v37 = vmul.f32 %v2628_v11, %v8342_v51  ;;  %v2645_v38 = vmul.f32 %v2629_v4, %v8357_v22  ;;  %v2646_v31 = vmul.f32 %v2630_v1, %v8372_v29 }
 0x231   :  { %v6418_v13 = vpack.c.bf16 %v2640_v15, %v2639_v24  ;;  %v6423_v39 = vpack.c.bf16 %v2642_v56, %v2641_v49  ;;  %v2615_v62 = vadd.f32 %v2606_v18, %v2595_v57  ;;  %v2616_v63 = vadd.f32 %v2606_v18, %v2596_v9 }
 0x232   :  { %v6428_v7 = vpack.c.bf16 %v2644_v37, %v2643_v55  ;;  %v6433_v41 = vpack.c.bf16 %v2646_v31, %v2645_v38  ;;  %v2617_v5 = vadd.f32 %v2606_v18, %v2597_v17  ;;  %v2618_v30 = vadd.f32 %v2606_v18, %v2598_v34 }
 0x233   :  { %6455 = vst [vmem:[#allocation3 + $0x8] sm:$0xff] %v6418_v13   ;;  %6456 = vst [vmem:[#allocation3 + $0x10] sm:$0xff] %v6423_v39   ;;  %v2631_v45 = vmax.f32 %v2615_v62, 0.0  ;;  %v2632_v32 = vmax.f32 %v2616_v63, 0.0  ;;  %v2619_v2 = vadd.f32 %v2606_v18, %v2599_v52  ;;  %v2620_v16 = vadd.f32 %v2606_v18, %v2600_v3 }
 0x234   :  { %6457 = vst [vmem:[#allocation3 + $0x18] sm:$0xff] %v6428_v7   ;;  %6458 = vst [vmem:[#allocation3 + $0x20] sm:$0xff] %v6433_v41   ;;  %v2633_v14 = vmax.f32 %v2617_v5, 0.0  ;;  %v2634_v25 = vmax.f32 %v2618_v30, 0.0  ;;  %v2601_v23 = vmul.f32 %v2586_v20, %v8485_v43  ;;  %v2602_v40 = vmul.f32 %v2586_v20, %v8493_v26  ;;  %v9720_v20 = vld [vmem:[#allocation9_spill] sm:$0xff] }
 0x235   :  { %v2647_v57 = vmul.f32 %v2631_v45, %v8400_v8  ;;  %v2648_v9 = vmul.f32 %v2632_v32, %v8409_v27  ;;  %v2635_v17 = vmax.f32 %v2619_v2, 0.0  ;;  %v2636_v34 = vmax.f32 %v2620_v16, 0.0 }
 0x236   :  { %v2649_v58 = vmul.f32 %v2633_v14, %v8430_v48  ;;  %v2650_v54 = vmul.f32 %v2634_v25, %v8441_v21  ;;  %v2621_v52 = vadd.f32 %v2606_v18, %v2601_v23  ;;  %v2622_v3 = vadd.f32 %v2606_v18, %v2602_v40 }
 0x237   :  { %v9719_v59 = vrot.slane %v9718_v47, 7  ;;  %v6438_v42 = vpack.c.bf16 %v2648_v9, %v2647_v57  ;;  %v2651_v43 = vmul.f32 %v2635_v17, %v8463_v0  ;;  %v2652_v26 = vmul.f32 %v2636_v34, %v8468_v44 }
 0x238   :  { %v2895_v33 = vrot.slane %v9720_v20, 4  ;;  %v6443_v11 = vpack.c.bf16 %v2650_v54, %v2649_v58  ;;  %v2637_v4 = vmax.f32 %v2621_v52, 0.0  ;;  %v2638_v1 = vmax.f32 %v2622_v3, 0.0 }
 0x239   :  { %v3118_v61 = vrot.slane %v9719_v59, 4  ;;  %v6108_v24 = vrot.slane %v3216_v36, 11  ;;  %6459 = vst [vmem:[#allocation3 + $0x28] sm:$0xff] %v6438_v42   ;;  %v6448_v18 = vpack.c.bf16 %v2652_v26, %v2651_v43 }
 0x23a   :  { %v2741_v15 = vld [vmem:[#allocation3 + $0x8] sm:$0xf]  ;;  %6460 = vst [vmem:[#allocation3 + $0x30] sm:$0xff] %v6443_v11   ;;  %v2653_v55 = vmul.f32 %v2637_v4, %v8479_v12  ;;  %v2654_v37 = vmul.f32 %v2638_v1, %v8490_v19  ;;  %v3197_v63 = vld [vmem:[#allocation3 + $0xc] sm:$0xf] }
 0x23b   :  { %v2859_v49 = vld [vmem:[#allocation3 + $0x8] sm:$0xf]  ;;  %v2781_v38 = vrot.slane %v2741_v15, 6  ;;  %6461 = vst [vmem:[#allocation3 + $0x38] sm:$0xff] %v6448_v18   ;;  %v2742_v36 = vld [vmem:[#allocation3 + $0xc] sm:$0xf] }
 0x23c   :  { %v3079_v56 = vld [vmem:[#allocation3 + $0x8] sm:$0xf]  ;;  %v2897_v31 = vshrl.u32 %v2859_v49, 16  ;;  %v2900_v13 = vshll.u32 %v2859_v49, 16  ;;  %v6453_v41 = vpack.c.bf16 %v2654_v37, %v2653_v55  ;;  %v8675_v14 = vld [vmem:[#allocation3 + $0x10] sm:$0xf] }
 0x23d   :  { %v3119_v39 = vrot.slane %v3079_v56, 7  ;;  %v3196_v62 = vld [vmem:[#allocation3 + $0x8] sm:$0xf]  ;;  %v2782_v30 = vsel %vm7561_vm6, %v8629_v28, %v2781_v38  ;;  %v2860_v25 = vld [vmem:[#allocation3 + $0xc] sm:$0xf]  ;;  %v3230_v40 = vshrl.u32 %v3197_v63, 16 }
 0x23e   :  { %v3221_v7 = vshrl.u32 %v3196_v62, 16  ;;  %v3224_v10 = vshll.u32 %v3196_v62, 16  ;;  %v2899_v45 = vrot.slane %v2897_v31, 6  ;;  %v2902_v32 = vrot.slane %v2900_v13, 7  ;;  %2842 = vst [vmem:[#allocation2 + $0x24] sm:$0xf] %v2782_v30 }
 0x23f   :  { %v3120_v16 = vsel %vm7589_vm8, %v3118_v61, %v3119_v39  ;;  %v3233_v57 = vshll.u32 %v3197_v63, 16  ;;  %v2783_v9 = vrot.slane %v2781_v38, 4  ;;  %6462 = vst [vmem:[#allocation3 + $0x40] sm:$0xff] %v6453_v41   ;;  %v2784_v34 = vrot.slane %v2742_v36, 6  ;;  %v2861_v59 = vld [vmem:[#allocation3 + $0x10] sm:$0xf] }
 0x240   :  { %3180 = vst [vmem:[#allocation2 + $0x2c] sm:$0xf] %v3120_v16  ;;  %v3223_v23 = vrot.slane %v3221_v7, 7  ;;  %v2903_v17 = vor.u32 %v2902_v32, %v2899_v45  ;;  %v2787_v58 = vrot.slane %v8675_v14, 6  ;;  %v2907_v54 = vshrl.u32 %v2860_v25, 16 }
 0x241   :  { %v8684_v47 = vrot.slane %v3230_v40, 7  ;;  %v2910_v61 = vshll.u32 %v2860_v25, 16  ;;  %v2785_v26 = vsel %vm7561_vm6, %v2783_v9, %v2784_v34  ;;  %v2786_v20 = vrot.slane %v2784_v34, 4  ;;  %v3080_v4 = vld [vmem:[#allocation3 + $0xc] sm:$0xf] }
 0x242   :  { %v3226_v52 = vor.u32 %v3224_v10, %v3223_v23  ;;  %v3228_v3 = vrot.slane %v3223_v23, 4  ;;  %v2904_v43 = vsel %vm7574_vm7, %v2895_v33, %v2903_v17  ;;  %v2905_v11 = vrot.slane %v2903_v17, 4  ;;  %v8690_v1 = vld [vmem:[#allocation3 + $0x10] sm:$0xf]  ;;  %2843 = vst [vmem:[#allocation2 + $0x48] sm:$0xf] %v2785_v26 }
 0x243   :  { %3062 = vst [vmem:[#allocation2 + $0x28] sm:$0xf] %v2904_v43  ;;  %v3235_v15 = vor.u32 %v3233_v57, %v8684_v47  ;;  %v2909_v49 = vrot.slane %v2907_v54, 6  ;;  %v2912_v56 = vrot.slane %v2910_v61, 7  ;;  %v3198_v55 = vld [vmem:[#allocation3 + $0x10] sm:$0xf]  ;;  %v2788_v33 = vsel %vm7561_vm6, %v2786_v20, %v2787_v58 }
 0x244   :  { %v3227_v18 = vsel %vm8679_vm1, %v6108_v24, %v3226_v52  ;;  %v2917_v37 = vshrl.u32 %v2861_v59, 16  ;;  %v2920_v38 = vshll.u32 %v2861_v59, 16  ;;  %v3121_v31 = vrot.slane %v3119_v39, 4  ;;  %2844 = vst [vmem:[#allocation2 + $0x6c] sm:$0xf] %v2788_v33  ;;  %v7284_v17 = vld [vmem:[%s9599_s3 + $0x138] sm:$0xff]  }
 0x245   :  { %3379 = vst [vmem:[#allocation2 + $0xc] sm:$0xf] %v3227_v18  ;;  %v3236_v13 = vsel %vm8679_vm1, %v3228_v3, %v3235_v15  ;;  %v2913_v62 = vor.u32 %v2912_v56, %v2909_v49  ;;  %v3122_v63 = vrot.slane %v3080_v4, 7  ;;  %v3125_v24 = vrot.slane %v8690_v1, 7  ;;  %v3199_v7 = vld [vmem:[#allocation3 + $0x14] sm:$0xf] }
 0x246   :  { %3380 = vst [vmem:[#allocation2 + $0x30] sm:$0xf] %v3236_v13  ;;  %v2919_v10 = vrot.slane %v2917_v37, 6  ;;  %v2922_v36 = vrot.slane %v2920_v38, 7  ;;  %v3237_v41 = vrot.slane %v8684_v47, 4  ;;  %v3239_v30 = vshrl.u32 %v3198_v55, 16 }
 0x247   :  { %v2744_v45 = vld [vmem:[#allocation3 + $0x14] sm:$0xf]  ;;  %v2914_v32 = vsel %vm7574_vm7, %v2905_v11, %v2913_v62  ;;  %v2915_v39 = vrot.slane %v2913_v62, 4  ;;  %v3123_v16 = vsel %vm7589_vm8, %v3121_v31, %v3122_v63  ;;  %v3124_v14 = vrot.slane %v3122_v63, 4  ;;  %v8705_v25 = vld [vmem:[#allocation3 + $0x18] sm:$0xf] }
 0x248   :  { %v8707_v23 = vor.u32 %v2922_v36, %v2919_v10  ;;  %3063 = vst [vmem:[#allocation2 + $0x4c] sm:$0xf] %v2914_v32  ;;  %3181 = vst [vmem:[#allocation2 + $0x50] sm:$0xf] %v3123_v16  ;;  %v3241_v40 = vrot.slane %v3239_v30, 7  ;;  %v3242_v57 = vshll.u32 %v3198_v55, 16 }
 0x249   :  { %v3248_v9 = vshrl.u32 %v3199_v7, 16  ;;  %v2862_v34 = vld [vmem:[#allocation3 + $0x14] sm:$0xf]  ;;  %v3126_v54 = vsel %vm7589_vm8, %v3124_v14, %v3125_v24  ;;  %v3251_v52 = vshll.u32 %v3199_v7, 16  ;;  %v2789_v47 = vrot.slane %v2787_v58, 4  ;;  %v7314_v55 = vld [vmem:[%s9599_s3 + $0x1b8] sm:$0xff]  }
 0x24a   :  { %v7286_v3 = vld [vmem:[%s9599_s3 + $0x170] sm:$0xff]   ;;  %v2790_v59 = vrot.slane %v2744_v45, 6  ;;  %v2863_v61 = vld [vmem:[#allocation3 + $0x18] sm:$0xf]  ;;  %v7273_v43 = vld [vmem:[#allocation2] ss:$36 sps:$4 sm:$0xff]   ;;  %v2924_v20 = vsel %vm7574_vm7, %v2915_v39, %v8707_v23  ;;  %v3244_v11 = vor.u32 %v3242_v57, %v3241_v40 }
 0x24b   :  { %v7275_v26 = vld [vmem:[#allocation2 + $0x4] ss:$36 sps:$4 sm:$0xff]   ;;  %3182 = vst [vmem:[#allocation2 + $0x74] sm:$0xf] %v3126_v54  ;;  %v3246_v4 = vrot.slane %v3241_v40, 4  ;;  %v8720_v18 = vrot.slane %v3248_v9, 7 }
 0x24c   :  { %v3082_v1 = vld [vmem:[#allocation3 + $0x14] sm:$0xf]  ;;  %3064 = vst [vmem:[#allocation2 + $0x70] sm:$0xf] %v2924_v20  ;;  %v2791_v15 = vsel %vm7561_vm6, %v2789_v47, %v2790_v59  ;;  %v2792_v49 = vrot.slane %v2790_v59, 4  ;;  %v2793_v58 = vrot.slane %v8705_v25, 6  ;;  %5152 = vmatprep.mubr.bf16.mxu1 %v7275_v26  ;;  %v3245_v33 = vsel %vm8679_vm1, %v3237_v41, %v3244_v11 }
 0x24d   :  { %v8725_v56 = vld [vmem:[#allocation3 + $0x18] sm:$0xf]  ;;  %2845 = vst [vmem:[#allocation2 + $0x90] sm:$0xf] %v2791_v15  ;;  %v2925_v37 = vrot.slane %v8707_v23, 4  ;;  %v2927_v38 = vshrl.u32 %v2862_v34, 16  ;;  %5153 = vmatmul.mubr.bf16.vlgmr.msra.gmra.mxu1 %v7273_v43  ;;  %v3253_v36 = vor.u32 %v3251_v52, %v8720_v18 }
 0x24e   :  { %v2930_v31 = vshll.u32 %v2862_v34, 16  ;;  %v8733_v13 = vld [vmem:[#allocation3 + $0x18] sm:$0xf]  ;;  %v7291_v62 = vld [vmem:[%s9599_s3 + $0x130] sm:$0xff]   ;;  %v7276_v7 = vld [vmem:[#allocation2 + $0x8] ss:$36 sps:$4 sm:$0xff]   ;;  %v2794_v41 = vsel %vm7561_vm6, %v2792_v49, %v2793_v58  ;;  %6864 = vmatpush3.bf16.msra.mxu1 %v7284_v17 }
 0x24f   :  { %v7315_v63 = vld [vmem:[%s9599_s3 + $0x1f0] sm:$0xff]   ;;  %3381 = vst [vmem:[#allocation2 + $0x54] sm:$0xf] %v3245_v33  ;;  %v2937_v30 = vshrl.u32 %v2863_v61, 16  ;;  %2846 = vst [vmem:[#allocation2 + $0xb4] sm:$0xf] %v2794_v41  ;;  %v3254_v23 = vsel %vm8679_vm1, %v3246_v4, %v3253_v36  ;;  %6865 = vmatprep.subr.bf16.mxu1 %v7286_v3 }
 0x250   :  { %v7278_v10 = vld [vmem:[#allocation2 + $0xc] ss:$36 sps:$4 sm:$0xff]   ;;  %v2929_v45 = vrot.slane %v2927_v38, 6  ;;  %v2932_v32 = vrot.slane %v2930_v31, 7  ;;  %v2940_v39 = vshll.u32 %v2863_v61, 16  ;;  %v3127_v16 = vrot.slane %v3125_v24, 4 }
 0x251   :  { %v3201_v14 = vld [vmem:[#allocation3 + $0x1c] sm:$0xf]  ;;  %5249 = vmatprep.mubr.bf16.mxu0 %v7278_v10  ;;  %v2939_v40 = vrot.slane %v2937_v30, 6  ;;  %v3128_v57 = vrot.slane %v3082_v1, 7  ;;  %v3131_v9 = vrot.slane %v8725_v56, 7  ;;  %v7293_v34 = vld [vmem:[%s9599_s3 + $0x168] sm:$0xff]  }
 0x252   :  { %5250 = vmatmul.mubr.bf16.vlgmr.msra.gmra.mxu0 %v7276_v7  ;;  %v4106_v17 = vld [vmem:[#allocation2 + $0x48] sm:$0xff]  ;;  %3382 = vst [vmem:[#allocation2 + $0x78] sm:$0xf] %v3254_v23  ;;  %v2933_v54 = vor.u32 %v2932_v32, %v2929_v45  ;;  %v2942_v52 = vrot.slane %v2940_v39, 7  ;;  %v3255_v24 = vrot.slane %v8720_v18, 4  ;;  %v3257_v47 = vshrl.u32 %v8733_v13, 16  ;;  %6866 = vmatpush3.bf16.msra.mxu1 %v7291_v62 }
 0x253   :  { %v2746_v59 = vld [vmem:[#allocation3 + $0x1c] sm:$0xf]  ;;  %v7298_v3 = vld [vmem:[%s9599_s3 + $0x128] sm:$0xff]   ;;  %v3129_v61 = vsel %vm7589_vm8, %v3127_v16, %v3128_v57  ;;  %v3130_v43 = vrot.slane %v3128_v57, 4  ;;  %v3260_v26 = vshll.u32 %v8733_v13, 16  ;;  %v3266_v20 = vshrl.u32 %v3201_v14, 16  ;;  %6928 = vmatpush3.bf16.msra.mxu0 %v7314_v55  ;;  %6867 = vmatprep.subr.bf16.mxu1 %v7293_v34 }
 0x254   :  { %v8760_v11 = vld [vmem:[#allocation3 + $0x20] sm:$0xf]  ;;  %v7316_v1 = vld [vmem:[%s9599_s3 + $0x1b0] sm:$0xff]   ;;  %v2934_v49 = vsel %vm7574_vm7, %v2925_v37, %v2933_v54  ;;  %v2935_v33 = vrot.slane %v2933_v54, 4  ;;  %v8770_v38 = vor.u32 %v2942_v52, %v2939_v40  ;;  %3183 = vst [vmem:[#allocation2 + $0x98] sm:$0xf] %v3129_v61  ;;  %6929 = vmatprep.subr.bf16.mxu0 %v7315_v63 }
 0x255   :  { %v7300_v4 = vld [vmem:[%s9599_s3 + $0x160] sm:$0xff]   ;;  %v4111_v18 = vld [vmem:[#allocation2 + $0x6c] sm:$0xff]  ;;  %v3259_v31 = vrot.slane %v3257_v47, 7  ;;  %3065 = vst [vmem:[#allocation2 + $0x94] sm:$0xf] %v2934_v49  ;;  %v3132_v7 = vsel %vm7589_vm8, %v3130_v43, %v3131_v9  ;;  %v8779_v10 = vrot.slane %v3266_v20, 7 }
 0x256   :  { %v7280_v15 = vld [vmem:[#allocation2 + $0x4c] ss:$36 sps:$4 sm:$0xff]   ;;  %v6120_v13 = vcombine.low %v4106_v17, %v4111_v18  ;;  %v3269_v37 = vshll.u32 %v3201_v14, 16  ;;  %v2864_v36 = vld [vmem:[#allocation3 + $0x1c] sm:$0xf]  ;;  %v2944_v62 = vsel %vm7574_vm7, %v2935_v33, %v8770_v38  ;;  %v2795_v45 = vrot.slane %v2793_v58, 4  ;;  %6868 = vmatpush3.bf16.msra.mxu1 %v7298_v3 }
 0x257   :  { %v7319_v55 = vld [vmem:[%s9599_s3 + $0x1e8] sm:$0xff]   ;;  %v2865_v41 = vld [vmem:[#allocation3 + $0x20] sm:$0xf]  ;;  %5160 = vmatprep.mubr.bf16.mxu1 %v7280_v15  ;;  %3184 = vst [vmem:[#allocation2 + $0xbc] sm:$0xf] %v3132_v7  ;;  %v3262_v63 = vor.u32 %v3260_v26, %v3259_v31  ;;  %v3264_v30 = vrot.slane %v3259_v31, 4  ;;  %6930 = vmatpush3.bf16.msra.mxu0 %v7316_v1 }
 0x258   :  { %v3084_v32 = vld [vmem:[#allocation3 + $0x1c] sm:$0xf]  ;;  %v7305_v39 = vld [vmem:[%s9599_s3 + $0x120] sm:$0xff]   ;;  %v7325_v16 = vld [vmem:[%s9599_s3 + $0x1a8] sm:$0xff]   ;;  %5161 = vmatmul.mubr.bf16.gmra.mxu1 %v6120_v13  ;;  %3066 = vst [vmem:[#allocation2 + $0xb8] sm:$0xf] %v2944_v62  ;;  %v3271_v14 = vor.u32 %v3269_v37, %v8779_v10  ;;  %6931 = vmatprep.subr.bf16.mxu0 %v7319_v55 }
 0x259   :  { %v2796_v23 = vrot.slane %v2746_v59, 6  ;;  %v2799_v40 = vrot.slane %v8760_v11, 6  ;;  %v8794_v57 = vld [vmem:[#allocation3 + $0x20] sm:$0xf]  ;;  %v3263_v58 = vsel %vm8679_vm1, %v3255_v24, %v3262_v63  ;;  %v2947_v34 = vshrl.u32 %v2864_v36, 16  ;;  %v7307_v47 = vld [vmem:[%s9599_s3 + $0x158] sm:$0xff]   ;;  %6869 = vmatprep.subr.bf16.mxu1 %v7300_v4 }
 0x25a   :  { %v8796_v25 = vld [vmem:[#allocation3 + $0x20] sm:$0xf]  ;;  %v2950_v17 = vshll.u32 %v2864_v36, 16  ;;  %v2957_v54 = vshrl.u32 %v2865_v41, 16  ;;  %v8800_v52 = vld [vmem:[#allocation3 + $0x24] sm:$0xf]  ;;  %v3272_v61 = vsel %vm8679_vm1, %v3264_v30, %v3271_v14  ;;  %6870 = vmatpush3.bf16.msra.mxu1 %v7305_v39 }
 0x25b   :  { %v7282_v59 = vld [vmem:[#allocation2 + $0x54] ss:$36 sps:$4 sm:$0xff]   ;;  %3383 = vst [vmem:[#allocation2 + $0x9c] sm:$0xf] %v3263_v58  ;;  %v2797_v43 = vsel %vm7561_vm6, %v2795_v45, %v2796_v23  ;;  %v2798_v24 = vrot.slane %v2796_v23, 4  ;;  %v2945_v26 = vrot.slane %v8770_v38, 4  ;;  %6932 = vmatpush3.bf16.msra.mxu0 %v7325_v16  ;;  %6871 = vmatprep.subr.bf16.mxu1 %v7307_v47 }
 0x25c   :  { %v7326_v3 = vld [vmem:[%s9599_s3 + $0x1e0] sm:$0xff]   ;;  %v7285_v20 = vld [vmem:[#allocation2 + $0x50] ss:$36 sps:$4 sm:$0xff]   ;;  %3384 = vst [vmem:[#allocation2 + $0xc0] sm:$0xf] %v3272_v61  ;;  %v2949_v1 = vrot.slane %v2947_v34, 6  ;;  %5257 = vmatprep.mubr.bf16.mxu0 %v7282_v59 }
 0x25d   :  { %2847 = vst [vmem:[#allocation2 + $0xd8] sm:$0xf] %v2797_v43  ;;  %v2952_v18 = vrot.slane %v2950_v17, 7  ;;  %v2959_v15 = vrot.slane %v2957_v54, 6  ;;  %v2960_v49 = vshll.u32 %v2865_v41, 16  ;;  %v2800_v33 = vsel %vm7561_vm6, %v2798_v24, %v2799_v40  ;;  %v7313_v55 = vld [vmem:[%s9599_s3 + $0x118] sm:$0xff]   ;;  %5258 = vmatmul.mubr.bf16.gmra.mxu0 %v7285_v20  ;;  %6933 = vmatprep.subr.bf16.mxu0 %v7326_v3 }
 0x25e   :  { %v3133_v4 = vrot.slane %v3131_v9, 4  ;;  %v3134_v38 = vrot.slane %v3084_v32, 7  ;;  %v3137_v31 = vrot.slane %v8794_v57, 7  ;;  %v7318_v13 = vld [vmem:[%s9599_s3 + $0x150] sm:$0xff]   ;;  %v7327_v7 = vld [vmem:[%s9599_s3 + $0x1a0] sm:$0xff]   ;;  %v3273_v36 = vrot.slane %v8779_v10, 4  ;;  %6872 = vmatpush3.bf16.msra.mxu1 %v7313_v55 }
 0x25f   :  { %v4116_v37 = vld [vmem:[#allocation2 + $0x90] sm:$0xff]  ;;  %2848 = vst [vmem:[#allocation2 + $0xfc] sm:$0xf] %v2800_v33  ;;  %v2953_v56 = vor.u32 %v2952_v18, %v2949_v1  ;;  %v2962_v9 = vrot.slane %v2960_v49, 7  ;;  %v3275_v41 = vshrl.u32 %v8796_v25, 16  ;;  %v3278_v45 = vshll.u32 %v8796_v25, 16  ;;  %6934 = vmatpush3.bf16.msra.mxu0 %v7327_v7  ;;  %6873 = vmatprep.subr.bf16.mxu1 %v7318_v13 }
 0x260   :  { %v2748_v62 = vld [vmem:[#allocation3 + $0x24] sm:$0xf]  ;;  %v3135_v63 = vsel %vm7589_vm8, %v3133_v4, %v3134_v38  ;;  %v3136_v30 = vrot.slane %v3134_v38, 4  ;;  %v3284_v32 = vshrl.u32 %v8800_v52, 16  ;;  %v8835_v16 = vld [vmem:[#allocation3 + $0x28] sm:$0xf] }
 0x261   :  { %v7330_v10 = vld [vmem:[%s9599_s3 + $0x1d8] sm:$0xff]   ;;  %v2954_v39 = vsel %vm7574_vm7, %v2945_v26, %v2953_v56  ;;  %v2955_v58 = vrot.slane %v2953_v56, 4  ;;  %v8842_v34 = vor.u32 %v2962_v9, %v2959_v15  ;;  %3185 = vst [vmem:[#allocation2 + $0xe0] sm:$0xf] %v3135_v63  ;;  %v3277_v25 = vrot.slane %v3275_v41, 7  ;;  %v7324_v17 = vld [vmem:[%s9599_s3 + $0x110] sm:$0xff]  }
 0x262   :  { %v4121_v14 = vld [vmem:[#allocation2 + $0xb4] sm:$0xff]  ;;  %3067 = vst [vmem:[#allocation2 + $0xdc] sm:$0xf] %v2954_v39  ;;  %v3138_v59 = vsel %vm7589_vm8, %v3136_v30, %v3137_v31  ;;  %v8854_v61 = vrot.slane %v3284_v32, 7  ;;  %v3287_v43 = vshll.u32 %v8800_v52, 16  ;;  %v7329_v3 = vld [vmem:[%s9599_s3 + $0x148] sm:$0xff]   ;;  %6935 = vmatprep.subr.bf16.mxu0 %v7330_v10  ;;  %6874 = vmatpush3.bf16.msra.mxu1 %v7324_v17 }
 0x263   :  { %v7287_v23 = vld [vmem:[#allocation2 + $0x94] ss:$36 sps:$4 sm:$0xff]   ;;  %v6129_v47 = vcombine.low %v4116_v37, %v4121_v14  ;;  %v2866_v24 = vld [vmem:[#allocation3 + $0x24] sm:$0xf]  ;;  %v2867_v26 = vld [vmem:[#allocation3 + $0x28] sm:$0xf]  ;;  %v2964_v20 = vsel %vm7574_vm7, %v2955_v58, %v8842_v34  ;;  %v3280_v1 = vor.u32 %v3278_v45, %v3277_v25  ;;  %6875 = vmatprep.subr.bf16.mxu1 %v7329_v3 }
 0x264   :  { %v7336_v54 = vld [vmem:[%s9599_s3 + $0x198] sm:$0xff]   ;;  %5168 = vmatprep.mubr.bf16.mxu1 %v7287_v23  ;;  %3186 = vst [vmem:[#allocation2 + $0x104] sm:$0xf] %v3138_v59  ;;  %v3282_v18 = vrot.slane %v3277_v25, 4  ;;  %v2801_v15 = vrot.slane %v2799_v40, 4  ;;  %v7337_v52 = vld [vmem:[%s9599_s3 + $0x1d0] sm:$0xff]   ;;  %v3289_v4 = vor.u32 %v3287_v43, %v8854_v61 }
 0x265   :  { %v3086_v49 = vld [vmem:[#allocation3 + $0x24] sm:$0xf]  ;;  %v7289_v33 = vld [vmem:[#allocation2 + $0x9c] ss:$36 sps:$4 sm:$0xff]   ;;  %5169 = vmatmul.mubr.bf16.gmra.mxu1 %v6129_v47  ;;  %3068 = vst [vmem:[#allocation2 + $0x100] sm:$0xf] %v2964_v20  ;;  %v3281_v11 = vsel %vm8679_vm1, %v3273_v36, %v3280_v1  ;;  %6936 = vmatpush3.bf16.msra.mxu0 %v7336_v54 }
 0x266   :  { %v2802_v38 = vrot.slane %v2748_v62, 6  ;;  %v8869_v7 = vld [vmem:[#allocation3 + $0x28] sm:$0xf]  ;;  %v7292_v37 = vld [vmem:[#allocation2 + $0x98] ss:$36 sps:$4 sm:$0xff]   ;;  %v2805_v40 = vrot.slane %v8835_v16, 6  ;;  %5265 = vmatprep.mubr.bf16.mxu0 %v7289_v33  ;;  %v3290_v9 = vsel %vm8679_vm1, %v3282_v18, %v3289_v4  ;;  %6937 = vmatprep.subr.bf16.mxu0 %v7337_v52 }
 0x267   :  { %v2965_v55 = vrot.slane %v8842_v34, 4  ;;  %v2967_v56 = vshrl.u32 %v2866_v24, 16  ;;  %3385 = vst [vmem:[#allocation2 + $0xe4] sm:$0xf] %v3281_v11  ;;  %v2970_v13 = vshll.u32 %v2866_v24, 16  ;;  %v7338_v36 = vld [vmem:[%s9599_s3 + $0x190] sm:$0xff]   ;;  %5266 = vmatmul.mubr.bf16.gmra.mxu0 %v7292_v37 }
 0x268   :  { %v2803_v41 = vsel %vm7561_vm6, %v2801_v15, %v2802_v38  ;;  %v2804_v62 = vrot.slane %v2802_v38, 4  ;;  %v3204_v63 = vld [vmem:[#allocation3 + $0x28] sm:$0xf]  ;;  %3386 = vst [vmem:[#allocation2 + $0x108] sm:$0xf] %v3290_v9  ;;  %v2977_v45 = vshrl.u32 %v2867_v26, 16 }
 0x269   :  { %2849 = vst [vmem:[#allocation2 + $0x120] sm:$0xf] %v2803_v41  ;;  %v2969_v30 = vrot.slane %v2967_v56, 6  ;;  %v2980_v32 = vshll.u32 %v2867_v26, 16  ;;  %v3139_v10 = vrot.slane %v3137_v31, 4  ;;  %v7335_v14 = vld [vmem:[%s9599_s3 + $0x108] sm:$0xff]   ;;  %6938 = vmatpush3.bf16.msra.mxu0 %v7338_v36 }
 0x26a   :  { %v7341_v23 = vld [vmem:[%s9599_s3 + $0x1c8] sm:$0xff]   ;;  %v2806_v39 = vsel %vm7561_vm6, %v2804_v62, %v2805_v40  ;;  %v2972_v58 = vrot.slane %v2970_v13, 7  ;;  %v3140_v34 = vrot.slane %v3086_v49, 7  ;;  %v3143_v25 = vrot.slane %v8869_v7, 7  ;;  %v7340_v31 = vld [vmem:[%s9599_s3 + $0x140] sm:$0xff]   ;;  %v4126_v17 = vld [vmem:[#allocation2 + $0xd8] sm:$0xff]  ;;  %6876 = vmatpush3.bf16.msra.mxu1 %v7335_v14 }
 0x26b   :  { %v3205_v57 = vld [vmem:[#allocation3 + $0x2c] sm:$0xf]  ;;  %2850 = vst [vmem:[#allocation2 + $0x144] sm:$0xf] %v2806_v39  ;;  %v2979_v54 = vrot.slane %v2977_v45, 6  ;;  %v2982_v47 = vrot.slane %v2980_v32, 7  ;;  %6939 = vmatprep.subr.bf16.mxu0 %v7341_v23  ;;  %6877 = vmatprep.subr.bf16.mxu1 %v7340_v31 }
 0x26c   :  { %v3291_v59 = vrot.slane %v8854_v61, 4  ;;  %v3293_v43 = vshrl.u32 %v3204_v63, 16  ;;  %v7342_v24 = vld [vmem:[%s9599_s3 + $0x100] sm:$0xff]   ;;  %v2973_v26 = vor.u32 %v2972_v58, %v2969_v30  ;;  %v3141_v3 = vsel %vm7589_vm8, %v3139_v10, %v3140_v34  ;;  %v2750_v18 = vld [vmem:[#allocation3 + $0x2c] sm:$0xf] }
 0x26d   :  { %v3142_v20 = vrot.slane %v3140_v34, 4  ;;  %v3296_v1 = vshll.u32 %v3204_v63, 16  ;;  %v7346_v15 = vld [vmem:[%s9599_s3 + $0x188] sm:$0xff]   ;;  %v7350_v61 = vld [vmem:[%s9599_s3 + $0x1c0] sm:$0xff]   ;;  %v8910_v33 = vor.u32 %v2982_v47, %v2979_v54  ;;  %3187 = vst [vmem:[#allocation2 + $0x128] sm:$0xf] %v3141_v3 }
 0x26e   :  { %v4131_v49 = vld [vmem:[#allocation2 + $0xfc] sm:$0xff]  ;;  %v3295_v4 = vrot.slane %v3293_v43, 7  ;;  %v3302_v38 = vshrl.u32 %v3205_v57, 16  ;;  %v3305_v37 = vshll.u32 %v3205_v57, 16  ;;  %v2974_v56 = vsel %vm7574_vm7, %v2965_v55, %v2973_v26  ;;  %v8918_v62 = vld [vmem:[#allocation3 + $0x30] sm:$0xf]  ;;  %6940 = vmatpush3.bf16.msra.mxu0 %v7346_v15  ;;  %6878 = vmatpush3.bf16.msra.mxu1 %v7342_v24 }
 0x26f   :  { %v7294_v52 = vld [vmem:[#allocation2 + $0xdc] ss:$36 sps:$4 sm:$0xff]   ;;  %v6138_v11 = vcombine.low %v4126_v17, %v4131_v49  ;;  %v2975_v9 = vrot.slane %v2973_v26, 4  ;;  %v3144_v41 = vsel %vm7589_vm8, %v3142_v20, %v3143_v25  ;;  %3069 = vst [vmem:[#allocation2 + $0x124] sm:$0xf] %v2974_v56  ;;  %v2807_v45 = vrot.slane %v2805_v40, 4  ;;  %6941 = vmatprep.subr.bf16.mxu0 %v7350_v61 }
 0x270   :  { %v7351_v13 = vld [vmem:[%s9599_s3 + $0x180] sm:$0xff]   ;;  %v8926_v63 = vld [vmem:[%s9599_s3 + $0x238] sm:$0xff]   ;;  %5176 = vmatprep.mubr.bf16.mxu1 %v7294_v52  ;;  %3188 = vst [vmem:[#allocation2 + $0x14c] sm:$0xf] %v3144_v41  ;;  %v3298_v55 = vor.u32 %v3296_v1, %v3295_v4  ;;  %v3300_v36 = vrot.slane %v3295_v4, 4  ;;  %v8928_v30 = vrot.slane %v3302_v38, 7 }
 0x271   :  { %v2868_v32 = vld [vmem:[#allocation3 + $0x2c] sm:$0xf]  ;;  %v7296_v10 = vld [vmem:[#allocation2 + $0xe4] ss:$36 sps:$4 sm:$0xff]   ;;  %5177 = vmatmul.mubr.bf16.gmra.mxu1 %v6138_v11  ;;  %v2984_v14 = vsel %vm7574_vm7, %v2975_v9, %v8910_v33  ;;  %v2808_v23 = vrot.slane %v2750_v18, 6  ;;  %v2811_v16 = vrot.slane %v8918_v62, 6  ;;  %7039 = vmatprep.subr.bf16.mxu1 %v8926_v63 }
 0x272   :  { %v2869_v39 = vld [vmem:[#allocation3 + $0x30] sm:$0xf]  ;;  %v7299_v58 = vld [vmem:[#allocation2 + $0xe0] ss:$36 sps:$4 sm:$0xff]   ;;  %3070 = vst [vmem:[#allocation2 + $0x148] sm:$0xf] %v2984_v14  ;;  %v3299_v34 = vsel %vm8679_vm1, %v3291_v59, %v3298_v55  ;;  %v3307_v57 = vor.u32 %v3305_v37, %v8928_v30  ;;  %5273 = vmatprep.mubr.bf16.mxu0 %v7296_v10  ;;  %6942 = vmatpush3.bf16.msra.mxu0 %v7351_v13 }
 0x273   :  { %v2985_v40 = vrot.slane %v8910_v33, 4  ;;  %v3088_v31 = vld [vmem:[#allocation3 + $0x2c] sm:$0xf]  ;;  %3387 = vst [vmem:[#allocation2 + $0x12c] sm:$0xf] %v3299_v34  ;;  %v2809_v17 = vsel %vm7561_vm6, %v2807_v45, %v2808_v23  ;;  %v2810_v54 = vrot.slane %v2808_v23, 4  ;;  %5274 = vmatmul.mubr.bf16.gmra.mxu0 %v7299_v58 }
 0x274   :  { %v2987_v47 = vshrl.u32 %v2868_v32, 16  ;;  %v2990_v43 = vshll.u32 %v2868_v32, 16  ;;  %v8942_v26 = vld [vmem:[#allocation3 + $0x30] sm:$0xf]  ;;  %v3308_v59 = vsel %vm8679_vm1, %v3300_v36, %v3307_v57  ;;  %2851 = vst [vmem:[#allocation2 + $0x168] sm:$0xf] %v2809_v17 }
 0x275   :  { %v2997_v3 = vshrl.u32 %v2869_v39, 16  ;;  %v3000_v24 = vshll.u32 %v2869_v39, 16  ;;  %v3145_v20 = vrot.slane %v3143_v25, 4  ;;  %v3206_v1 = vld [vmem:[#allocation3 + $0x30] sm:$0xf]  ;;  %v2812_v18 = vsel %vm7561_vm6, %v2810_v54, %v2811_v16 }
 0x276   :  { %3388 = vst [vmem:[#allocation2 + $0x150] sm:$0xf] %v3308_v59  ;;  %v2989_v15 = vrot.slane %v2987_v47, 6  ;;  %v2992_v61 = vrot.slane %v2990_v43, 7  ;;  %v3146_v49 = vrot.slane %v3088_v31, 7  ;;  %v3149_v38 = vrot.slane %v8942_v26, 7 }
 0x277   :  { %v3207_v52 = vld [vmem:[#allocation3 + $0x34] sm:$0xf]  ;;  %2852 = vst [vmem:[#allocation2 + $0x18c] sm:$0xf] %v2812_v18  ;;  %v2999_v33 = vrot.slane %v2997_v3, 6  ;;  %v3002_v4 = vrot.slane %v3000_v24, 7 }
 0x278   :  { %v3309_v37 = vrot.slane %v8928_v30, 4  ;;  %v2752_v11 = vld [vmem:[#allocation3 + $0x34] sm:$0xf]  ;;  %v4136_v7 = vld [vmem:[#allocation2 + $0x120] sm:$0xff]  ;;  %v2993_v25 = vor.u32 %v2992_v61, %v2989_v15  ;;  %v3147_v56 = vsel %vm7589_vm8, %v3145_v20, %v3146_v49  ;;  %v3148_v9 = vrot.slane %v3146_v49, 4 }
 0x279   :  { %v3311_v41 = vshrl.u32 %v3206_v1, 16  ;;  %v8955_v62 = vld [vmem:[#allocation3 + $0x38] sm:$0xf]  ;;  %v8957_v55 = vor.u32 %v3002_v4, %v2999_v33  ;;  %3189 = vst [vmem:[#allocation2 + $0x170] sm:$0xf] %v3147_v56  ;;  %v3314_v13 = vshll.u32 %v3206_v1, 16 }
 0x27a   :  { %v3320_v36 = vshrl.u32 %v3207_v52, 16  ;;  %v3323_v45 = vshll.u32 %v3207_v52, 16  ;;  %v2870_v32 = vld [vmem:[#allocation3 + $0x34] sm:$0xf]  ;;  %v4141_v10 = vld [vmem:[#allocation2 + $0x144] sm:$0xff]  ;;  %v2994_v30 = vsel %vm7574_vm7, %v2985_v40, %v2993_v25  ;;  %v2995_v23 = vrot.slane %v2993_v25, 4 }
 0x27b   :  { %v7301_v14 = vld [vmem:[#allocation2 + $0x124] ss:$36 sps:$4 sm:$0xff]   ;;  %v3150_v39 = vsel %vm7589_vm8, %v3148_v9, %v3149_v38  ;;  %v3313_v58 = vrot.slane %v3311_v41, 7  ;;  %v2871_v34 = vld [vmem:[#allocation3 + $0x38] sm:$0xf]  ;;  %v6147_v57 = vcombine.low %v4136_v7, %v4141_v10  ;;  %v2813_v17 = vrot.slane %v2811_v16, 4 }
 0x27c   :  { %3071 = vst [vmem:[#allocation2 + $0x16c] sm:$0xf] %v2994_v30  ;;  %3190 = vst [vmem:[#allocation2 + $0x194] sm:$0xf] %v3150_v39  ;;  %v8963_v31 = vrot.slane %v3320_v36, 7  ;;  %v2814_v54 = vrot.slane %v2752_v11, 6  ;;  %5184 = vmatprep.mubr.bf16.mxu1 %v7301_v14  ;;  %v3004_v43 = vsel %vm7574_vm7, %v2995_v23, %v8957_v55 }
 0x27d   :  { %v3090_v47 = vld [vmem:[#allocation3 + $0x34] sm:$0xf]  ;;  %v3316_v40 = vor.u32 %v3314_v13, %v3313_v58  ;;  %v3318_v26 = vrot.slane %v3313_v58, 4  ;;  %v2817_v59 = vrot.slane %v8955_v62, 6  ;;  %v8969_v3 = vld [vmem:[#allocation3 + $0x38] sm:$0xf]  ;;  %5185 = vmatmul.mubr.bf16.gmra.mxu1 %v6147_v57 }
 0x27e   :  { %v3395_v24 = vld [vmem:[#allocation3 + $0x8] sm:$0xf]  ;;  %v7303_v20 = vld [vmem:[#allocation2 + $0x12c] ss:$36 sps:$4 sm:$0xff]   ;;  %3072 = vst [vmem:[#allocation2 + $0x190] sm:$0xf] %v3004_v43  ;;  %v3325_v16 = vor.u32 %v3323_v45, %v8963_v31  ;;  %v2815_v18 = vsel %vm7561_vm6, %v2813_v17, %v2814_v54 }
 0x27f   :  { %v7306_v1 = vld [vmem:[#allocation2 + $0x128] ss:$36 sps:$4 sm:$0xff]   ;;  %v2816_v15 = vrot.slane %v2814_v54, 4  ;;  %3411 = vst [vmem:[#allocation2 + $0x10] sm:$0xf] %v3395_v24  ;;  %v3317_v61 = vsel %vm8679_vm1, %v3309_v37, %v3316_v40  ;;  %v3005_v49 = vrot.slane %v8957_v55, 4  ;;  %5281 = vmatprep.mubr.bf16.mxu0 %v7303_v20 }
 0x280   :  { %2853 = vst [vmem:[#allocation2 + $0x1b0] sm:$0xf] %v2815_v18  ;;  %v3007_v52 = vshrl.u32 %v2870_v32, 16  ;;  %v3010_v33 = vshll.u32 %v2870_v32, 16  ;;  %v3396_v4 = vld [vmem:[#allocation3 + $0xc] sm:$0xf]  ;;  %v3326_v11 = vsel %vm8679_vm1, %v3318_v26, %v3325_v16  ;;  %5282 = vmatmul.mubr.bf16.gmra.mxu0 %v7306_v1 }
 0x281   :  { %3389 = vst [vmem:[#allocation2 + $0x174] sm:$0xf] %v3317_v61  ;;  %v2818_v7 = vsel %vm7561_vm6, %v2816_v15, %v2817_v59  ;;  %v3017_v25 = vshrl.u32 %v2871_v34, 16  ;;  %v3020_v56 = vshll.u32 %v2871_v34, 16  ;;  %v3208_v9 = vld [vmem:[#allocation3 + $0x38] sm:$0xf] }
 0x282   :  { %3412 = vst [vmem:[#allocation2 + $0x34] sm:$0xf] %v3396_v4  ;;  %3390 = vst [vmem:[#allocation2 + $0x198] sm:$0xf] %v3326_v11  ;;  %v3009_v37 = vrot.slane %v3007_v52, 6  ;;  %v3012_v41 = vrot.slane %v3010_v33, 7 }
 0x283   :  { %2854 = vst [vmem:[#allocation2 + $0x1d4] sm:$0xf] %v2818_v7  ;;  %v3151_v62 = vrot.slane %v3149_v38, 4  ;;  %v3152_v55 = vrot.slane %v3090_v47, 7  ;;  %v3209_v13 = vld [vmem:[#allocation3 + $0x3c] sm:$0xf] }
 0x284   :  { %v3019_v36 = vrot.slane %v3017_v25, 6  ;;  %v3022_v45 = vrot.slane %v3020_v56, 7  ;;  %v3155_v32 = vrot.slane %v8969_v3, 7  ;;  %v3327_v10 = vrot.slane %v8963_v31, 4  ;;  %v2754_v14 = vld [vmem:[#allocation3 + $0x3c] sm:$0xf] }
 0x285   :  { %v4146_v30 = vld [vmem:[#allocation2 + $0x168] sm:$0xff]  ;;  %v3013_v23 = vor.u32 %v3012_v41, %v3009_v37  ;;  %v3153_v39 = vsel %vm7589_vm8, %v3151_v62, %v3152_v55  ;;  %v3154_v58 = vrot.slane %v3152_v55, 4  ;;  %v3329_v34 = vshrl.u32 %v3208_v9, 16  ;;  %v2755_v57 = vld [vmem:[#allocation3 + $0x40] sm:$0x3] }
 0x286   :  { %v8985_v17 = vor.u32 %v3022_v45, %v3019_v36  ;;  %3191 = vst [vmem:[#allocation2 + $0x1b8] sm:$0xf] %v3153_v39  ;;  %v3332_v38 = vshll.u32 %v3208_v9, 16  ;;  %v3338_v54 = vshrl.u32 %v3209_v13, 16  ;;  %v3341_v47 = vshll.u32 %v3209_v13, 16  ;;  %v4151_v40 = vld [vmem:[#allocation2 + $0x18c] sm:$0xff] }
 0x287   :  { %v2872_v43 = vld [vmem:[#allocation3 + $0x3c] sm:$0xf]  ;;  %v7309_v26 = vld [vmem:[#allocation2 + $0x16c] ss:$36 sps:$4 sm:$0xff]   ;;  %v3014_v31 = vsel %vm7574_vm7, %v3005_v49, %v3013_v23  ;;  %v3015_v3 = vrot.slane %v3013_v23, 4  ;;  %v3156_v24 = vsel %vm7589_vm8, %v3154_v58, %v3155_v32  ;;  %v3331_v20 = vrot.slane %v3329_v34, 7 }
 0x288   :  { %v6156_v1 = vcombine.low %v4146_v30, %v4151_v40  ;;  %3073 = vst [vmem:[#allocation2 + $0x1b4] sm:$0xf] %v3014_v31  ;;  %3192 = vst [vmem:[#allocation2 + $0x1dc] sm:$0xf] %v3156_v24  ;;  %v8991_v16 = vrot.slane %v3338_v54, 7  ;;  %v2819_v18 = vrot.slane %v2817_v59, 4  ;;  %5192 = vmatprep.mubr.bf16.mxu1 %v7309_v26 }
 0x289   :  { %v2820_v15 = vrot.slane %v2754_v14, 6  ;;  %v2873_v61 = vld [vmem:[#allocation3 + $0x40] sm:$0x7]  ;;  %v3024_v52 = vsel %vm7574_vm7, %v3015_v3, %v8985_v17  ;;  %v3334_v33 = vor.u32 %v3332_v38, %v3331_v20  ;;  %v3336_v49 = vrot.slane %v3331_v20, 4  ;;  %v3092_v4 = vld [vmem:[#allocation3 + $0x3c] sm:$0xf] }
 0x28a   :  { %v3093_v11 = vld [vmem:[#allocation3 + $0x40] sm:$0x7]  ;;  %v7311_v7 = vld [vmem:[#allocation2 + $0x174] ss:$36 sps:$4 sm:$0xff]   ;;  %5193 = vmatmul.mubr.bf16.gmra.mxu1 %v6156_v1  ;;  %3074 = vst [vmem:[#allocation2 + $0x1d8] sm:$0xf] %v3024_v52  ;;  %v3343_v25 = vor.u32 %v3341_v47, %v8991_v16 }
 0x28b   :  { %v2821_v56 = vsel %vm7561_vm6, %v2819_v18, %v2820_v15  ;;  %v2822_v59 = vrot.slane %v2820_v15, 4  ;;  %v2823_v9 = vrot.slane %v2755_v57, 6  ;;  %v3210_v37 = vld [vmem:[#allocation3 + $0x40] sm:$0xf]  ;;  %v7317_v41 = vld [vmem:[#allocation2 + $0x170] ss:$36 sps:$4 sm:$0xff]   ;;  %v3335_v62 = vsel %vm8679_vm1, %v3327_v10, %v3334_v33  ;;  %5289 = vmatprep.mubr.bf16.mxu0 %v7311_v7 }
 0x28c   :  { %2855 = vst [vmem:[#allocation2 + $0x1f8] sm:$0xf] %v2821_v56  ;;  %v3025_v55 = vrot.slane %v8985_v17, 4  ;;  %v3027_v13 = vshrl.u32 %v2872_v43, 16  ;;  %v3030_v36 = vshll.u32 %v2872_v43, 16  ;;  %v3344_v45 = vsel %vm8679_vm1, %v3336_v49, %v3343_v25  ;;  %5290 = vmatmul.mubr.bf16.gmra.mxu0 %v7317_v41 }
 0x28d   :  { %3391 = vst [vmem:[#allocation2 + $0x1bc] sm:$0xf] %v3335_v62  ;;  %v2824_v14 = vsel %vm7561_vm6, %v2822_v59, %v2823_v9  ;;  %v3037_v30 = vshrl.u32 %v2873_v61, 16  ;;  %v3040_v23 = vshll.u32 %v2873_v61, 16  ;;  %v3397_v39 = vld [vmem:[#allocation3 + $0x10] sm:$0xf] }
 0x28e   :  { %v3398_v58 = vld [vmem:[#allocation3 + $0x14] sm:$0xf]  ;;  %3392 = vst [vmem:[#allocation2 + $0x1e0] sm:$0xf] %v3344_v45  ;;  %2856 = vst [vmem:[#allocation2 + $0x21c] sm:$0xf] %v2824_v14 }
 0x28f   :  { %v3029_v10 = vrot.slane %v3027_v13, 6  ;;  %v3032_v34 = vrot.slane %v3030_v36, 7  ;;  %v3157_v57 = vrot.slane %v3155_v32, 4  ;;  %v3158_v17 = vrot.slane %v3092_v4, 7  ;;  %v3211_v38 = vld [vmem:[#allocation3 + $0x44] sm:$0xf] }
 0x290   :  { %3413 = vst [vmem:[#allocation2 + $0x58] sm:$0xf] %v3397_v39  ;;  %3414 = vst [vmem:[#allocation2 + $0x7c] sm:$0xf] %v3398_v58  ;;  %v3039_v54 = vrot.slane %v3037_v30, 6  ;;  %v3042_v47 = vrot.slane %v3040_v23, 7 }
 0x291   :  { %v3161_v43 = vrot.slane %v3093_v11, 7  ;;  %v3345_v40 = vrot.slane %v8991_v16, 4  ;;  %v4156_v26 = vld [vmem:[#allocation2 + $0x1b0] sm:$0xff]  ;;  %v3033_v31 = vor.u32 %v3032_v34, %v3029_v10  ;;  %v3159_v3 = vsel %vm7589_vm8, %v3157_v57, %v3158_v17  ;;  %v3427_v1 = vld [vmem:[#allocation3 + $0x8] sm:$0xf] }
 0x292   :  { %v3160_v24 = vrot.slane %v3158_v17, 4  ;;  %v3347_v20 = vshrl.u32 %v3210_v37, 16  ;;  %v3043_v32 = vor.u32 %v3042_v47, %v3039_v54  ;;  %3193 = vst [vmem:[#allocation2 + $0x200] sm:$0xf] %v3159_v3  ;;  %v3350_v18 = vshll.u32 %v3210_v37, 16  ;;  %v4161_v33 = vld [vmem:[#allocation2 + $0x1d4] sm:$0xff] }
 0x293   :  { %v3356_v15 = vshrl.u32 %v3211_v38, 16  ;;  %v3359_v61 = vshll.u32 %v3211_v38, 16  ;;  %v3428_v52 = vld [vmem:[#allocation3 + $0xc] sm:$0xf]  ;;  %v7320_v49 = vld [vmem:[#allocation2 + $0x1b4] ss:$36 sps:$4 sm:$0xff]   ;;  %v3034_v4 = vsel %vm7574_vm7, %v3025_v55, %v3033_v31  ;;  %v6165_v59 = vcombine.low %v4156_v26, %v4161_v33 }
 0x294   :  { %v3035_v16 = vrot.slane %v3033_v31, 4  ;;  %v3162_v11 = vsel %vm7589_vm8, %v3160_v24, %v3161_v43  ;;  %v3349_v7 = vrot.slane %v3347_v20, 7  ;;  %v9013_v25 = vld [vmem:[#allocation3 + $0x10] sm:$0xf]  ;;  %v3643_v56 = vld [vmem:[#allocation3 + $0xc] sm:$0xe]  ;;  %5200 = vmatprep.mubr.bf16.mxu1 %v7320_v49 }
 0x295   :  { %3075 = vst [vmem:[#allocation2 + $0x1fc] sm:$0xf] %v3034_v4  ;;  %3194 = vst [vmem:[#allocation2 + $0x224] sm:$0xf] %v3162_v11  ;;  %v3358_v9 = vrot.slane %v3356_v15, 7  ;;  %v3448_v37 = vshrl.u32 %v3427_v1, 16  ;;  %5201 = vmatmul.mubr.bf16.gmra.mxu1 %v6165_v59 }
 0x296   :  { %v3451_v41 = vshll.u32 %v3427_v1, 16  ;;  %v3644_v62 = vld [vmem:[#allocation3 + $0x10] sm:$0xf]  ;;  %v9015_v13 = vld [vmem:[#allocation3 + $0x14] sm:$0xf]  ;;  %v3044_v55 = vsel %vm7574_vm7, %v3035_v16, %v3043_v32  ;;  %v3352_v36 = vor.u32 %v3350_v18, %v3349_v7  ;;  %v3354_v2 = vrot.slane %v3349_v7, 4 }
 0x297   :  { %v3457_v45 = vshll.u32 %v3428_v52, 16  ;;  %v3761_v14 = vld [vmem:[#allocation3 + $0xc] sm:$0xe]  ;;  %v3762_v30 = vld [vmem:[#allocation3 + $0x10] sm:$0xf]  ;;  %v3361_v58 = vor.u32 %v3359_v61, %v3358_v9  ;;  %v3450_v10 = vrot.slane %v3448_v37, 4 }
 0x298   :  { %v7322_v23 = vld [vmem:[#allocation2 + $0x1bc] ss:$36 sps:$4 sm:$0xff]   ;;  %3076 = vst [vmem:[#allocation2 + $0x220] sm:$0xf] %v3044_v55  ;;  %v3353_v34 = vsel %vm8679_vm1, %v3345_v40, %v3352_v36  ;;  %v3453_v57 = vrot.slane %v3451_v41, 5  ;;  %v3461_v38 = vshrl.u32 %v3428_v52, 16 }
 0x299   :  { %v7328_v39 = vld [vmem:[#allocation2 + $0x1b8] ss:$36 sps:$4 sm:$0xff]   ;;  %v3459_v17 = vrot.slane %v3457_v45, 5  ;;  %5297 = vmatprep.mubr.bf16.mxu0 %v7322_v23  ;;  %v3362_v42 = vsel %vm8679_vm1, %v3354_v2, %v3361_v58  ;;  %3393 = vst [vmem:[#allocation2 + $0x204] sm:$0xf] %v3353_v34  ;;  %v3467_v47 = vshll.u32 %v9013_v25, 16 }
 0x29a   :  { %v3399_v54 = vld [vmem:[#allocation3 + $0x18] sm:$0xf]  ;;  %v3471_v43 = vshrl.u32 %v9013_v25, 16  ;;  %v6109_v26 = vrot.slane %v3643_v56, 9  ;;  %v3400_v31 = vld [vmem:[#allocation3 + $0x1c] sm:$0xf]  ;;  %5298 = vmatmul.mubr.bf16.gmra.mxu0 %v7328_v39  ;;  %v3454_v3 = vor.u32 %v3453_v57, %v3450_v10 }
 0x29b   :  { %3415 = vst [vmem:[#allocation2 + $0xa0] sm:$0xf] %v3399_v54  ;;  %3394 = vst [vmem:[#allocation2 + $0x228] sm:$0xf] %v3362_v42  ;;  %v3463_v40 = vrot.slane %v3461_v38, 4  ;;  %v3682_v24 = vrot.slane %v3644_v62, 5 }
 0x29c   :  { %v3685_v20 = vrot.slane %v9015_v13, 5  ;;  %3416 = vst [vmem:[#allocation2 + $0xc4] sm:$0xf] %v3400_v31  ;;  %v3469_v1 = vrot.slane %v3467_v47, 5  ;;  %v3763_v32 = vld [vmem:[#allocation3 + $0x14] sm:$0xf] }
 0x29d   :  { %v3782_v18 = vshrl.u32 %v3761_v14, 16  ;;  %v3785_v15 = vshll.u32 %v3761_v14, 16  ;;  %v3791_v61 = vshrl.u32 %v3762_v30, 16  ;;  %v4166_v52 = vld [vmem:[#allocation2 + $0x1f8] sm:$0xff]  ;;  %v3455_v33 = vrot.slane %v3454_v3, 4 }
 0x29e   :  { %v3464_v49 = vor.u32 %v3463_v40, %v3459_v17  ;;  %v3683_v16 = vsel %vm8097_vm13, %v6109_v26, %v3682_v24  ;;  %v3684_v11 = vrot.slane %v3682_v24, 4  ;;  %v3794_v59 = vshll.u32 %v3762_v30, 16  ;;  %v3430_v9 = vld [vmem:[#allocation3 + $0x14] sm:$0xf]  ;;  %v9040_v30 = vld [vmem:[#allocation3 + $0x18] sm:$0xf] }
 0x29f   :  { %3745 = vst [vmem:[#allocation2 + $0x18] sm:$0xf] %v3683_v16  ;;  %v3784_v7 = vrot.slane %v3782_v18, 5  ;;  %v3787_v25 = vrot.slane %v3785_v15, 6  ;;  %v3793_v56 = vrot.slane %v3791_v61, 5  ;;  %v4171_v37 = vld [vmem:[#allocation2 + $0x21c] sm:$0xff]  ;;  %v3460_v62 = vsel %vm9028_vm4, %v3455_v33, %v3459_v17 }
 0x2a0   :  { %v7331_v41 = vld [vmem:[#allocation2 + $0x1fc] ss:$36 sps:$4 sm:$0xff]   ;;  %v3465_v55 = vrot.slane %v3464_v49, 4  ;;  %v3686_v36 = vsel %vm8097_vm13, %v3684_v11, %v3685_v20  ;;  %v3801_v2 = vshrl.u32 %v3763_v32, 16  ;;  %v6174_v45 = vcombine.low %v4166_v52, %v4171_v37  ;;  %3627 = vst [vmem:[#allocation2 + $0x14] sm:$0xf] %v3460_v62 }
 0x2a1   :  { %3746 = vst [vmem:[#allocation2 + $0x3c] sm:$0xf] %v3686_v36  ;;  %v3788_v14 = vor.u32 %v3787_v25, %v3784_v7  ;;  %v3796_v23 = vrot.slane %v3794_v59, 6  ;;  %v3804_v39 = vshll.u32 %v3763_v32, 16  ;;  %5208 = vmatprep.mubr.bf16.mxu1 %v7331_v41  ;;  %v3473_v34 = vrot.slane %v3471_v43, 4 }
 0x2a2   :  { %v3470_v58 = vsel %vm9028_vm4, %v3465_v55, %v3469_v1  ;;  %v3803_v10 = vrot.slane %v3801_v2, 5  ;;  %v3477_v57 = vshll.u32 %v3430_v9, 16  ;;  %v3646_v17 = vld [vmem:[#allocation3 + $0x18] sm:$0xf]  ;;  %v9044_v38 = vld [vmem:[#allocation3 + $0x1c] sm:$0xf]  ;;  %5209 = vmatmul.mubr.bf16.gmra.mxu1 %v6174_v45 }
 0x2a3   :  { %v3764_v54 = vld [vmem:[#allocation3 + $0x18] sm:$0xf]  ;;  %v3401_v42 = vld [vmem:[#allocation3 + $0x20] sm:$0xf]  ;;  %v7333_v47 = vld [vmem:[#allocation2 + $0x204] ss:$36 sps:$4 sm:$0xff]   ;;  %v3797_v3 = vor.u32 %v3796_v23, %v3793_v56  ;;  %v3474_v24 = vor.u32 %v3473_v34, %v3469_v1 }
 0x2a4   :  { %v7339_v26 = vld [vmem:[#allocation2 + $0x200] ss:$36 sps:$4 sm:$0xff]   ;;  %3628 = vst [vmem:[#allocation2 + $0x38] sm:$0xf] %v3470_v58  ;;  %v3789_v31 = vrot.slane %v3788_v14, 4  ;;  %v3806_v40 = vrot.slane %v3804_v39, 6  ;;  %5305 = vmatprep.mubr.bf16.mxu0 %v7333_v47 }
 0x2a5   :  { %3417 = vst [vmem:[#allocation2 + $0xe8] sm:$0xf] %v3401_v42  ;;  %v3479_v32 = vrot.slane %v3477_v57, 5  ;;  %v3481_v18 = vshrl.u32 %v3430_v9, 16  ;;  %v3402_v15 = vld [vmem:[#allocation3 + $0x24] sm:$0xf]  ;;  %5306 = vmatmul.mubr.bf16.gmra.mxu0 %v7339_v26 }
 0x2a6   :  { %v3798_v61 = vsel %vm8103_vm14, %v3789_v31, %v3797_v3  ;;  %v3799_v52 = vrot.slane %v3797_v3, 4  ;;  %v3487_v33 = vshll.u32 %v9040_v30, 16  ;;  %v3491_v49 = vshrl.u32 %v9040_v30, 16  ;;  %3418 = vst [vmem:[#allocation2 + $0x10c] sm:$0xf] %v3402_v15 }
 0x2a7   :  { %v3807_v16 = vor.u32 %v3806_v40, %v3803_v10  ;;  %3965 = vst [vmem:[#allocation2 + $0x1c] sm:$0xf] %v3798_v61  ;;  %v3475_v11 = vrot.slane %v3474_v24, 4  ;;  %v3483_v7 = vrot.slane %v3481_v18, 4  ;;  %v3687_v1 = vrot.slane %v3685_v20, 4 }
 0x2a8   :  { %v3489_v25 = vrot.slane %v3487_v33, 5  ;;  %v3688_v56 = vrot.slane %v3646_v17, 5  ;;  %v3691_v59 = vrot.slane %v9044_v38, 5  ;;  %v3811_v9 = vshrl.u32 %v3764_v54, 16  ;;  %v3765_v55 = vld [vmem:[#allocation3 + $0x1c] sm:$0xf] }
 0x2a9   :  { %v3808_v37 = vsel %vm8103_vm14, %v3799_v52, %v3807_v16  ;;  %v3480_v41 = vsel %vm9028_vm4, %v3475_v11, %v3479_v32  ;;  %v3484_v62 = vor.u32 %v3483_v7, %v3479_v32  ;;  %v3809_v36 = vrot.slane %v3807_v16, 4  ;;  %v3432_v2 = vld [vmem:[#allocation3 + $0x1c] sm:$0xf]  ;;  %v9059_v23 = vld [vmem:[#allocation3 + $0x20] sm:$0xf]  ;;  %v7358_v38 = vld [vmem:[%s9599_s3 + $0x230] sm:$0xff]  }
 0x2aa   :  { %3966 = vst [vmem:[#allocation2 + $0x40] sm:$0xf] %v3808_v37  ;;  %3629 = vst [vmem:[#allocation2 + $0x5c] sm:$0xf] %v3480_v41  ;;  %v3689_v13 = vsel %vm8097_vm13, %v3687_v1, %v3688_v56  ;;  %v3690_v20 = vrot.slane %v3688_v56, 4  ;;  %v3813_v45 = vrot.slane %v3811_v9, 5 }
 0x2ab   :  { %v3814_v14 = vshll.u32 %v3764_v54, 16  ;;  %v7343_v39 = vld [vmem:[#allocation2 + $0x10] ss:$36 sps:$4 sm:$0xff]   ;;  %v3485_v58 = vrot.slane %v3484_v62, 4  ;;  %3747 = vst [vmem:[#allocation2 + $0x60] sm:$0xf] %v3689_v13 }
 0x2ac   :  { %v7345_v30 = vld [vmem:[#allocation2 + $0x14] ss:$36 sps:$4 sm:$0xff]   ;;  %v3692_v10 = vsel %vm8097_vm13, %v3690_v20, %v3691_v59  ;;  %v3821_v57 = vshrl.u32 %v3765_v55, 16  ;;  %v3824_v17 = vshll.u32 %v3765_v55, 16  ;;  %v3403_v42 = vld [vmem:[#allocation3 + $0x28] sm:$0xf] }
 0x2ad   :  { %v3816_v34 = vrot.slane %v3814_v14, 6  ;;  %5346 = vmatprep.mubr.bf16.mxu1 %v7345_v30  ;;  %v3490_v54 = vsel %vm9028_vm4, %v3485_v58, %v3489_v25  ;;  %3748 = vst [vmem:[#allocation2 + $0x84] sm:$0xf] %v3692_v10  ;;  %v3493_v47 = vrot.slane %v3491_v49, 4  ;;  %v3497_v26 = vshll.u32 %v3432_v2, 16  ;;  %v7364_v9 = vld [vmem:[%s9599_s3 + $0x228] sm:$0xff]  }
 0x2ae   :  { %v3501_v31 = vshrl.u32 %v3432_v2, 16  ;;  %v3404_v3 = vld [vmem:[#allocation3 + $0x2c] sm:$0xf]  ;;  %3419 = vst [vmem:[#allocation2 + $0x130] sm:$0xf] %v3403_v42  ;;  %5347 = vmatmul.mubr.bf16.vlgmr.msra.gmra.mxu1 %v7343_v39  ;;  %v3823_v24 = vrot.slane %v3821_v57, 5 }
 0x2af   :  { %3630 = vst [vmem:[#allocation2 + $0x80] sm:$0xf] %v3490_v54  ;;  %v3817_v40 = vor.u32 %v3816_v34, %v3813_v45  ;;  %v3826_v32 = vrot.slane %v3824_v17, 6  ;;  %v3507_v18 = vshll.u32 %v9059_v23, 16  ;;  %3420 = vst [vmem:[#allocation2 + $0x154] sm:$0xf] %v3404_v3  ;;  %7040 = vmatpush3.bf16.msra.mxu1 %v8926_v63  ;;  %v3494_v15 = vor.u32 %v3493_v47, %v3489_v25 }
 0x2b0   :  { %v3499_v61 = vrot.slane %v3497_v26, 5  ;;  %v3503_v52 = vrot.slane %v3501_v31, 4  ;;  %v3648_v33 = vld [vmem:[#allocation3 + $0x20] sm:$0xf]  ;;  %v9070_v16 = vld [vmem:[#allocation3 + $0x24] sm:$0xf]  ;;  %7041 = vmatprep.subr.bf16.mxu1 %v7358_v38 }
 0x2b1   :  { %v3818_v49 = vsel %vm8103_vm14, %v3809_v36, %v3817_v40  ;;  %v3819_v11 = vrot.slane %v3817_v40, 4  ;;  %v9074_v7 = vor.u32 %v3826_v32, %v3823_v24  ;;  %v3766_v1 = vld [vmem:[#allocation3 + $0x20] sm:$0xf]  ;;  %v3767_v56 = vld [vmem:[#allocation3 + $0x24] sm:$0xf]  ;;  %v3495_v25 = vrot.slane %v3494_v15, 4 }
 0x2b2   :  { %v7349_v63 = vld [vmem:[#allocation2 + $0x1c] ss:$36 sps:$4 sm:$0xff]   ;;  %3967 = vst [vmem:[#allocation2 + $0x64] sm:$0xf] %v3818_v49  ;;  %v3504_v37 = vor.u32 %v3503_v52, %v3499_v61  ;;  %v3509_v41 = vrot.slane %v3507_v18, 5  ;;  %v3511_v62 = vshrl.u32 %v9059_v23, 16 }
 0x2b3   :  { %v7347_v55 = vld [vmem:[#allocation2 + $0x18] ss:$36 sps:$4 sm:$0xff]   ;;  %v3828_v36 = vsel %vm8103_vm14, %v3819_v11, %v9074_v7  ;;  %v3693_v2 = vrot.slane %v3691_v59, 4  ;;  %v3694_v13 = vrot.slane %v3648_v33, 5  ;;  %v3697_v20 = vrot.slane %v9070_v16, 5  ;;  %5443 = vmatprep.mubr.bf16.mxu0 %v7349_v63  ;;  %7042 = vmatpush3.bf16.msra.mxu1 %v7358_v38  ;;  %v7370_v42 = vld [vmem:[%s9599_s3 + $0x220] sm:$0xff]  }
 0x2b4   :  { %v3434_v45 = vld [vmem:[#allocation3 + $0x24] sm:$0xf]  ;;  %v4108_v14 = vld [vmem:[#allocation2 + $0x58] sm:$0xff]  ;;  %3968 = vst [vmem:[#allocation2 + $0x88] sm:$0xf] %v3828_v36  ;;  %v3500_v39 = vsel %vm9028_vm4, %v3495_v25, %v3499_v61  ;;  %v3505_v30 = vrot.slane %v3504_v37, 4  ;;  %5444 = vmatmul.mubr.bf16.vlgmr.msra.gmra.mxu0 %v7347_v55  ;;  %7043 = vmatprep.subr.bf16.mxu1 %v7364_v9 }
 0x2b5   :  { %v3829_v58 = vrot.slane %v9074_v7, 4  ;;  %v3831_v23 = vshrl.u32 %v3766_v1, 16  ;;  %v9087_v10 = vld [vmem:[#allocation3 + $0x28] sm:$0xf]  ;;  %3631 = vst [vmem:[#allocation2 + $0xa4] sm:$0xf] %v3500_v39  ;;  %v3695_v59 = vsel %vm8097_vm13, %v3693_v2, %v3694_v13 }
 0x2b6   :  { %v3696_v34 = vrot.slane %v3694_v13, 4  ;;  %v3834_v57 = vshll.u32 %v3766_v1, 16  ;;  %v3841_v17 = vshrl.u32 %v3767_v56, 16  ;;  %v3405_v54 = vld [vmem:[#allocation3 + $0x30] sm:$0xf]  ;;  %v4113_v47 = vld [vmem:[#allocation2 + $0x7c] sm:$0xff]  ;;  %v3510_v38 = vsel %vm9028_vm4, %v3505_v30, %v3509_v41 }
 0x2b7   :  { %v7353_v26 = vld [vmem:[#allocation2 + $0x5c] ss:$36 sps:$4 sm:$0xff]   ;;  %3749 = vst [vmem:[#allocation2 + $0xa8] sm:$0xf] %v3695_v59  ;;  %v3833_v31 = vrot.slane %v3831_v23, 5  ;;  %v3844_v3 = vshll.u32 %v3767_v56, 16  ;;  %v6124_v24 = vcombine.low %v4108_v14, %v4113_v47  ;;  %7044 = vmatpush3.bf16.msra.mxu1 %v7364_v9 }
 0x2b8   :  { %v3513_v40 = vrot.slane %v3511_v62, 4  ;;  %3421 = vst [vmem:[#allocation2 + $0x178] sm:$0xf] %v3405_v54  ;;  %3632 = vst [vmem:[#allocation2 + $0xc8] sm:$0xf] %v3510_v38  ;;  %v3698_v32 = vsel %vm8097_vm13, %v3696_v34, %v3697_v20  ;;  %v3836_v18 = vrot.slane %v3834_v57, 6  ;;  %5354 = vmatprep.mubr.bf16.mxu1 %v7353_v26  ;;  %7045 = vmatprep.subr.bf16.mxu1 %v7370_v42 }
 0x2b9   :  { %v3843_v15 = vrot.slane %v3841_v17, 5  ;;  %v3650_v61 = vld [vmem:[#allocation3 + $0x28] sm:$0xf]  ;;  %v3406_v52 = vld [vmem:[#allocation3 + $0x34] sm:$0xf]  ;;  %v3846_v33 = vrot.slane %v3844_v3, 6  ;;  %5355 = vmatmul.mubr.bf16.gmra.mxu1 %v6124_v24 }
 0x2ba   :  { %3750 = vst [vmem:[#allocation2 + $0xcc] sm:$0xf] %v3698_v32  ;;  %v3514_v16 = vor.u32 %v3513_v40, %v3509_v41  ;;  %v3517_v49 = vshll.u32 %v3434_v45, 16  ;;  %v3521_v11 = vshrl.u32 %v3434_v45, 16  ;;  %v9098_v7 = vld [vmem:[#allocation3 + $0x2c] sm:$0xf]  ;;  %v3837_v1 = vor.u32 %v3836_v18, %v3833_v31 }
 0x2bb   :  { %3422 = vst [vmem:[#allocation2 + $0x19c] sm:$0xf] %v3406_v52  ;;  %v3527_v56 = vshll.u32 %v9087_v10, 16  ;;  %v3699_v63 = vrot.slane %v3697_v20, 4  ;;  %v3768_v25 = vld [vmem:[#allocation3 + $0x28] sm:$0xf]  ;;  %v9104_v62 = vor.u32 %v3846_v33, %v3843_v15  ;;  %7046 = vmatpush3.bf16.msra.mxu1 %v7370_v42 }
 0x2bc   :  { %v7377_v37 = vld [vmem:[%s9599_s3 + $0x218] sm:$0xff]   ;;  %v3515_v41 = vrot.slane %v3514_v16, 4  ;;  %v3519_v55 = vrot.slane %v3517_v49, 5  ;;  %v3523_v36 = vrot.slane %v3521_v11, 4  ;;  %v3769_v2 = vld [vmem:[#allocation3 + $0x2c] sm:$0xf]  ;;  %v3838_v9 = vsel %vm8103_vm14, %v3829_v58, %v3837_v1 }
 0x2bd   :  { %v7357_v13 = vld [vmem:[#allocation2 + $0x64] ss:$36 sps:$4 sm:$0xff]   ;;  %v3839_v45 = vrot.slane %v3837_v1, 4  ;;  %v3531_v14 = vshrl.u32 %v9087_v10, 16  ;;  %3969 = vst [vmem:[#allocation2 + $0xac] sm:$0xf] %v3838_v9  ;;  %7047 = vmatprep.subr.bf16.mxu1 %v7377_v37 }
 0x2be   :  { %v7355_v20 = vld [vmem:[#allocation2 + $0x60] ss:$36 sps:$4 sm:$0xff]   ;;  %v3520_v30 = vsel %vm9028_vm4, %v3515_v41, %v3519_v55  ;;  %v3524_v23 = vor.u32 %v3523_v36, %v3519_v55  ;;  %v3529_v59 = vrot.slane %v3527_v56, 5  ;;  %v3700_v34 = vrot.slane %v3650_v61, 5  ;;  %v3436_v57 = vld [vmem:[#allocation3 + $0x2c] sm:$0xf]  ;;  %5451 = vmatprep.mubr.bf16.mxu0 %v7357_v13 }
 0x2bf   :  { %v4118_v39 = vld [vmem:[#allocation2 + $0xa0] sm:$0xff]  ;;  %v3848_v17 = vsel %vm8103_vm14, %v3839_v45, %v9104_v62  ;;  %3633 = vst [vmem:[#allocation2 + $0xec] sm:$0xf] %v3520_v30  ;;  %v3703_v58 = vrot.slane %v9098_v7, 5  ;;  %v3849_v10 = vrot.slane %v9104_v62, 4  ;;  %v3851_v54 = vshrl.u32 %v3768_v25, 16  ;;  %5452 = vmatmul.mubr.bf16.gmra.mxu0 %v7355_v20  ;;  %7048 = vmatpush3.bf16.msra.mxu1 %v7377_v37 }
 0x2c0   :  { %v9116_v47 = vld [vmem:[#allocation3 + $0x30] sm:$0xf]  ;;  %v4123_v42 = vld [vmem:[#allocation2 + $0xc4] sm:$0xff]  ;;  %3970 = vst [vmem:[#allocation2 + $0xd0] sm:$0xf] %v3848_v17  ;;  %v3525_v31 = vrot.slane %v3524_v23, 4  ;;  %v3701_v3 = vsel %vm8097_vm13, %v3699_v63, %v3700_v34 }
 0x2c1   :  { %v7384_v26 = vld [vmem:[%s9599_s3 + $0x210] sm:$0xff]   ;;  %v7359_v38 = vld [vmem:[#allocation2 + $0xa4] ss:$36 sps:$4 sm:$0xff]   ;;  %v3702_v40 = vrot.slane %v3700_v34, 4  ;;  %v3854_v24 = vshll.u32 %v3768_v25, 16  ;;  %v6133_v32 = vcombine.low %v4118_v39, %v4123_v42  ;;  %v3853_v18 = vrot.slane %v3851_v54, 5 }
 0x2c2   :  { %3751 = vst [vmem:[#allocation2 + $0xf0] sm:$0xf] %v3701_v3  ;;  %v3861_v15 = vshrl.u32 %v3769_v2, 16  ;;  %v3864_v61 = vshll.u32 %v3769_v2, 16  ;;  %v3407_v52 = vld [vmem:[#allocation3 + $0x38] sm:$0xf]  ;;  %5362 = vmatprep.mubr.bf16.mxu1 %v7359_v38  ;;  %v3530_v33 = vsel %vm9028_vm4, %v3525_v31, %v3529_v59  ;;  %7049 = vmatprep.subr.bf16.mxu1 %v7384_v26 }
 0x2c3   :  { %v3704_v16 = vsel %vm8097_vm13, %v3702_v40, %v3703_v58  ;;  %v3856_v49 = vrot.slane %v3854_v24, 6  ;;  %v3533_v11 = vrot.slane %v3531_v14, 4  ;;  %v3408_v7 = vld [vmem:[#allocation3 + $0x3c] sm:$0xf]  ;;  %3423 = vst [vmem:[#allocation2 + $0x1c0] sm:$0xf] %v3407_v52  ;;  %5363 = vmatmul.mubr.bf16.gmra.mxu1 %v6133_v32 }
 0x2c4   :  { %3634 = vst [vmem:[#allocation2 + $0x110] sm:$0xf] %v3530_v33  ;;  %3752 = vst [vmem:[#allocation2 + $0x114] sm:$0xf] %v3704_v16  ;;  %v3863_v1 = vrot.slane %v3861_v15, 5  ;;  %v3866_v56 = vrot.slane %v3864_v61, 6  ;;  %7050 = vmatpush3.bf16.msra.mxu1 %v7384_v26 }
 0x2c5   :  { %v3537_v63 = vshll.u32 %v3436_v57, 16  ;;  %v3541_v25 = vshrl.u32 %v3436_v57, 16  ;;  %3424 = vst [vmem:[#allocation2 + $0x1e4] sm:$0xf] %v3408_v7  ;;  %v7391_v62 = vld [vmem:[%s9599_s3 + $0x208] sm:$0xff]   ;;  %v3857_v41 = vor.u32 %v3856_v49, %v3853_v18  ;;  %v3534_v55 = vor.u32 %v3533_v11, %v3529_v59  ;;  %v7398_v30 = vld [vmem:[%s9599_s3 + $0x200] sm:$0xff]  }
 0x2c6   :  { %v3547_v36 = vshll.u32 %v9116_v47, 16  ;;  %v3551_v37 = vshrl.u32 %v9116_v47, 16  ;;  %v3652_v2 = vld [vmem:[#allocation3 + $0x30] sm:$0xf]  ;;  %v9132_v13 = vld [vmem:[#allocation3 + $0x34] sm:$0xf]  ;;  %v9134_v9 = vor.u32 %v3866_v56, %v3863_v1  ;;  %7051 = vmatprep.subr.bf16.mxu1 %v7391_v62 }
 0x2c7   :  { %v3539_v45 = vrot.slane %v3537_v63, 5  ;;  %v3543_v14 = vrot.slane %v3541_v25, 4  ;;  %v3705_v20 = vrot.slane %v3703_v58, 4  ;;  %v3770_v39 = vld [vmem:[#allocation3 + $0x30] sm:$0xf]  ;;  %v4128_v23 = vld [vmem:[#allocation2 + $0xe8] sm:$0xff]  ;;  %v3858_v59 = vsel %vm8103_vm14, %v3849_v10, %v3857_v41 }
 0x2c8   :  { %v3859_v34 = vrot.slane %v3857_v41, 4  ;;  %v3535_v57 = vrot.slane %v3534_v55, 4  ;;  %v9141_v17 = vrot.slane %v3547_v36, 5  ;;  %v3771_v54 = vld [vmem:[#allocation3 + $0x34] sm:$0xf]  ;;  %v3706_v58 = vrot.slane %v3652_v2, 5  ;;  %7052 = vmatpush3.bf16.msra.mxu1 %v7391_v62 }
 0x2c9   :  { %v7361_v47 = vld [vmem:[#allocation2 + $0xa8] ss:$36 sps:$4 sm:$0xff]   ;;  %3971 = vst [vmem:[#allocation2 + $0xf4] sm:$0xf] %v3858_v59  ;;  %v3544_v38 = vor.u32 %v3543_v14, %v3539_v45  ;;  %v3709_v10 = vrot.slane %v9132_v13, 5  ;;  %v3869_v40 = vrot.slane %v9134_v9, 4  ;;  %7053 = vmatprep.subr.bf16.mxu1 %v7398_v30 }
 0x2ca   :  { %v7363_v42 = vld [vmem:[#allocation2 + $0xac] ss:$36 sps:$4 sm:$0xff]   ;;  %v3868_v31 = vsel %vm8103_vm14, %v3859_v34, %v9134_v9  ;;  %v3540_v3 = vsel %vm9028_vm4, %v3535_v57, %v3539_v45  ;;  %v3409_v24 = vld [vmem:[#allocation3 + $0x40] sm:$0xf]  ;;  %v3410_v32 = vld [vmem:[#allocation3 + $0x44] sm:$0xf]  ;;  %v3707_v18 = vsel %vm8097_vm13, %v3705_v20, %v3706_v58 }
 0x2cb   :  { %5459 = vmatprep.mubr.bf16.mxu0 %v7363_v42  ;;  %3972 = vst [vmem:[#allocation2 + $0x118] sm:$0xf] %v3868_v31  ;;  %v3545_v26 = vrot.slane %v3544_v38, 4  ;;  %3635 = vst [vmem:[#allocation2 + $0x134] sm:$0xf] %v3540_v3  ;;  %v3708_v15 = vrot.slane %v3706_v58, 4 }
 0x2cc   :  { %v3871_v61 = vshrl.u32 %v3770_v39, 16  ;;  %v3438_v52 = vld [vmem:[#allocation3 + $0x34] sm:$0xf]  ;;  %3425 = vst [vmem:[#allocation2 + $0x208] sm:$0xf] %v3409_v24  ;;  %5460 = vmatmul.mubr.bf16.gmra.mxu0 %v7361_v47  ;;  %v4133_v33 = vld [vmem:[#allocation2 + $0x10c] sm:$0xff]  ;;  %7054 = vmatpush3.bf16.msra.mxu1 %v7398_v30 }
 0x2cd   :  { %3426 = vst [vmem:[#allocation2 + $0x22c] sm:$0xf] %v3410_v32  ;;  %v7365_v16 = vld [vmem:[#allocation2 + $0xec] ss:$36 sps:$4 sm:$0xff]   ;;  %3753 = vst [vmem:[#allocation2 + $0x138] sm:$0xf] %v3707_v18  ;;  %v6142_v1 = vcombine.low %v4128_v23, %v4133_v33  ;;  %v3550_v56 = vsel %vm9028_vm4, %v3545_v26, %v9141_v17  ;;  %v3710_v63 = vsel %vm8097_vm13, %v3708_v15, %v3709_v10 }
 0x2ce   :  { %v3874_v49 = vshll.u32 %v3770_v39, 16  ;;  %v3881_v11 = vshrl.u32 %v3771_v54, 16  ;;  %v3884_v7 = vshll.u32 %v3771_v54, 16  ;;  %v3873_v25 = vrot.slane %v3871_v61, 5  ;;  %v3439_v41 = vld [vmem:[#allocation3 + $0x38] sm:$0xf]  ;;  %5370 = vmatprep.mubr.bf16.mxu1 %v7365_v16 }
 0x2cf   :  { %3636 = vst [vmem:[#allocation2 + $0x158] sm:$0xf] %v3550_v56  ;;  %3754 = vst [vmem:[#allocation2 + $0x15c] sm:$0xf] %v3710_v63  ;;  %v3553_v13 = vrot.slane %v3551_v37, 4  ;;  %5371 = vmatmul.mubr.bf16.gmra.mxu1 %v6142_v1  ;;  %v3557_v62 = vshll.u32 %v3438_v52, 16 }
 0x2d0   :  { %v3876_v55 = vrot.slane %v3874_v49, 6  ;;  %v3883_v36 = vrot.slane %v3881_v11, 5  ;;  %v3886_v2 = vrot.slane %v3884_v7, 6  ;;  %v3654_v9 = vld [vmem:[#allocation3 + $0x38] sm:$0xf]  ;;  %v3561_v45 = vshrl.u32 %v3438_v52, 16 }
 0x2d1   :  { %v3655_v14 = vld [vmem:[#allocation3 + $0x3c] sm:$0xf]  ;;  %v3554_v39 = vor.u32 %v3553_v13, %v9141_v17  ;;  %v3567_v23 = vshll.u32 %v3439_v41, 16  ;;  %v3711_v59 = vrot.slane %v3709_v10, 4  ;;  %v3772_v34 = vld [vmem:[#allocation3 + $0x38] sm:$0xf] }
 0x2d2   :  { %v3877_v20 = vor.u32 %v3876_v55, %v3873_v25  ;;  %v9158_v57 = vor.u32 %v3886_v2, %v3883_v36  ;;  %v3559_v54 = vrot.slane %v3557_v62, 5  ;;  %v3563_v47 = vrot.slane %v3561_v45, 4  ;;  %v3773_v38 = vld [vmem:[#allocation3 + $0x3c] sm:$0xf]  ;;  %v7369_v58 = vld [vmem:[#allocation2 + $0xf4] ss:$36 sps:$4 sm:$0xff]  }
 0x2d3   :  { %v3712_v42 = vrot.slane %v3654_v9, 5  ;;  %v3571_v3 = vshrl.u32 %v3439_v41, 16  ;;  %v7367_v24 = vld [vmem:[#allocation2 + $0xf0] ss:$36 sps:$4 sm:$0xff]   ;;  %v3555_v32 = vrot.slane %v3554_v39, 4  ;;  %5467 = vmatprep.mubr.bf16.mxu0 %v7369_v58  ;;  %v3715_v18 = vrot.slane %v3655_v14, 5 }
 0x2d4   :  { %v3878_v37 = vsel %vm8103_vm14, %v3869_v40, %v3877_v20  ;;  %v3879_v31 = vrot.slane %v3877_v20, 4  ;;  %v3564_v17 = vor.u32 %v3563_v47, %v3559_v54  ;;  %v3891_v15 = vshrl.u32 %v3772_v34, 16  ;;  %v3440_v61 = vld [vmem:[#allocation3 + $0x3c] sm:$0xf]  ;;  %v9167_v40 = vld [vmem:[#allocation3 + $0x40] sm:$0xf]  ;;  %5468 = vmatmul.mubr.bf16.gmra.mxu0 %v7367_v24 }
 0x2d5   :  { %3973 = vst [vmem:[#allocation2 + $0x13c] sm:$0xf] %v3878_v37  ;;  %v3713_v10 = vsel %vm8097_vm13, %v3711_v59, %v3712_v42  ;;  %v3714_v30 = vrot.slane %v3712_v42, 4  ;;  %v3560_v33 = vsel %vm9028_vm4, %v3555_v32, %v3559_v54  ;;  %v3569_v49 = vrot.slane %v3567_v23, 5  ;;  %v7371_v7 = vld [vmem:[#allocation2 + $0x130] ss:$36 sps:$4 sm:$0xff]  }
 0x2d6   :  { %v3888_v26 = vsel %vm8103_vm14, %v3879_v31, %v9158_v57  ;;  %3755 = vst [vmem:[#allocation2 + $0x180] sm:$0xf] %v3713_v10  ;;  %v7373_v52 = vld [vmem:[#allocation2 + $0x134] ss:$36 sps:$4 sm:$0xff]   ;;  %v3565_v16 = vrot.slane %v3564_v17, 4  ;;  %v3889_v11 = vrot.slane %v9158_v57, 4 }
 0x2d7   :  { %3974 = vst [vmem:[#allocation2 + $0x160] sm:$0xf] %v3888_v26  ;;  %3637 = vst [vmem:[#allocation2 + $0x17c] sm:$0xf] %v3560_v33  ;;  %v3716_v1 = vsel %vm8097_vm13, %v3714_v30, %v3715_v18  ;;  %v3893_v56 = vrot.slane %v3891_v15, 5  ;;  %v3894_v63 = vshll.u32 %v3772_v34, 16  ;;  %5378 = vmatprep.mubr.bf16.mxu1 %v7373_v52 }
 0x2d8   :  { %v3901_v25 = vshrl.u32 %v3773_v38, 16  ;;  %v3570_v41 = vsel %vm9028_vm4, %v3565_v16, %v3569_v49  ;;  %3756 = vst [vmem:[#allocation2 + $0x1a4] sm:$0xf] %v3716_v1  ;;  %v3904_v55 = vshll.u32 %v3773_v38, 16  ;;  %v3573_v36 = vrot.slane %v3571_v3, 4  ;;  %5379 = vmatmul.mubr.bf16.gmra.mxu1 %v7371_v7 }
 0x2d9   :  { %v3577_v2 = vshll.u32 %v3440_v61, 16  ;;  %3638 = vst [vmem:[#allocation2 + $0x1a0] sm:$0xf] %v3570_v41  ;;  %v3896_v13 = vrot.slane %v3894_v63, 6  ;;  %v3581_v62 = vshrl.u32 %v3440_v61, 16  ;;  %v3587_v45 = vshll.u32 %v9167_v40, 16 }
 0x2da   :  { %v3903_v9 = vrot.slane %v3901_v25, 5  ;;  %v3656_v14 = vld [vmem:[#allocation3 + $0x40] sm:$0xf]  ;;  %v3906_v20 = vrot.slane %v3904_v55, 6  ;;  %v3574_v39 = vor.u32 %v3573_v36, %v3569_v49  ;;  %v3657_v59 = vld [vmem:[#allocation3 + $0x44] sm:$0xf] }
 0x2db   :  { %v3579_v23 = vrot.slane %v3577_v2, 5  ;;  %v3897_v34 = vor.u32 %v3896_v13, %v3893_v56  ;;  %v3583_v57 = vrot.slane %v3581_v62, 4  ;;  %v3717_v54 = vrot.slane %v3715_v18, 4  ;;  %v3774_v47 = vld [vmem:[#allocation3 + $0x40] sm:$0xf] }
 0x2dc   :  { %v3907_v42 = vor.u32 %v3906_v20, %v3903_v9  ;;  %v3575_v38 = vrot.slane %v3574_v39, 4  ;;  %v3591_v58 = vshrl.u32 %v9167_v40, 16  ;;  %v3718_v37 = vrot.slane %v3656_v14, 5  ;;  %v3775_v31 = vld [vmem:[#allocation3 + $0x44] sm:$0xf] }
 0x2dd   :  { %v3898_v24 = vsel %vm8103_vm14, %v3889_v11, %v3897_v34  ;;  %v3899_v32 = vrot.slane %v3897_v34, 4  ;;  %v3584_v17 = vor.u32 %v3583_v57, %v3579_v23  ;;  %v3589_v10 = vrot.slane %v3587_v45, 5  ;;  %v3442_v30 = vld [vmem:[#allocation3 + $0x44] sm:$0xf]  ;;  %v7374_v26 = vld [vmem:[#allocation2 + $0x138] ss:$36 sps:$4 sm:$0xff]  }
 0x2de   :  { %v7376_v3 = vld [vmem:[#allocation2 + $0x13c] ss:$36 sps:$4 sm:$0xff]   ;;  %3975 = vst [vmem:[#allocation2 + $0x184] sm:$0xf] %v3898_v24  ;;  %v3580_v18 = vsel %vm9028_vm4, %v3575_v38, %v3579_v23  ;;  %v3719_v15 = vsel %vm8097_vm13, %v3717_v54, %v3718_v37  ;;  %v3720_v61 = vrot.slane %v3718_v37, 4  ;;  %v3721_v40 = vrot.slane %v3657_v59, 5 }
 0x2df   :  { %v3443_v52 = vld [vmem:[#allocation3 + $0x48] sm:$0x1]  ;;  %5475 = vmatprep.mubr.bf16.mxu0 %v7376_v3  ;;  %v3908_v33 = vsel %vm8103_vm14, %v3899_v32, %v3907_v42  ;;  %v3585_v16 = vrot.slane %v3584_v17, 4  ;;  %3639 = vst [vmem:[#allocation2 + $0x1c4] sm:$0xf] %v3580_v18  ;;  %v3911_v49 = vshrl.u32 %v3774_v47, 16 }
 0x2e0   :  { %3757 = vst [vmem:[#allocation2 + $0x1c8] sm:$0xf] %v3719_v15  ;;  %v3914_v11 = vshll.u32 %v3774_v47, 16  ;;  %v3981_v7 = vld [vmem:[#allocation3 + $0xc] sm:$0xc]  ;;  %5476 = vmatmul.mubr.bf16.gmra.mxu0 %v7374_v26  ;;  %v3722_v56 = vsel %vm8097_vm13, %v3720_v61, %v3721_v40  ;;  %v3909_v63 = vrot.slane %v3907_v42, 4 }
 0x2e1   :  { %v7380_v1 = vld [vmem:[#allocation2 + $0x17c] ss:$36 sps:$4 sm:$0xff]   ;;  %3976 = vst [vmem:[#allocation2 + $0x1a8] sm:$0xf] %v3908_v33  ;;  %v3921_v25 = vshrl.u32 %v3775_v31, 16  ;;  %v3590_v55 = vsel %vm9028_vm4, %v3585_v16, %v3589_v10  ;;  %v3913_v36 = vrot.slane %v3911_v49, 5 }
 0x2e2   :  { %v7378_v41 = vld [vmem:[#allocation2 + $0x178] ss:$36 sps:$4 sm:$0xff]   ;;  %3758 = vst [vmem:[#allocation2 + $0x1ec] sm:$0xf] %v3722_v56  ;;  %v3916_v2 = vrot.slane %v3914_v11, 6  ;;  %v3924_v13 = vshll.u32 %v3775_v31, 16  ;;  %5386 = vmatprep.mubr.bf16.mxu1 %v7380_v1 }
 0x2e3   :  { %3640 = vst [vmem:[#allocation2 + $0x1e8] sm:$0xf] %v3590_v55  ;;  %v3923_v9 = vrot.slane %v3921_v25, 5  ;;  %v3593_v62 = vrot.slane %v3591_v58, 4  ;;  %v3597_v45 = vshll.u32 %v3442_v30, 16  ;;  %v3601_v14 = vshrl.u32 %v3442_v30, 16  ;;  %5387 = vmatmul.mubr.bf16.gmra.mxu1 %v7378_v41 }
 0x2e4   :  { %v3917_v20 = vor.u32 %v3916_v2, %v3913_v36  ;;  %v3926_v39 = vrot.slane %v3924_v13, 6  ;;  %v3607_v23 = vshll.u32 %v3443_v52, 16  ;;  %v3723_v59 = vrot.slane %v3721_v40, 4  ;;  %v3982_v34 = vld [vmem:[#allocation3 + $0x10] sm:$0xf]  ;;  %v9730_v18 = vld [vmem:[#allocation10_spill] sm:$0xff] }
 0x2e5   :  { %v3594_v57 = vor.u32 %v3593_v62, %v3589_v10  ;;  %v3599_v54 = vrot.slane %v3597_v45, 5  ;;  %v3603_v47 = vrot.slane %v3601_v14, 4  ;;  %v3983_v42 = vld [vmem:[#allocation3 + $0x14] sm:$0xf]  ;;  %v6110_v38 = vrot.slane %v3981_v7, 10  ;;  %v9732_v41 = vld [vmem:[#allocation13_spill] sm:$0xff] }
 0x2e6   :  { %v3918_v37 = vsel %vm8103_vm14, %v3909_v63, %v3917_v20  ;;  %v3919_v31 = vrot.slane %v3917_v20, 4  ;;  %v3927_v3 = vor.u32 %v3926_v39, %v3923_v9  ;;  %v3609_v24 = vrot.slane %v3607_v23, 5  ;;  %v3984_v58 = vld [vmem:[#allocation3 + $0x18] sm:$0xf]  ;;  %v3985_v32 = vld [vmem:[#allocation3 + $0x1c] sm:$0xf] }
 0x2e7   :  { %v3986_v17 = vld [vmem:[#allocation3 + $0x20] sm:$0xf]  ;;  %3977 = vst [vmem:[#allocation2 + $0x1cc] sm:$0xf] %v3918_v37  ;;  %v3595_v30 = vrot.slane %v3594_v57, 4  ;;  %v3604_v26 = vor.u32 %v3603_v47, %v3599_v54  ;;  %v9731_v15 = vrot.slane %v9730_v18, 5 }
 0x2e8   :  { %v4017_v61 = vrot.slane %v3982_v34, 6  ;;  %v3987_v40 = vld [vmem:[#allocation3 + $0x24] sm:$0xf]  ;;  %v3928_v33 = vsel %vm8103_vm14, %v3919_v31, %v3927_v3  ;;  %v3929_v16 = vrot.slane %v3927_v3, 4  ;;  %v3988_v49 = vld [vmem:[#allocation3 + $0x28] sm:$0xf] }
 0x2e9   :  { %v3725_v10 = vsel %vm8097_vm13, %v3723_v59, %v9731_v15  ;;  %v7383_v52 = vld [vmem:[#allocation2 + $0x184] ss:$36 sps:$4 sm:$0xff]   ;;  %3978 = vst [vmem:[#allocation2 + $0x1f0] sm:$0xf] %v3928_v33  ;;  %v3600_v7 = vsel %vm9028_vm4, %v3595_v30, %v3599_v54  ;;  %v3605_v1 = vrot.slane %v3604_v26, 4  ;;  %v4020_v36 = vrot.slane %v3983_v42, 6 }
 0x2ea   :  { %3759 = vst [vmem:[#allocation2 + $0x210] sm:$0xf] %v3725_v10  ;;  %v7381_v11 = vld [vmem:[#allocation2 + $0x180] ss:$36 sps:$4 sm:$0xff]   ;;  %v4018_v56 = vsel %vm7561_vm6, %v6110_v38, %v4017_v61  ;;  %v4019_v4 = vrot.slane %v4017_v61, 4  ;;  %5483 = vmatprep.mubr.bf16.mxu0 %v7383_v52  ;;  %v3938_v55 = vsel %vm8103_vm14, %v3929_v16, %v9732_v41  ;;  %v4023_v62 = vrot.slane %v3984_v58, 6 }
 0x2eb   :  { %v3989_v63 = vld [vmem:[#allocation3 + $0x2c] sm:$0xf]  ;;  %v7387_v25 = vld [vmem:[#allocation2 + $0x1c4] ss:$36 sps:$4 sm:$0xff]   ;;  %3641 = vst [vmem:[#allocation2 + $0x20c] sm:$0xf] %v3600_v7  ;;  %5484 = vmatmul.mubr.bf16.gmra.mxu0 %v7381_v11  ;;  %v3610_v9 = vsel %vm9028_vm4, %v3605_v1, %v3609_v24 }
 0x2ec   :  { %4080 = vst [vmem:[#allocation2 + $0x20] sm:$0xf] %v4018_v56  ;;  %v3990_v2 = vld [vmem:[#allocation3 + $0x30] sm:$0xf]  ;;  %v7385_v13 = vld [vmem:[#allocation2 + $0x1c0] ss:$36 sps:$4 sm:$0xff]   ;;  %5394 = vmatprep.mubr.bf16.mxu1 %v7387_v25  ;;  %v4021_v20 = vsel %vm7561_vm6, %v4019_v4, %v4020_v36 }
 0x2ed   :  { %3979 = vst [vmem:[#allocation2 + $0x214] sm:$0xf] %v3938_v55  ;;  %v4026_v45 = vrot.slane %v3985_v32, 6  ;;  %v4029_v14 = vrot.slane %v3986_v17, 6  ;;  %3642 = vst [vmem:[#allocation2 + $0x230] sm:$0xf] %v3610_v9  ;;  %5395 = vmatmul.mubr.bf16.gmra.mxu1 %v7385_v13 }
 0x2ee   :  { %v4022_v39 = vrot.slane %v4020_v36, 4  ;;  %v4032_v43 = vrot.slane %v3987_v40, 6  ;;  %v4035_v23 = vrot.slane %v3988_v49, 6  ;;  %v3991_v59 = vld [vmem:[#allocation3 + $0x34] sm:$0xf]  ;;  %v4025_v34 = vrot.slane %v4023_v62, 4 }
 0x2ef   :  { %4081 = vst [vmem:[#allocation2 + $0x44] sm:$0xf] %v4021_v20  ;;  %v4028_v57 = vrot.slane %v4026_v45, 4  ;;  %v4031_v54 = vrot.slane %v4029_v14, 4  ;;  %v4038_v28 = vrot.slane %v3989_v63, 6  ;;  %v4041_v31 = vrot.slane %v3990_v2, 6 }
 0x2f0   :  { %v3992_v47 = vld [vmem:[#allocation3 + $0x38] sm:$0xf]  ;;  %v4024_v42 = vsel %vm7561_vm6, %v4022_v39, %v4023_v62  ;;  %v4034_v38 = vrot.slane %v4032_v43, 4  ;;  %v4037_v37 = vrot.slane %v4035_v23, 4  ;;  %v3993_v3 = vld [vmem:[#allocation3 + $0x3c] sm:$0xf]  ;;  %v4027_v24 = vsel %vm7561_vm6, %v4025_v34, %v4026_v45 }
 0x2f1   :  { %4082 = vst [vmem:[#allocation2 + $0x68] sm:$0xf] %v4024_v42  ;;  %v4030_v58 = vsel %vm7561_vm6, %v4028_v57, %v4029_v14  ;;  %v4033_v32 = vsel %vm7561_vm6, %v4031_v54, %v4032_v43  ;;  %v4040_v17 = vrot.slane %v4038_v28, 4  ;;  %v3994_v30 = vld [vmem:[#allocation3 + $0x40] sm:$0xf]  ;;  %v4043_v61 = vrot.slane %v4041_v31, 4 }
 0x2f2   :  { %v7388_v26 = vld [vmem:[#allocation2 + $0x1c8] ss:$36 sps:$4 sm:$0xff]   ;;  %4083 = vst [vmem:[#allocation2 + $0x8c] sm:$0xf] %v4027_v24  ;;  %4084 = vst [vmem:[#allocation2 + $0xb0] sm:$0xf] %v4030_v58  ;;  %v4036_v15 = vsel %vm7561_vm6, %v4034_v38, %v4035_v23  ;;  %v4039_v10 = vsel %vm7561_vm6, %v4037_v37, %v4038_v28 }
 0x2f3   :  { %v7390_v18 = vld [vmem:[#allocation2 + $0x1cc] ss:$36 sps:$4 sm:$0xff]   ;;  %4085 = vst [vmem:[#allocation2 + $0xd4] sm:$0xf] %v4033_v32  ;;  %4086 = vst [vmem:[#allocation2 + $0xf8] sm:$0xf] %v4036_v15  ;;  %v4042_v40 = vsel %vm7561_vm6, %v4040_v17, %v4041_v31 }
 0x2f4   :  { %4087 = vst [vmem:[#allocation2 + $0x11c] sm:$0xf] %v4039_v10  ;;  %v4044_v52 = vrot.slane %v3991_v59, 6  ;;  %v4047_v33 = vrot.slane %v3992_v47, 6  ;;  %v4050_v16 = vrot.slane %v3993_v3, 6  ;;  %5491 = vmatprep.mubr.bf16.mxu0 %v7390_v18  ;;  %v4053_v7 = vrot.slane %v3994_v30, 6 }
 0x2f5   :  { %v7397_v49 = vld [vmem:[#allocation2 + $0x214] ss:$36 sps:$4 sm:$0xff]   ;;  %4088 = vst [vmem:[#allocation2 + $0x140] sm:$0xf] %v4042_v40  ;;  %v3995_v11 = vld [vmem:[#allocation3 + $0x44] sm:$0xf]  ;;  %5492 = vmatmul.mubr.bf16.gmra.mxu0 %v7388_v26 }
 0x2f6   :  { %v7394_v1 = vld [vmem:[#allocation2 + $0x20c] ss:$36 sps:$4 sm:$0xff]   ;;  %v4045_v56 = vsel %vm7561_vm6, %v4043_v61, %v4044_v52  ;;  %v4046_v4 = vrot.slane %v4044_v52, 4  ;;  %5499 = vmatprep.mubr.bf16.mxu0 %v7397_v49  ;;  %v4049_v25 = vrot.slane %v4047_v33, 4  ;;  %v4052_v41 = vrot.slane %v4050_v16, 4  ;;  %v9733_v43 = vld [vmem:[#allocation14_spill] sm:$0xff] }
 0x2f7   :  { %v7392_v63 = vld [vmem:[#allocation2 + $0x208] ss:$36 sps:$4 sm:$0xff]   ;;  %4089 = vst [vmem:[#allocation2 + $0x164] sm:$0xf] %v4045_v56  ;;  %5402 = vmatprep.mubr.bf16.mxu1 %v7394_v1  ;;  %v7399_v55 = vld [vmem:[#allocation2 + $0x20] ss:$36 sps:$4 sm:$0xff]  }
 0x2f8   :  { %v4048_v36 = vsel %vm7561_vm6, %v4046_v4, %v4047_v33  ;;  %v4055_v2 = vrot.slane %v4053_v7, 4  ;;  %v4056_v13 = vrot.slane %v3995_v11, 6  ;;  %5403 = vmatmul.mubr.bf16.gmra.mxu1 %v7392_v63  ;;  %v4051_v9 = vsel %vm7561_vm6, %v4049_v25, %v4050_v16  ;;  %v7395_v14 = vld [vmem:[#allocation2 + $0x210] ss:$36 sps:$4 sm:$0xff]  }
 0x2f9   :  { %4090 = vst [vmem:[#allocation2 + $0x188] sm:$0xf] %v4048_v36  ;;  %v4054_v62 = vsel %vm7561_vm6, %v4052_v41, %v4053_v7  ;;  %7055 = vmatprep.mubr.bf16.mxu1 %v7399_v55  ;;  %4091 = vst [vmem:[#allocation2 + $0x1ac] sm:$0xf] %v4051_v9  ;;  %v7400_v39 = vld [vmem:[#allocation2 + $0x68] ss:$36 sps:$4 sm:$0xff]  }
 0x2fa   :  { %v4057_v45 = vsel %vm7561_vm6, %v4055_v2, %v4056_v13  ;;  %4092 = vst [vmem:[#allocation2 + $0x1d0] sm:$0xf] %v4054_v62  ;;  %v4058_v20 = vrot.slane %v4056_v13, 4  ;;  %v9734_v23 = vrot.slane %v9733_v43, 6  ;;  %v7401_v34 = vld [vmem:[#allocation2 + $0xb0] ss:$36 sps:$4 sm:$0xff]  }
 0x2fb   :  { %4093 = vst [vmem:[#allocation2 + $0x1f4] sm:$0xf] %v4057_v45  ;;  %v7402_v57 = vld [vmem:[#allocation2 + $0xf8] ss:$36 sps:$4 sm:$0xff]  }
 0x2fc   :  { %v4060_v59 = vsel %vm7561_vm6, %v4058_v20, %v9734_v23 }
 0x2fd   :  { %5500 = vmatmul.mubr.bf16.gmra.mxu0 %v7395_v14  ;;  %4094 = vst [vmem:[#allocation2 + $0x218] sm:$0xf] %v4060_v59 }
 0x2fe   :  { %v7403_v54 = vld [vmem:[#allocation2 + $0x140] ss:$36 sps:$4 sm:$0xff]  }
 0x300   :  { %7056 = vmatmul.mubr.bf16.vlgmr.msra.gmra.mxu1 %v7400_v39  ;;  %v7404_v28 = vld [vmem:[#allocation2 + $0x188] ss:$36 sps:$4 sm:$0xff]  }
 0x301   :  { %7059 = vmatprep.mubr.bf16.mxu1 %v7401_v34 }
 0x302   :  { %v7405_v47 = vld [vmem:[#allocation2 + $0x1d0] ss:$36 sps:$4 sm:$0xff]  }
 0x304   :  { %v7406_v42 = vld [vmem:[#allocation2 + $0x218] ss:$36 sps:$4 sm:$0xff]  }
 0x308   :  { %7060 = vmatmul.mubr.bf16.gmra.mxu1 %v7402_v57 }
 0x309   :  { %7063 = vmatprep.mubr.bf16.mxu1 %v7403_v54 }
 0x30d   :  { %v6751_v38 = vpop.f32.mrf.mxu1 }
 0x30f   :  { %v6752_v37 = vpop.f32.mrf.mxu1 }
 0x310   :  { %7064 = vmatmul.mubr.bf16.gmra.mxu1 %v7404_v28  ;;  %v6753_v3 = vadd.f32 %v6752_v37, %v6751_v38 }
 0x311   :  { %7067 = vmatprep.mubr.bf16.mxu1 %v7405_v47  ;;  %v6754_v5 = vpop.f32.mrf.mxu1 }
 0x312   :  { %v6815_v31 = vpop.f32.mrf.mxu0 }
 0x313   :  { %v6755_v32 = vpop.f32.mrf.mxu1 }
 0x314   :  { %v6816_v24 = vpop.f32.mrf.mxu0  ;;  %v6756_v30 = vadd.f32 %v6755_v32, %v6754_v5 }
 0x315   :  { %v6817_v58 = vadd.f32 %v6816_v24, %v6815_v31 }
 0x316   :  { %v6818_v17 = vpop.f32.mrf.mxu0 }
 0x317   :  { %v9237_v26 = vadd.f32 %v6817_v58, %v6753_v3 }
 0x318   :  { %7068 = vmatmul.mubr.bf16.gmra.mxu1 %v7406_v42  ;;  %v6757_v18 = vpop.f32.mrf.mxu1  ;;  %v6819_v15 = vpop.f32.mrf.mxu0 }
 0x319   :  { %v6820_v10 = vadd.f32 %v6819_v15, %v6818_v17 }
 0x31a   :  { %v6758_v61 = vpop.f32.mrf.mxu1 }
 0x31b   :  { %v6759_v40 = vadd.f32 %v6758_v61, %v6757_v18  ;;  %v9239_v52 = vadd.f32 %v6820_v10, %v6756_v30 }
 0x31c   :  { %v6760_v33 = vpop.f32.mrf.mxu1 }
 0x31d   :  { %v6821_v16 = vpop.f32.mrf.mxu0 }
 0x31e   :  { %v6761_v49 = vpop.f32.mrf.mxu1 }
 0x31f   :  { %v6822_v11 = vpop.f32.mrf.mxu0  ;;  %v6762_v7 = vadd.f32 %v6761_v49, %v6760_v33 }
 0x320   :  { %v6823_v1 = vadd.f32 %v6822_v11, %v6821_v16 }
 0x321   :  { %v6824_v56 = vpop.f32.mrf.mxu0 }
 0x322   :  { %v9241_v4 = vadd.f32 %v6823_v1, %v6759_v40 }
 0x323   :  { %v6825_v25 = vpop.f32.mrf.mxu0 }
 0x324   :  { %v6826_v41 = vadd.f32 %v6825_v25, %v6824_v56 }
 0x325   :  { %v6763_v63 = vpop.f32.mrf.mxu1 }
 0x326   :  { %v9243_v13 = vadd.f32 %v6826_v41, %v6762_v7 }
 0x327   :  { %v6764_v55 = vpop.f32.mrf.mxu1  ;;  %v6827_v36 = vpop.f32.mrf.mxu0 }
 0x328   :  { %v6765_v2 = vadd.f32 %v6764_v55, %v6763_v63 }
 0x329   :  { %v6766_v9 = vpop.f32.mrf.mxu1  ;;  %v6828_v62 = vpop.f32.mrf.mxu0 }
 0x32a   :  { %v6829_v45 = vadd.f32 %v6828_v62, %v6827_v36 }
 0x32b   :  { %v6767_v14 = vpop.f32.mrf.mxu1  ;;  %v6830_v20 = vpop.f32.mrf.mxu0 }
 0x32c   :  { %v6768_v39 = vadd.f32 %v6767_v14, %v6766_v9  ;;  %v9245_v43 = vadd.f32 %v6829_v45, %v6765_v2 }
 0x32d   :  { %v6831_v23 = vpop.f32.mrf.mxu0 }
 0x32e   :  { %v6832_v59 = vadd.f32 %v6831_v23, %v6830_v20 }
 0x330   :  { %v9247_v57 = vadd.f32 %v6832_v59, %v6768_v39 }
 0x331   :  { %v6769_v34 = vpop.f32.mrf.mxu1 }
 0x333   :  { %v6770_v54 = vpop.f32.mrf.mxu1  ;;  %v6833_v28 = vpop.f32.mrf.mxu0 }
 0x334   :  { %v6771_v47 = vadd.f32 %v6770_v54, %v6769_v34 }
 0x335   :  { %v6772_v42 = vpop.f32.mrf.mxu1  ;;  %v6834_v38 = vpop.f32.mrf.mxu0 }
 0x336   :  { %v6835_v37 = vadd.f32 %v6834_v38, %v6833_v28 }
 0x337   :  { %v6773_v31 = vpop.f32.mrf.mxu1  ;;  %v6836_v3 = vpop.f32.mrf.mxu0 }
 0x338   :  { %v6774_v5 = vadd.f32 %v6773_v31, %v6772_v42  ;;  %v9249_v24 = vadd.f32 %v6835_v37, %v6771_v47 }
 0x339   :  { %v6837_v58 = vpop.f32.mrf.mxu0 }
 0x33a   :  { %v6838_v32 = vadd.f32 %v6837_v58, %v6836_v3 }
 0x33c   :  { %v9251_v30 = vadd.f32 %v6838_v32, %v6774_v5 }
 0x33d   :  { %v6775_v17 = vpop.f32.mrf.mxu1 }
 0x33f   :  { %v6776_v18 = vpop.f32.mrf.mxu1 }
 0x340   :  { %v6839_v15 = vpop.f32.mrf.mxu0  ;;  %v6777_v10 = vadd.f32 %v6776_v18, %v6775_v17 }
 0x341   :  { %v6778_v61 = vpop.f32.mrf.mxu1 }
 0x342   :  { %v6840_v40 = vpop.f32.mrf.mxu0 }
 0x343   :  { %v6841_v33 = vadd.f32 %v6840_v40, %v6839_v15  ;;  %v6779_v16 = vpop.f32.mrf.mxu1 }
 0x344   :  { %v6842_v49 = vpop.f32.mrf.mxu0  ;;  %v6780_v11 = vadd.f32 %v6779_v16, %v6778_v61 }
 0x345   :  { %v9253_v7 = vadd.f32 %v6841_v33, %v6777_v10 }
 0x346   :  { %v6843_v1 = vpop.f32.mrf.mxu0 }
 0x347   :  { %v6844_v56 = vadd.f32 %v6843_v1, %v6842_v49 }
 0x349   :  { %v9255_v25 = vadd.f32 %v6844_v56, %v6780_v11 }
 0x34a   :  { %v6781_v63 = vpop.f32.mrf.mxu1 }
 0x34b   :  { %9735 = vst [vmem:[#allocation29_spill] sm:$0xff] %v9255_v25 }
 0x34c   :  { %v6782_v41 = vpop.f32.mrf.mxu1  ;;  %v6845_v55 = vpop.f32.mrf.mxu0 }
 0x34d   :  { %v6783_v36 = vadd.f32 %v6782_v41, %v6781_v63 }
 0x34e   :  { %v6784_v2 = vpop.f32.mrf.mxu1  ;;  %v6846_v9 = vpop.f32.mrf.mxu0 }
 0x34f   :  { %v6847_v62 = vadd.f32 %v6846_v9, %v6845_v55 }
 0x350   :  { %v6785_v45 = vpop.f32.mrf.mxu1  ;;  %v6848_v14 = vpop.f32.mrf.mxu0 }
 0x351   :  { %v6786_v20 = vadd.f32 %v6785_v45, %v6784_v2  ;;  %v9257_v39 = vadd.f32 %v6847_v62, %v6783_v36 }
 0x352   :  { %v6849_v23 = vpop.f32.mrf.mxu0 }
 0x353   :  { %9736 = vst [vmem:[#allocation30_spill] sm:$0xff] %v9257_v39  ;;  %v6850_v59 = vadd.f32 %v6849_v23, %v6848_v14 }
 0x355   :  { %v6787_v34 = vpop.f32.mrf.mxu1  ;;  %v9259_v54 = vadd.f32 %v6850_v59, %v6786_v20 }
 0x357   :  { %9737 = vst [vmem:[#allocation15_spill] sm:$0xff] %v9259_v54  ;;  %v6788_v28 = vpop.f32.mrf.mxu1 }
 0x358   :  { %v6789_v42 = vadd.f32 %v6788_v28, %v6787_v34 }
 0x359   :  { %v6790_v38 = vpop.f32.mrf.mxu1 }
 0x35a   :  { %v6851_v47 = vpop.f32.mrf.mxu0 }
 0x35b   :  { %v6791_v3 = vpop.f32.mrf.mxu1 }
 0x35c   :  { %v6852_v37 = vpop.f32.mrf.mxu0  ;;  %v6792_v58 = vadd.f32 %v6791_v3, %v6790_v38 }
 0x35d   :  { %v6853_v31 = vadd.f32 %v6852_v37, %v6851_v47 }
 0x35e   :  { %v6854_v5 = vpop.f32.mrf.mxu0 }
 0x35f   :  { %v9261_v32 = vadd.f32 %v6853_v31, %v6789_v42 }
 0x360   :  { %v6855_v17 = vpop.f32.mrf.mxu0 }
 0x361   :  { %9738 = vst [vmem:[#allocation23_spill] sm:$0xff] %v9261_v32  ;;  %v6856_v18 = vadd.f32 %v6855_v17, %v6854_v5 }
 0x362   :  { %v6793_v15 = vpop.f32.mrf.mxu1 }
 0x363   :  { %v9263_v10 = vadd.f32 %v6856_v18, %v6792_v58 }
 0x364   :  { %v6794_v61 = vpop.f32.mrf.mxu1 }
 0x365   :  { %9739 = vst [vmem:[#allocation24_spill] sm:$0xff] %v9263_v10  ;;  %v6857_v40 = vpop.f32.mrf.mxu0  ;;  %v6795_v33 = vadd.f32 %v6794_v61, %v6793_v15 }
 0x366   :  { %v6796_v16 = vpop.f32.mrf.mxu1 }
 0x367   :  { %v6858_v49 = vpop.f32.mrf.mxu0 }
 0x368   :  { %v6859_v11 = vadd.f32 %v6858_v49, %v6857_v40  ;;  %v6797_v1 = vpop.f32.mrf.mxu1 }
 0x369   :  { %v9265_v56 = vadd.f32 %v6797_v1, %v6796_v16  ;;  %v9269_v41 = vpop.f32.mrf.mxu0 }
 0x36a   :  { %v9267_v63 = vadd.f32 %v6859_v11, %v6795_v33 }
 0x36b   :  { %9740 = vst [vmem:[#allocation18_spill] sm:$0xff] %v9265_v56  ;;  %v9271_v36 = vpop.f32.mrf.mxu0 }
 0x36c   :  { %9741 = vst [vmem:[#allocation32_spill] sm:$0xff] %v9267_v63 }
 0x36e   :  { %v6879_v55 = vpop.f32.mrf.mxu1 }
 0x370   :  { %v6880_v2 = vpop.f32.mrf.mxu1 }
 0x371   :  { %v6881_v9 = vadd.f32 %v6880_v2, %v6879_v55 }
 0x372   :  { %v6882_v62 = vpop.f32.mrf.mxu1 }
 0x373   :  { %v9274_v45 = vadd.f32 %v6881_v9, %v9237_v26 }
 0x374   :  { %v6943_v14 = vpop.f32.mrf.mxu0  ;;  %v6883_v20 = vpop.f32.mrf.mxu1 }
 0x376   :  { %v6944_v23 = vpop.f32.mrf.mxu0 }
 0x378   :  { %v9276_v59 = vpop.f32.mrf.mxu0 }
 0x379   :  { %v6885_v34 = vpop.f32.mrf.mxu1 }
 0x37a   :  { %v9278_v28 = vpop.f32.mrf.mxu0 }
 0x37b   :  { %v6886_v47 = vpop.f32.mrf.mxu1 }
 0x37d   :  { %v6888_v42 = vpop.f32.mrf.mxu1 }
 0x37f   :  { %v6949_v38 = vpop.f32.mrf.mxu0  ;;  %v6889_v37 = vpop.f32.mrf.mxu1 }
 0x381   :  { %v6950_v31 = vpop.f32.mrf.mxu0 }
 0x382   :  { %v6951_v50 = vadd.f32 %v6950_v31, %v6949_v38 }
 0x383   :  { %v6891_v3 = vpop.f32.mrf.mxu1  ;;  %v6952_v5 = vpop.f32.mrf.mxu0 }
 0x385   :  { %v6892_v58 = vpop.f32.mrf.mxu1  ;;  %v6953_v17 = vpop.f32.mrf.mxu0 }
 0x387   :  { %v6894_v18 = vpop.f32.mrf.mxu1 }
 0x389   :  { %v6895_v26 = vpop.f32.mrf.mxu1 }
 0x38c   :  { %v9280_v15 = vpop.f32.mrf.mxu0 }
 0x38e   :  { %v9282_v61 = vpop.f32.mrf.mxu0 }
 0x38f   :  { %v6897_v40 = vpop.f32.mrf.mxu1 }
 0x390   :  { %v9284_v33 = vpop.f32.mrf.mxu0 }
 0x391   :  { %v6898_v16 = vpop.f32.mrf.mxu1 }
 0x392   :  { %v9286_v49 = vpop.f32.mrf.mxu0 }
 0x393   :  { %v6900_v11 = vpop.f32.mrf.mxu1 }
 0x394   :  { %v9288_v1 = vpop.f32.mrf.mxu0 }
 0x395   :  { %v6901_v55 = vpop.f32.mrf.mxu1 }
 0x396   :  { %v6962_v2 = vpop.f32.mrf.mxu0 }
 0x398   :  { %v6903_v9 = vpop.f32.mrf.mxu1  ;;  %v9290_v35 = vpop.f32.mrf.mxu0 }
 0x39a   :  { %v6904_v19 = vpop.f32.mrf.mxu1  ;;  %v6965_v44 = vpop.f32.mrf.mxu0 }
 0x39c   :  { %v6906_v12 = vpop.f32.mrf.mxu1 }
 0x39e   :  { %v6907_v0 = vpop.f32.mrf.mxu1 }
 0x3a0   :  { %v9292_v21 = vpop.f32.mrf.mxu0 }
 0x3a1   :  { %9742 = vst [vmem:[#allocation33_spill] sm:$0xff] %v9292_v21  ;;  %v6893_v21 = vadd.f32 %v6892_v58, %v6891_v3 }
 0x3a2   :  { %v9294_v10 = vpop.f32.mrf.mxu0 }
 0x3a3   :  { %9743 = vst [vmem:[#allocation35_spill] sm:$0xff] %v9294_v10  ;;  %v9296_v27 = vpop.f32.mrf.mxu1  ;;  %v6890_v10 = vadd.f32 %v6889_v37, %v6888_v42  ;;  %v6902_v42 = vadd.f32 %v6901_v55, %v6900_v11 }
 0x3a4   :  { %v9298_v48 = vpop.f32.mrf.mxu0 }
 0x3a5   :  { %9744 = vst [vmem:[#allocation19_spill] sm:$0xff] %v9298_v48  ;;  %v9300_v63 = vpop.f32.mrf.mxu1  ;;  %v5376_v3 = vadd.f32 %v6902_v42, %v9251_v30 }
 0x3a6   :  { %v9302_v56 = vpop.f32.mrf.mxu0 }
 0x3a7   :  { %9745 = vst [vmem:[#allocation36_spill] sm:$0xff] %v9302_v56  ;;  %v9304_v8 = vpop.f32.mrf.mxu1 }
 0x3a8   :  { %9746 = vst [vmem:[#allocation20_spill] sm:$0xff] %v9304_v8 }
 0x3a9   :  { %v9306_v29 = vpop.f32.mrf.mxu1 }
 0x3aa   :  { %9747 = vst [vmem:[#allocation4_spill] sm:$0xff] %v9306_v29  ;;  %v6887_v29 = vadd.f32 %v6886_v47, %v6885_v34  ;;  %v6899_v34 = vadd.f32 %v6898_v16, %v6897_v40  ;;  %v6954_v47 = vadd.f32 %v6953_v17, %v6952_v5 }
 0x3ab   :  { %v9308_v32 = vpop.f32.mrf.mxu0 }
 0x3ac   :  { %9748 = vst [vmem:[#allocation7_spill] sm:$0xff] %v9308_v32  ;;  %v6884_v32 = vadd.f32 %v6883_v20, %v6882_v62 }
 0x3ad   :  { %v9310_v51 = vpop.f32.mrf.mxu1  ;;  %v9312_v22 = vpop.f32.mrf.mxu0 }
 0x3ae   :  { %9749 = vst [vmem:[#allocation9_spill] sm:$0xff] %v9310_v51  ;;  %9750 = vst [vmem:[#allocation5_spill] sm:$0xff] %v9312_v22 }
 0x3af   :  { %v9314_v54 = vpop.f32.mrf.mxu1  ;;  %v9318_v60 = vpop.f32.mrf.mxu0 }
 0x3b0   :  { %9751 = vst [vmem:[#allocation8_spill] sm:$0xff] %v9314_v54  ;;  %9753 = vst [vmem:[#allocation11_spill] sm:$0xff] %v9318_v60  ;;  %v5357_v60 = vadd.f32 %v6887_v29, %v9241_v4 }
 0x3b1   :  { %v9316_v39 = vpop.f32.mrf.mxu1  ;;  %v9324_v56 = vpop.f32.mrf.mxu0  ;;  %v9763_v40 = vld [vmem:[#allocation4_spill] sm:$0xff] }
 0x3b2   :  { %9752 = vst [vmem:[#allocation6_spill] sm:$0xff] %v9316_v39  ;;  %9756 = vst [vmem:[#allocation13_spill] sm:$0xff] %v9324_v56  ;;  %v6945_v39 = vadd.f32 %v6944_v23, %v6943_v14  ;;  %v6948_v14 = vadd.f32 %v9278_v28, %v9276_v59  ;;  %v5454_v29 = vadd.f32 %v6951_v50, %v5357_v60 }
 0x3b3   :  { %v9320_v48 = vpop.f32.mrf.mxu1  ;;  %v5373_v23 = vadd.f32 %v6899_v34, %v9249_v24  ;;  %v6905_v59 = vadd.f32 %v6904_v19, %v6903_v9  ;;  %v6966_v24 = vadd.f32 %v6965_v44, %v9290_v35  ;;  %v9764_v9 = vld [vmem:[#allocation38_spill] sm:$0xff] }
 0x3b4   :  { %9754 = vst [vmem:[#allocation12_spill] sm:$0xff] %v9320_v48  ;;  %v5352_v48 = vadd.f32 %v6884_v32, %v9239_v52  ;;  %v5446_v20 = vadd.f32 %v6945_v39, %v9274_v45  ;;  %v5365_v52 = vadd.f32 %v6893_v21, %v9245_v43  ;;  %v6957_v45 = vadd.f32 %v9282_v61, %v9280_v15  ;;  %v9761_v61 = vld [vmem:[#allocation29_spill] sm:$0xff] }
 0x3b5   :  { %v9330_v22 = vpop.f32.mrf.mxu0  ;;  %v6960_v21 = vadd.f32 %v9286_v49, %v9284_v33  ;;  %v6963_v43 = vadd.f32 %v6962_v2, %v9288_v1  ;;  %v5381_v17 = vadd.f32 %v6905_v59, %v9253_v7  ;;  %v9760_v7 = vld [vmem:[#allocation35_spill] sm:$0xff]  ;;  %v9766_v42 = vld [vmem:[#allocation9_spill] sm:$0xff] }
 0x3b6   :  { %v5449_v39 = vadd.f32 %v6948_v14, %v5352_v48  ;;  %v9358_v48 = vadd.f32 %v9271_v36, %v9269_v41  ;;  %v5462_v19 = vadd.f32 %v6957_v45, %v5365_v52  ;;  %v6911_v41 = vadd.f32 %v9300_v63, %v9296_v27  ;;  %v9758_v36 = vld [vmem:[#allocation37_spill] sm:$0xff]  ;;  %v9762_v63 = vld [vmem:[#allocation20_spill] sm:$0xff] }
 0x3b7   :  { %v9337_v62 = vpop.f32.mrf.mxu0  ;;  %v6914_v33 = vadd.f32 %v9763_v40, %v9762_v63  ;;  %v9771_v59 = vld [vmem:[#allocation5_spill] sm:$0xff] }
 0x3b8   :  { %v9322_v25 = vpop.f32.mrf.mxu1 }
 0x3b9   :  { %9755 = vst [vmem:[#allocation10_spill] sm:$0xff] %v9322_v25  ;;  %v5360_v25 = vadd.f32 %v6890_v10, %v9243_v13  ;;  %v9345_v38 = vpop.f32.mrf.mxu0 }
 0x3ba   :  { %v9326_v8 = vpop.f32.mrf.mxu1 }
 0x3bb   :  { %9757 = vst [vmem:[#allocation14_spill] sm:$0xff] %v9326_v8  ;;  %v6896_v8 = vadd.f32 %v6895_v26, %v6894_v18  ;;  %v5457_v13 = vadd.f32 %v6954_v47, %v5360_v25  ;;  %v6908_v25 = vadd.f32 %v6907_v0, %v6906_v12  ;;  %v5473_v12 = vadd.f32 %v6966_v24, %v5376_v3  ;;  %v9759_v26 = vld [vmem:[#allocation33_spill] sm:$0xff]  ;;  %v9770_v3 = vld [vmem:[#allocation7_spill] sm:$0xff] }
 0x3bc   :  { %v9328_v51 = vpop.f32.mrf.mxu1  ;;  %v6969_v15 = vadd.f32 %v9760_v7, %v9759_v26  ;;  %v9778_v7 = vld [vmem:[#allocation26_spill] sm:$0xff] }
 0x3bd   :  { %v5368_v10 = vadd.f32 %v6896_v8, %v9247_v57  ;;  %v5384_v27 = vadd.f32 %v6908_v25, %v9761_v61 }
 0x3be   :  { %v9332_v54 = vpop.f32.mrf.mxu1  ;;  %v5478_v52 = vadd.f32 %v6969_v15, %v5381_v17 }
 0x3bf   :  { %v5465_v58 = vadd.f32 %v6960_v21, %v5368_v10 }
 0x3c0   :  { %v7057_v56 = vpop.f32.mrf.mxu1  ;;  %v9779_v40 = vld [vmem:[#allocation10_spill] sm:$0xff] }
 0x3c1   :  { %v5551_v31 = vadd.f32 %v7057_v56, %v5454_v29  ;;  %v9361_v56 = vpop.f32.mrf.mxu0 }
 0x3c2   :  { %v5542_v37 = vpop.f32.mrf.mxu1 }
 0x3c3   :  { %v5543_v4 = vadd.f32 %v5542_v37, %v5446_v20  ;;  %v9364_v28 = vmul.f32 %v5551_v31, %v8304_v6  ;;  %v9386_v11 = vpop.f32.mrf.mxu0  ;;  %v9765_v20 = vld [vmem:[#allocation30_spill] sm:$0xff]  ;;  %v9767_v37 = vld [vmem:[#allocation8_spill] sm:$0xff]  ;;  %v9768_v31 = vld [vmem:[#allocation19_spill] sm:$0xff] }
 0x3c4   :  { %v7058_v32 = vpop.f32.mrf.mxu1  ;;  %v5389_v47 = vadd.f32 %v6911_v41, %v9765_v20  ;;  %v6917_v14 = vadd.f32 %v9767_v37, %v9766_v42  ;;  %v9775_v41 = vld [vmem:[#allocation11_spill] sm:$0xff]  ;;  %v9782_v20 = vld [vmem:[#allocation12_spill] sm:$0xff] }
 0x3c5   :  { %v5554_v50 = vadd.f32 %v7058_v32, %v5457_v13  ;;  %v9354_v8 = vmul.f32 %v5543_v4, %v8298_v46  ;;  %v5470_v46 = vadd.f32 %v6963_v43, %v5373_v23  ;;  %v5644_v1 = vmul.f32 %v9364_v28, %v9364_v28  ;;  %v9773_v43 = vld [vmem:[#allocation40_spill] sm:$0xff]  ;;  %v6986_v25 = vpop.f32.mrf.mxu0 }
 0x3c6   :  { %v5545_v60 = vpop.f32.mrf.mxu1 }
 0x3c7   :  { %v5546_v57 = vadd.f32 %v5545_v60, %v5449_v39  ;;  %v9373_v44 = vmul.f32 %v5554_v50, %v9758_v36  ;;  %v5642_v35 = vmul.f32 %v9354_v8, %v9354_v8  ;;  %v9769_v39 = vld [vmem:[#allocation36_spill] sm:$0xff]  ;;  %v6975_v50 = vadd.f32 %v9771_v59, %v9770_v3  ;;  %v9772_v60 = vld [vmem:[#allocation15_spill] sm:$0xff]  ;;  %v9776_v36 = vld [vmem:[#allocation13_spill] sm:$0xff] }
 0x3c8   :  { %v7061_v30 = vpop.f32.mrf.mxu1  ;;  %v6972_v45 = vadd.f32 %v9769_v39, %v9768_v31  ;;  %v5392_v21 = vadd.f32 %v6914_v33, %v9772_v60  ;;  %v9780_v33 = vld [vmem:[#allocation14_spill] sm:$0xff] }
 0x3c9   :  { %v9367_v5 = vmul.f32 %v5546_v57, %v8312_v53  ;;  %v5567_v16 = vadd.f32 %v7061_v30, %v5470_v46  ;;  %v5645_v29 = vmul.f32 %v9373_v44, %v9373_v44  ;;  %v9784_v3 = vld [vmem:[#allocation18_spill] sm:$0xff] }
 0x3ca   :  { %v5558_v0 = vpop.f32.mrf.mxu1  ;;  %v5311_v59 = vadd.f32 %v9358_v48, %v9784_v3  ;;  %v6987_v48 = vadd.f32 %v6986_v25, %v9386_v11 }
 0x3cb   :  { %v5621_v6 = vadd.f32 %v9367_v5, %v9354_v8  ;;  %v5643_v53 = vmul.f32 %v9367_v5, %v9367_v5  ;;  %v5559_v18 = vadd.f32 %v5558_v0, %v5462_v19  ;;  %v9406_v57 = vmul.f32 %v5567_v16, %v9773_v43 }
 0x3cc   :  { %v7062_v49 = vpop.f32.mrf.mxu1  ;;  %v6978_v0 = vadd.f32 %v9776_v36, %v9775_v41  ;;  %v6923_v16 = vadd.f32 %v9780_v33, %v9779_v40 }
 0x3cd   :  { %v5622_v55 = vadd.f32 %v5621_v6, %v9364_v28  ;;  %v5658_v2 = vadd.f32 %v5643_v53, %v5642_v35  ;;  %v9392_v34 = vmul.f32 %v5559_v18, %v9764_v9  ;;  %v5570_v10 = vadd.f32 %v7062_v49, %v5473_v12  ;;  %v9777_v12 = vld [vmem:[#allocation23_spill] sm:$0xff]  ;;  %v9781_v9 = vld [vmem:[#allocation6_spill] sm:$0xff] }
 0x3ce   :  { %v5561_v4 = vpop.f32.mrf.mxu1  ;;  %v5397_v35 = vadd.f32 %v6917_v14, %v9777_v12  ;;  %v5486_v6 = vadd.f32 %v6975_v50, %v5389_v47  ;;  %v5481_v18 = vadd.f32 %v6972_v45, %v5384_v27  ;;  %v6920_v47 = vadd.f32 %v9782_v20, %v9781_v9  ;;  %v6988_v27 = vpop.f32.mrf.mxu0  ;;  %v9785_v50 = vld [vmem:[#allocation32_spill] sm:$0xff] }
 0x3cf   :  { %v5659_v13 = vadd.f32 %v5658_v2, %v5644_v1  ;;  %v5623_v32 = vadd.f32 %v5622_v55, %v9373_v44  ;;  %v5562_v23 = vadd.f32 %v5561_v4, %v5465_v58  ;;  %v5646_v19 = vmul.f32 %v9392_v34, %v9392_v34  ;;  %v9774_v58 = vld [vmem:[#allocation39_spill] sm:$0xff] }
 0x3d0   :  { %v7065_v24 = vpop.f32.mrf.mxu1  ;;  %v9418_v15 = vmul.f32 %v5570_v10, %v9778_v7  ;;  %v5489_v55 = vadd.f32 %v6978_v0, %v5392_v21  ;;  %v5648_v42 = vmul.f32 %v9406_v57, %v9406_v57  ;;  %v6926_v4 = vadd.f32 %v9332_v54, %v9328_v51  ;;  %v6989_v21 = vpop.f32.mrf.mxu0  ;;  %v9789_v0 = vld [vmem:[#allocation16_spill] sm:$0xff] }
 0x3d1   :  { %v5624_v30 = vadd.f32 %v5623_v32, %v9392_v34  ;;  %v5660_v46 = vadd.f32 %v5659_v13, %v5645_v29  ;;  %v9412_v17 = vmul.f32 %v5562_v23, %v9774_v58  ;;  %v5583_v49 = vadd.f32 %v7065_v24, %v5486_v6  ;;  %v9783_v13 = vld [vmem:[#allocation27_spill] sm:$0xff]  ;;  %v9788_v58 = vld [vmem:[#allocation24_spill] sm:$0xff] }
 0x3d2   :  { %v5574_v53 = vpop.f32.mrf.mxu1  ;;  %v6981_v29 = vadd.f32 %v9337_v62, %v9330_v22  ;;  %v5649_v23 = vmul.f32 %v9418_v15, %v9418_v15  ;;  %v5405_v22 = vadd.f32 %v6923_v16, %v9785_v50  ;;  %v9786_v62 = vld [vmem:[#allocation22_spill] sm:$0xff]  ;;  %v5400_v41 = vadd.f32 %v6920_v47, %v9788_v58  ;;  %v9790_v16 = vld [vmem:[#allocation25_spill] sm:$0xff] }
 0x3d3   :  { %v5661_v26 = vadd.f32 %v5660_v46, %v5646_v19  ;;  %v5625_v61 = vadd.f32 %v5624_v30, %v9412_v17  ;;  %v5647_v63 = vmul.f32 %v9412_v17, %v9412_v17  ;;  %v5575_v1 = vadd.f32 %v5574_v53, %v5478_v52  ;;  %v9787_v19 = vld [vmem:[#allocation21_spill] sm:$0xff] }
 0x3d4   :  { %v7066_v2 = vpop.f32.mrf.mxu1  ;;  %v9444_v60 = vmul.f32 %v5583_v49, %v9786_v62  ;;  %v5494_v54 = vadd.f32 %v6981_v29, %v5397_v35  ;;  %v5408_v36 = vadd.f32 %v6926_v4, %v5311_v59  ;;  %v6984_v7 = vadd.f32 %v9361_v56, %v9345_v38  ;;  %v9791_v29 = vld [vmem:[#allocation17_spill] sm:$0xff] }
 0x3d5   :  { %v5626_v37 = vadd.f32 %v5625_v61, %v9406_v57  ;;  %v5662_v14 = vadd.f32 %v5661_v26, %v5647_v63  ;;  %v9435_v52 = vmul.f32 %v5575_v1, %v9783_v13  ;;  %v5586_v32 = vadd.f32 %v7066_v2, %v5489_v55  ;;  %v9792_v13 = vld [vmem:[#allocation28_spill] sm:$0xff] }
 0x3d6   :  { %v5577_v10 = vpop.f32.mrf.mxu1  ;;  %v6990_v61 = vadd.f32 %v6989_v21, %v6988_v27  ;;  %v5502_v63 = vadd.f32 %v6987_v48, %v5405_v22  ;;  %v5652_v11 = vmul.f32 %v9444_v60, %v9444_v60  ;;  %v5497_v2 = vadd.f32 %v6984_v7, %v5400_v41 }
 0x3d7   :  { %v5663_v31 = vadd.f32 %v5662_v14, %v5648_v42  ;;  %v5627_v39 = vadd.f32 %v5626_v37, %v9418_v15  ;;  %v5578_v45 = vadd.f32 %v5577_v10, %v5481_v18  ;;  %v5650_v24 = vmul.f32 %v9435_v52, %v9435_v52 }
 0x3d8   :  { %v7069_v51 = vpop.f32.mrf.mxu1  ;;  %v9455_v12 = vmul.f32 %v5586_v32, %v9789_v0  ;;  %v5505_v55 = vadd.f32 %v6990_v61, %v5408_v36 }
 0x3d9   :  { %v5628_v43 = vadd.f32 %v5627_v39, %v9435_v52  ;;  %v5664_v30 = vadd.f32 %v5663_v31, %v5649_v23  ;;  %v9450_v46 = vmul.f32 %v5578_v45, %v9787_v19  ;;  %v5599_v1 = vadd.f32 %v7069_v51, %v5502_v63  ;;  %v9793_v23 = vld [vmem:[#allocation31_spill] sm:$0xff] }
 0x3da   :  { %v5590_v6 = vpop.f32.mrf.mxu1  ;;  %v5653_v20 = vmul.f32 %v9455_v12, %v9455_v12 }
 0x3db   :  { %v5665_v35 = vadd.f32 %v5664_v30, %v5650_v24  ;;  %v5629_v53 = vadd.f32 %v5628_v43, %v9450_v46  ;;  %v5651_v18 = vmul.f32 %v9450_v46, %v9450_v46  ;;  %v5591_v26 = vadd.f32 %v5590_v6, %v5494_v54 }
 0x3dc   :  { %v7070_v40 = vpop.f32.mrf.mxu1  ;;  %v5619_v4 = vmul.f32 %v5599_v1, %v9791_v29 }
 0x3dd   :  { %v5630_v25 = vadd.f32 %v5629_v53, %v9444_v60  ;;  %v5666_v33 = vadd.f32 %v5665_v35, %v5651_v18  ;;  %v9466_v49 = vmul.f32 %v5591_v26, %v9790_v16  ;;  %v5602_v47 = vadd.f32 %v7070_v40, %v5505_v55  ;;  %v40_v55 = vld [vmem:[%s9600_s4 + $0x3] sm:$0x1] }
 0x3de   :  { %v5593_v9 = vpop.f32.mrf.mxu1  ;;  %v5656_v3 = vmul.f32 %v5619_v4, %v5619_v4 }
 0x3df   :  { %v5667_v38 = vadd.f32 %v5666_v33, %v5652_v11  ;;  %v5631_v56 = vadd.f32 %v5630_v25, %v9455_v12  ;;  %v5594_v27 = vadd.f32 %v5593_v9, %v5497_v2  ;;  %v5654_v37 = vmul.f32 %v9466_v49, %v9466_v49  ;;  %v39_v33 = vld [vmem:[%s9600_s4 + $0x2] sm:$0x1] }
 0x3e0   :  { %v5620_v31 = vmul.f32 %v5602_v47, %v9793_v23  ;;  %v9794_v9 = vld [vmem:[#allocation34_spill] sm:$0xff] }
 0x3e1   :  { %v5632_v42 = vadd.f32 %v5631_v56, %v9466_v49  ;;  %v5668_v14 = vadd.f32 %v5667_v38, %v5653_v20  ;;  %v5618_v32 = vmul.f32 %v5594_v27, %v9792_v13 }
 0x3e2   :  { %v5657_v22 = vmul.f32 %v5620_v31, %v5620_v31 }
 0x3e3   :  { %v5669_v10 = vadd.f32 %v5668_v14, %v5654_v37  ;;  %v5633_v39 = vadd.f32 %v5632_v42, %v5618_v32  ;;  %v5655_v45 = vmul.f32 %v5618_v32, %v5618_v32 }
 0x3e5   :  { %v5634_v59 = vadd.f32 %v5633_v39, %v5619_v4  ;;  %v5670_v50 = vadd.f32 %v5669_v10, %v5655_v45 }
 0x3e7   :  { %v5671_v62 = vadd.f32 %v5670_v50, %v5656_v3  ;;  %v5635_v51 = vadd.f32 %v5634_v59, %v5620_v31 }
 0x3e9   :  { %v5636_v54 = vrot.slane %v5635_v51, 4  ;;  %v5672_v21 = vadd.f32 %v5671_v62, %v5657_v22  ;;  %v5741_v62 = vld [vmem:[%s9597_s0 + $0x48] sm:$0xff] }
 0x3eb   :  { %v5637_v43 = vadd.f32 %v5636_v54, %v5635_v51  ;;  %v5673_v24 = vrot.slane %v5672_v21, 4  ;;  %v5742_v51 = vld [vmem:[%s9597_s0 + $0x50] sm:$0xff]  ;;  %v5743_v54 = vld [vmem:[%s9597_s0 + $0x58] sm:$0xff] }
 0x3ed   :  { %v5638_v30 = vrot.slane %v5637_v43, 2  ;;  %v5674_v19 = vadd.f32 %v5673_v24, %v5672_v21 }
 0x3ef   :  { %v5639_v58 = vadd.f32 %v5638_v30, %v5637_v43  ;;  %v5675_v41 = vrot.slane %v5674_v19, 2 }
 0x3f1   :  { %v5640_v48 = vrot.slane %v5639_v58, 1  ;;  %v5676_v36 = vadd.f32 %v5675_v41, %v5674_v19  ;;  %v5744_v19 = vld [vmem:[%s9597_s0 + $0x60] sm:$0xff]  ;;  %v5746_v41 = vld [vmem:[%s9597_s0 + $0x70] sm:$0xff] }
 0x3f3   :  { %v5641_v0 = vadd.f32 %v5640_v48, %v5639_v58  ;;  %v5677_v6 = vrot.slane %v5676_v36, 1  ;;  %v5745_v58 = vld [vmem:[%s9597_s0 + $0x68] sm:$0xff] }
 0x3f5   :  { %5679 = vrot.lane.b32.xlu0 %v5641_v0, %s7412_s1  ;;  %v5678_v35 = vadd.f32 %v5677_v6, %v5676_v36 }
 0x3f7   :  { %5682 = vrot.lane.b32.xlu1 %v5678_v35, %s7412_s1 }
 0x467   :  { %v5680_v53 = vpop.permute.xlu0 %5679 }
 0x468   :  { %v5681_v18 = vadd.f32 %v5680_v53, %v5641_v0  ;;  %v5748_v53 = vld [vmem:[%s9597_s0 + $0x80] sm:$0xff] }
 0x469   :  { %v5683_v26 = vpop.permute.xlu1 %5682 }
 0x46a   :  { %v5685_v7 = vmul.f32 0.0061728396, %v5681_v18  ;;  %v5684_v61 = vadd.f32 %v5683_v26, %v5678_v35  ;;  %v5747_v35 = vld [vmem:[%s9597_s0 + $0x78] sm:$0xff]  ;;  %v5749_v18 = vld [vmem:[%s9597_s0 + $0x88] sm:$0xff] }
 0x46c   :  { %v5687_v63 = vmul.f32 %v5685_v7, %v5685_v7  ;;  %v5686_v40 = vmul.f32 0.0061728396, %v5684_v61 }
 0x46e   :  { %v5688_v11 = vsub.f32 %v5686_v40, %v5687_v63 }
 0x470   :  { %v5689_v25 = vadd.f32 1e-05, %v5688_v11 }
 0x472   :  { %7409 = vrsqrt.f32 %v5689_v25 }
 0x47f   :  { %v7410_v16 = vpop.eup %7409 }
 0x480   :  { %v5691_v1 = vmul.f32 %v7410_v16, %v39_v33 }
 0x482   :  { %v5692_v2 = vmul.f32 %v5691_v1, %v5685_v7  ;;  %v5697_v20 = vrot.slane %v5691_v1, %v9794_v9 }
 0x484   :  { %v5693_v38 = vsub.f32 %v40_v55, %v5692_v2  ;;  %v5698_v56 = vmul.f32 %v5697_v20, %v9354_v8  ;;  %v5699_v47 = vmul.f32 %v5697_v20, %v9367_v5  ;;  %v5700_v27 = vmul.f32 %v5697_v20, %v9364_v28 }
 0x485   :  { %v5701_v42 = vmul.f32 %v5697_v20, %v9373_v44  ;;  %v5702_v37 = vmul.f32 %v5697_v20, %v9392_v34  ;;  %v5703_v14 = vmul.f32 %v5697_v20, %v9412_v17  ;;  %v5704_v29 = vmul.f32 %v5697_v20, %v9406_v57  ;;  %v5734_v44 = vld [vmem:[%s9597_s0 + $0x10] sm:$0xff] }
 0x486   :  { %v5705_v13 = vmul.f32 %v5697_v20, %v9418_v15  ;;  %v5706_v10 = vmul.f32 %v5697_v20, %v9435_v52  ;;  %v5707_v23 = vmul.f32 %v5697_v20, %v9450_v46  ;;  %v5708_v8 = vmul.f32 %v5697_v20, %v9444_v60  ;;  %v5735_v15 = vld [vmem:[%s9597_s0 + $0x18] sm:$0xff]  ;;  %v5736_v52 = vld [vmem:[%s9597_s0 + $0x20] sm:$0xff]  ;;  %v5737_v60 = vld [vmem:[%s9597_s0 + $0x28] sm:$0xff] }
 0x487   :  { %v5709_v5 = vmul.f32 %v5697_v20, %v9455_v12  ;;  %v5717_v28 = vrot.slane %v5693_v38, %v9794_v9  ;;  %v5710_v34 = vmul.f32 %v5697_v20, %v9466_v49  ;;  %v5711_v17 = vmul.f32 %v5697_v20, %v5618_v32  ;;  %v5738_v49 = vld [vmem:[%s9597_s0 + $0x30] sm:$0xff]  ;;  %v5740_v32 = vld [vmem:[%s9597_s0 + $0x40] sm:$0xff] }
 0x488   :  { %v5712_v57 = vmul.f32 %v5697_v20, %v5619_v4  ;;  %v5713_v39 = vmul.f32 %v5697_v20, %v5620_v31  ;;  %v5739_v4 = vld [vmem:[%s9597_s0 + $0x38] sm:$0xff] }
 0x489   :  { %v5718_v46 = vadd.f32 %v5717_v28, %v5698_v56  ;;  %v5719_v12 = vadd.f32 %v5717_v28, %v5699_v47  ;;  %v5720_v45 = vadd.f32 %v5717_v28, %v5700_v27  ;;  %v5721_v3 = vadd.f32 %v5717_v28, %v5701_v42 }
 0x48a   :  { %v5722_v31 = vadd.f32 %v5717_v28, %v5702_v37  ;;  %v5723_v59 = vadd.f32 %v5717_v28, %v5703_v14  ;;  %v5724_v50 = vadd.f32 %v5717_v28, %v5704_v29  ;;  %v5725_v22 = vadd.f32 %v5717_v28, %v5705_v13 }
 0x48b   :  { %v5726_v21 = vadd.f32 %v5717_v28, %v5706_v10  ;;  %v5727_v43 = vadd.f32 %v5717_v28, %v5707_v23  ;;  %v5728_v24 = vadd.f32 %v5717_v28, %v5708_v8  ;;  %v5729_v30 = vadd.f32 %v5717_v28, %v5709_v5 }
 0x48c   :  { %v5730_v48 = vadd.f32 %v5717_v28, %v5710_v34  ;;  %v5731_v36 = vadd.f32 %v5717_v28, %v5711_v17  ;;  %v5732_v0 = vadd.f32 %v5717_v28, %v5712_v57  ;;  %v5733_v6 = vadd.f32 %v5717_v28, %v5713_v39 }
 0x48d   :  { %v5750_v26 = vadd.f32 %v5734_v44, %v5718_v46  ;;  %v5751_v7 = vadd.f32 %v5735_v15, %v5719_v12  ;;  %v5752_v61 = vadd.f32 %v5736_v52, %v5720_v45  ;;  %v5753_v63 = vadd.f32 %v5737_v60, %v5721_v3 }
 0x48e   :  { %v5754_v40 = vadd.f32 %v5738_v49, %v5722_v31  ;;  %v5755_v11 = vadd.f32 %v5739_v4, %v5723_v59  ;;  %v5756_v25 = vadd.f32 %v5740_v32, %v5724_v50  ;;  %v5757_v33 = vadd.f32 %v5741_v62, %v5725_v22 }
 0x48f   :  { %v5758_v16 = vadd.f32 %v5742_v51, %v5726_v21  ;;  %v5759_v1 = vadd.f32 %v5743_v54, %v5727_v43  ;;  %v5760_v55 = vadd.f32 %v5744_v19, %v5728_v24  ;;  %v5761_v2 = vadd.f32 %v5745_v58, %v5729_v30 }
 0x490   :  { %v5762_v9 = vadd.f32 %v5746_v41, %v5730_v48  ;;  %v5763_v20 = vadd.f32 %v5747_v35, %v5731_v36  ;;  %v5764_v38 = vadd.f32 %v5748_v53, %v5732_v0  ;;  %v5765_v56 = vadd.f32 %v5749_v18, %v5733_v6 }
 0x491   :  { %v5766_v47 = vmax.f32 %v5750_v26, 0.0  ;;  %v5767_v27 = vmax.f32 %v5751_v7, 0.0  ;;  %v5768_v42 = vmax.f32 %v5752_v61, 0.0  ;;  %v5769_v37 = vmax.f32 %v5753_v63, 0.0 }
 0x492   :  { %v5770_v14 = vmax.f32 %v5754_v40, 0.0  ;;  %v5771_v29 = vmax.f32 %v5755_v11, 0.0  ;;  %v5772_v13 = vmax.f32 %v5756_v25, 0.0  ;;  %v5773_v10 = vmax.f32 %v5757_v33, 0.0 }
 0x493   :  { %v5774_v23 = vmax.f32 %v5758_v16, 0.0  ;;  %v5775_v8 = vmax.f32 %v5759_v1, 0.0  ;;  %v5776_v5 = vmax.f32 %v5760_v55, 0.0  ;;  %v5777_v28 = vmax.f32 %v5761_v2, 0.0  ;;  %5782 = vst [vmem:[%s9601_s5] sm:$0xff] %v5766_v47  ;;  %5783 = vst [vmem:[%s9601_s5 + $0x8] sm:$0xff] %v5767_v27 }
 0x494   :  { %5784 = vst [vmem:[%s9601_s5 + $0x10] sm:$0xff] %v5768_v42  ;;  %5785 = vst [vmem:[%s9601_s5 + $0x18] sm:$0xff] %v5769_v37  ;;  %v5778_v44 = vmax.f32 %v5762_v9, 0.0  ;;  %v5779_v34 = vmax.f32 %v5763_v20, 0.0  ;;  %v5780_v17 = vmax.f32 %v5764_v38, 0.0  ;;  %v5781_v57 = vmax.f32 %v5765_v56, 0.0 }
 0x495   :  { %5786 = vst [vmem:[%s9601_s5 + $0x20] sm:$0xff] %v5770_v14  ;;  %5787 = vst [vmem:[%s9601_s5 + $0x28] sm:$0xff] %v5771_v29 }
 0x496   :  { %5788 = vst [vmem:[%s9601_s5 + $0x30] sm:$0xff] %v5772_v13  ;;  %5789 = vst [vmem:[%s9601_s5 + $0x38] sm:$0xff] %v5773_v10 }
 0x497   :  { %5790 = vst [vmem:[%s9601_s5 + $0x40] sm:$0xff] %v5774_v23  ;;  %5791 = vst [vmem:[%s9601_s5 + $0x48] sm:$0xff] %v5775_v8 }
 0x498   :  { %5792 = vst [vmem:[%s9601_s5 + $0x50] sm:$0xff] %v5776_v5  ;;  %5793 = vst [vmem:[%s9601_s5 + $0x58] sm:$0xff] %v5777_v28 }
 0x499   :  { %5794 = vst [vmem:[%s9601_s5 + $0x60] sm:$0xff] %v5778_v44  ;;  %5795 = vst [vmem:[%s9601_s5 + $0x68] sm:$0xff] %v5779_v34 }
 0x49a   :  { %5796 = vst [vmem:[%s9601_s5 + $0x70] sm:$0xff] %v5780_v17  ;;  %5797 = vst [vmem:[%s9601_s5 + $0x78] sm:$0xff] %v5781_v57 }

</bundles_post_ra>
